<compile_context>
chip_gen: v7x
topology: tpu7x:2x2x1
jax: 0.10.0
libtpu: 0.0.40
codegen_flags: <defaults>
</compile_context>

<pallas_src>
import functools
import math

import numpy as np
import jax
import jax.numpy as jnp
from jax.experimental import pallas as pl
from jax.experimental.pallas import tpu as pltpu

# ----------------------------- config (small) --------------------------------
FRAME_SIZE = 2          # N frames (PyTorch default is 50; scaled down)
IN_CH = 3
IMG = 32                # H = W
PATCH = 4
EMBED = 32              # embed_dim (96 in the original, scaled down)
DEPTHS = (2, 2)         # ([2,2,6,2] in the original, scaled down)
HEADS = (2, 4)          # ([3,6,12,24] in the original, scaled down)
WINDOW = 4              # (7 in the original, scaled down)
MLP_RATIO = 4.0
LN_EPS = 1e-5

VMEM_LIMIT = 32 * 1024 * 1024   # safe on all generations (v7x scoped default)
ROW_TILE_CAP = 512              # raise to 1024 on v5e/v6e at the real config


def _row_tile(m, cap=ROW_TILE_CAP):
    """Row tile: divides m, <= cap, and gives >=2 grid steps when possible so
    both v7x TensorCores get work ("parallel" grid axis)."""
    t = m
    if t % 2 == 0 and t // 2 >= 16:
        t //= 2
    while t > cap:
        if t % 2 == 0 and t // 2 >= 16:
            t //= 2
        else:
            break
    return t


def _mosaic_params(semantics=("parallel",)):
    return pltpu.CompilerParams(dimension_semantics=semantics,
                                vmem_limit_bytes=VMEM_LIMIT)


# --------------------------- in-kernel math helpers ---------------------------
def _ln_f32(x, g, b):
    """LayerNorm over the last (lane) axis, f32 statistics."""
    mu = jnp.mean(x, axis=-1, keepdims=True)
    var = jnp.mean(jnp.square(x - mu), axis=-1, keepdims=True)
    return (x - mu) * jax.lax.rsqrt(var + LN_EPS) * g + b


_A1, _A2, _A3, _A4, _A5 = (0.254829592, -0.284496736, 1.421413741,
                           -1.453152027, 1.061405429)
_PP = 0.3275911
_INV_SQRT2 = 0.7071067811865476


def _erf_f32(x):
    # Abramowitz & Stegun 7.1.26 (|err| < 1.5e-7).  The divide is replaced by
    # an approximate reciprocal (EUP slot ~free; error << bf16 resolution).
    ax = jnp.abs(x)
    t = pl.reciprocal(1.0 + _PP * ax, approx=True)
    poly = ((((_A5 * t + _A4) * t + _A3) * t + _A2) * t + _A1) * t
    y = 1.0 - poly * jnp.exp(-ax * ax)
    return jnp.where(x >= 0.0, y, -y)


def _gelu_exact(x):
    # matches nn.GELU() (erf-based) to ~1e-4 relative (below bf16 noise floor)
    return 0.5 * x * (1.0 + _erf_f32(x * _INV_SQRT2))


# ------------------------------ Pallas kernels -------------------------------
def _ln_matmul_kernel(x_ref, g_ref, b_ref, w_ref, bias_ref, o_ref):
    """o = LN(x) @ w + bias   (LN in f32, matmul bf16 x bf16 -> f32 acc)."""
    x = x_ref[...].astype(jnp.float32)
    h = _ln_f32(x, g_ref[...], b_ref[...])
    acc = jnp.dot(h.astype(jnp.bfloat16), w_ref[...],
                  preferred_element_type=jnp.float32)
    o_ref[...] = (acc + bias_ref[...]).astype(o_ref.dtype)


def _matmul_ln_kernel(x_ref, w_ref, bias_ref, g_ref, b_ref, o_ref):
    """o = LN(x @ w + bias)   (patch embed: conv-as-matmul fused with its LN)."""
    acc = jnp.dot(x_ref[...], w_ref[...], preferred_element_type=jnp.float32)
    o_ref[...] = _ln_f32(acc + bias_ref[...], g_ref[...], b_ref[...]
                         ).astype(o_ref.dtype)


def _ln_mlp_kernel(x_ref, g_ref, b_ref, w1_ref, b1_ref, w2_ref, b2_ref, o_ref):
    """o = x + fc2(GELU(fc1(LN(x)))) -- the 4x hidden stays in VMEM."""
    x = x_ref[...].astype(jnp.float32)
    h = _ln_f32(x, g_ref[...], b_ref[...])
    h1 = jnp.dot(h.astype(jnp.bfloat16), w1_ref[...],
                 preferred_element_type=jnp.float32) + b1_ref[...]
    h1 = _gelu_exact(h1)
    h2 = jnp.dot(h1.astype(jnp.bfloat16), w2_ref[...],
                 preferred_element_type=jnp.float32) + b2_ref[...]
    o_ref[...] = (x + h2).astype(o_ref.dtype)


def _attn_block_kernel(x_ref, g1_ref, b1_ref, wqkv_ref, bqkv_ref, bias_ref,
                       pw_ref, pb_ref, o_ref, *, nh, hd, dim, nW, wl):
    """One frame per grid step:
       LN1 -> QKV (scale pre-folded into Q weights) -> batched window attention
       over (nh*nW) -> head merge -> single output projection -> + residual."""
    x = x_ref[0].astype(jnp.float32)                       # (T, dim)
    h = _ln_f32(x, g1_ref[...], b1_ref[...])
    qkv = jnp.dot(h.astype(jnp.bfloat16), wqkv_ref[...],
                  preferred_element_type=jnp.float32) + bqkv_ref[...]
    qkv = qkv.astype(jnp.bfloat16)                          # (T, 3*dim)

    # Per-head lane slices (unavoidable given the (T, 3*dim) layout), then one
    # batched contraction over b = nh*nW instead of a per-head matmul loop.
    qs, ks, vs = [], [], []
    for hh in range(nh):                                    # static, tiny
        qs.append(qkv[:, hh * hd:(hh + 1) * hd].reshape(nW, wl, hd))
        ks.append(qkv[:, dim + hh * hd:dim + (hh + 1) * hd].reshape(nW, wl, hd))
        vs.append(qkv[:, 2 * dim + hh * hd:2 * dim + (hh + 1) * hd]
                  .reshape(nW, wl, hd))
    q = jnp.concatenate(qs, axis=0)                         # (nh*nW, wl, hd)
    k = jnp.concatenate(ks, axis=0)
    v = jnp.concatenate(vs, axis=0)

    s = jnp.einsum("bqd,bkd->bqk", q, k,
                   preferred_element_type=jnp.float32)      # (nh*nW, wl, wl)
    # relative-position bias (+shift mask); broadcast over nW inside the kernel
    s = (s.reshape(nh, nW, wl, wl) + bias_ref[...]).reshape(nh * nW, wl, wl)

    m = jnp.max(s, axis=-1, keepdims=True)
    e = jnp.exp(s - m)
    den = jnp.sum(e, axis=-1, keepdims=True)
    ow = jnp.einsum("bqk,bkd->bqd", e.astype(jnp.bfloat16), v,
                    preferred_element_type=jnp.float32)     # (nh*nW, wl, hd)
    ow = ow * (1.0 / den)                                   # exact reciprocal

    # merge heads -> (T, dim), then ONE projection matmul with K=dim
    om = jnp.concatenate(
        [ow[hh * nW:(hh + 1) * nW].reshape(nW * wl, hd) for hh in range(nh)],
        axis=-1)
    out = jnp.dot(om.astype(jnp.bfloat16), pw_ref[...],
                  preferred_element_type=jnp.float32) + pb_ref[...]
    o_ref[0] = (x + out).astype(o_ref.dtype)                # residual folded in


def _final_ln_pool_kernel(x_ref, g_ref, b_ref, o_ref):
    """Final LayerNorm + mean pool over tokens."""
    x = x_ref[...].astype(jnp.float32)                      # (B, L, C)
    y = _ln_f32(x, g_ref[...], b_ref[...])
    o_ref[...] = jnp.mean(y, axis=1).astype(o_ref.dtype)


# ------------------------------ kernel wrappers -------------------------------
def fused_ln_matmul(x2d, g, b, w, bias, out_dtype=jnp.float32):
    M, K = x2d.shape
    N = w.shape[1]
    tm = _row_tile(M)
    return pl.pallas_call(
        _ln_matmul_kernel,
        out_shape=jax.ShapeDtypeStruct((M, N), out_dtype),
        grid=(M // tm,),
        in_specs=[
            pl.BlockSpec((tm, K), lambda i: (i, 0)),
            pl.BlockSpec((1, K), lambda i: (0, 0)),
            pl.BlockSpec((1, K), lambda i: (0, 0)),
            pl.BlockSpec((K, N), lambda i: (0, 0)),
            pl.BlockSpec((1, N), lambda i: (0, 0)),
        ],
        out_specs=pl.BlockSpec((tm, N), lambda i: (i, 0)),
        compiler_params=_mosaic_params(),
    )(x2d, g.reshape(1, K), b.reshape(1, K),
      w.astype(jnp.bfloat16), bias.reshape(1, N))


def fused_patch_embed(x2d, w, bias, g, b):
    M, K = x2d.shape
    N = w.shape[1]
    tm = _row_tile(M)
    return pl.pallas_call(
        _matmul_ln_kernel,
        out_shape=jax.ShapeDtypeStruct((M, N), jnp.float32),
        grid=(M // tm,),
        in_specs=[
            pl.BlockSpec((tm, K), lambda i: (i, 0)),
            pl.BlockSpec((K, N), lambda i: (0, 0)),
            pl.BlockSpec((1, N), lambda i: (0, 0)),
            pl.BlockSpec((1, N), lambda i: (0, 0)),
            pl.BlockSpec((1, N), lambda i: (0, 0)),
        ],
        out_specs=pl.BlockSpec((tm, N), lambda i: (i, 0)),
        compiler_params=_mosaic_params(),
    )(x2d.astype(jnp.bfloat16), w.astype(jnp.bfloat16),
      bias.reshape(1, N), g.reshape(1, N), b.reshape(1, N))


def fused_ln_mlp_residual(x2d, g, b, w1, b1, w2, b2):
    M, C = x2d.shape
    H = w1.shape[1]
    tm = _row_tile(M)
    return pl.pallas_call(
        _ln_mlp_kernel,
        out_shape=jax.ShapeDtypeStruct((M, C), x2d.dtype),
        grid=(M // tm,),
        in_specs=[
            pl.BlockSpec((tm, C), lambda i: (i, 0)),
            pl.BlockSpec((1, C), lambda i: (0, 0)),
            pl.BlockSpec((1, C), lambda i: (0, 0)),
            pl.BlockSpec((C, H), lambda i: (0, 0)),
            pl.BlockSpec((1, H), lambda i: (0, 0)),
            pl.BlockSpec((H, C), lambda i: (0, 0)),
            pl.BlockSpec((1, C), lambda i: (0, 0)),
        ],
        out_specs=pl.BlockSpec((tm, C), lambda i: (i, 0)),
        compiler_params=_mosaic_params(),
    )(x2d, g.reshape(1, C), b.reshape(1, C),
      w1.astype(jnp.bfloat16), b1.reshape(1, H),
      w2.astype(jnp.bfloat16), b2.reshape(1, C))


def fused_attn_block(x_win, g1, b1, qkv_w, qkv_b, bias, proj_w, proj_b,
                     *, nh, hd, nW, wl):
    """x_win: (B, T, dim) f32 in window order; bias: (nh, 1 or nW, wl, wl) f32.
    Returns x_win + proj(attention(LN1(x_win)))  (residual folded)."""
    B, T, dim = x_win.shape
    nW_b = bias.shape[1]
    kern = functools.partial(_attn_block_kernel, nh=nh, hd=hd, dim=dim,
                             nW=nW, wl=wl)
    return pl.pallas_call(
        kern,
        out_shape=jax.ShapeDtypeStruct((B, T, dim), jnp.float32),
        grid=(B,),
        in_specs=[
            pl.BlockSpec((1, T, dim), lambda b_: (b_, 0, 0)),
            pl.BlockSpec((1, dim), lambda b_: (0, 0)),
            pl.BlockSpec((1, dim), lambda b_: (0, 0)),
            pl.BlockSpec((dim, 3 * dim), lambda b_: (0, 0)),
            pl.BlockSpec((1, 3 * dim), lambda b_: (0, 0)),
            pl.BlockSpec((nh, nW_b, wl, wl), lambda b_: (0, 0, 0, 0)),
            pl.BlockSpec((dim, dim), lambda b_: (0, 0)),
            pl.BlockSpec((1, dim), lambda b_: (0, 0)),
        ],
        out_specs=pl.BlockSpec((1, T, dim), lambda b_: (b_, 0, 0)),
        compiler_params=_mosaic_params(),
    )(x_win, g1.reshape(1, dim), b1.reshape(1, dim),
      qkv_w.astype(jnp.bfloat16), qkv_b.reshape(1, 3 * dim),
      bias, proj_w.astype(jnp.bfloat16), proj_b.reshape(1, dim))


def fused_final_ln_pool(x, g, b):
    B, L, C = x.shape
    return pl.pallas_call(
        _final_ln_pool_kernel,
        out_shape=jax.ShapeDtypeStruct((B, C), jnp.float32),
        grid=(1,),
        in_specs=[
            pl.BlockSpec((B, L, C), lambda i: (0, 0, 0)),
            pl.BlockSpec((1, 1, C), lambda i: (0, 0, 0)),
            pl.BlockSpec((1, 1, C), lambda i: (0, 0, 0)),
        ],
        out_specs=pl.BlockSpec((B, C), lambda i: (0, 0)),
        compiler_params=_mosaic_params(("arbitrary",)),
    )(x, g.reshape(1, 1, C), b.reshape(1, 1, C))


# ------------------------------ static Swin tables ----------------------------
def make_rel_index(ws):
    coords = np.stack(np.meshgrid(np.arange(ws), np.arange(ws), indexing="ij"))
    flat = coords.reshape(2, -1)
    rel = (flat[:, :, None] - flat[:, None, :]).transpose(1, 2, 0).astype(np.int64)
    rel[:, :, 0] += ws - 1
    rel[:, :, 1] += ws - 1
    rel[:, :, 0] *= 2 * ws - 1
    return rel.sum(-1)  # (wl, wl)


def make_shift_mask(res, ws, shift):
    img = np.zeros((res, res), np.float32)
    cnt = 0
    for hs in (slice(0, -ws), slice(-ws, -shift), slice(-shift, None)):
        for vs in (slice(0, -ws), slice(-ws, -shift), slice(-shift, None)):
            img[hs, vs] = cnt
            cnt += 1
    mw = img.reshape(res // ws, ws, res // ws, ws).transpose(0, 2, 1, 3)
    mw = mw.reshape(-1, ws * ws)
    diff = mw[:, None, :] - mw[:, :, None]
    return np.where(diff != 0, -100.0, 0.0).astype(np.float32)  # (nW, wl, wl)


def build_static():
    stages = []
    res = IMG // PATCH
    for i, depth in enumerate(DEPTHS):
        ws = WINDOW if res > WINDOW else res
        blocks = []
        for j in range(depth):
            shift = (WINDOW // 2) if (j % 2 == 1 and res > WINDOW) else 0
            blocks.append(dict(
                ws=ws, shift=shift,
                rel_index=make_rel_index(ws),
                mask=make_shift_mask(res, ws, shift) if shift > 0 else None,
            ))
        stages.append(dict(res=res, ws=ws, blocks=blocks))
        if i < len(DEPTHS) - 1:
            res //= 2
    return stages


STATIC = build_static()


# --------------------------------- parameters ---------------------------------
def init_params():
    rng = [jax.random.PRNGKey(2024)]

    def nk():
        rng[0], sub = jax.random.split(rng[0])
        return sub

    def randn(shape, std=0.02):
        return jax.random.normal(nk(), shape, jnp.float32) * std

    p = {}
    patch_dim = IN_CH * PATCH * PATCH
    p["patch_embed"] = dict(
        w=randn((patch_dim, EMBED)), b=jnp.zeros((EMBED,), jnp.float32),
        ng=jnp.ones((EMBED,), jnp.float32), nb=jnp.zeros((EMBED,), jnp.float32),
    )
    stages = []
    dim = EMBED
    for i, depth in enumerate(DEPTHS):
        nh = HEADS[i]
        ws = STATIC[i]["ws"]
        hidden = int(dim * MLP_RATIO)
        scale = (dim // nh) ** -0.5
        blocks = []
        for _ in range(depth):
            qkv_w = randn((dim, 3 * dim))
            qkv_b = jnp.zeros((3 * dim,))
            # fold the attention scale into the Q columns (free, host-side)
            qkv_w = qkv_w.at[:, :dim].multiply(scale)
            qkv_b = qkv_b.at[:dim].multiply(scale)
            blocks.append(dict(
                n1g=jnp.ones((dim,)), n1b=jnp.zeros((dim,)),
                qkv_w=qkv_w, qkv_b=qkv_b,
                proj_w=randn((dim, dim)), proj_b=jnp.zeros((dim,)),
                rpb=randn(((2 * ws - 1) ** 2, nh)),
                n2g=jnp.ones((dim,)), n2b=jnp.zeros((dim,)),
                fc1_w=randn((dim, hidden)), fc1_b=jnp.zeros((hidden,)),
                fc2_w=randn((hidden, dim)), fc2_b=jnp.zeros((dim,)),
            ))
        stage = dict(blocks=blocks)
        if i < len(DEPTHS) - 1:
            stage["ds"] = dict(
                ng=jnp.ones((4 * dim,)), nb=jnp.zeros((4 * dim,)),
                rw=randn((4 * dim, 2 * dim)),
            )
        stages.append(stage)
        if i < len(DEPTHS) - 1:
            dim *= 2
    p["stages"] = stages
    p["norm_g"] = jnp.ones((dim,))
    p["norm_b"] = jnp.zeros((dim,))
    return p


# ----------------------------------- model ------------------------------------
def swin_block(x, bp, st, B, res, dim, nh):
    L = res * res
    ws, shift = st["ws"], st["shift"]
    wl = ws * ws
    nW = (res // ws) ** 2
    hd = dim // nh

    # ---- cyclic shift + window partition (tiny XLA gather; ~16 KB) ----
    h = x.reshape(B, res, res, dim)
    if shift > 0:
        h = jnp.roll(h, shift=(-shift, -shift), axis=(1, 2))
    h = h.reshape(B, res // ws, ws, res // ws, ws, dim)
    h = h.transpose(0, 1, 3, 2, 4, 5).reshape(B, nW * wl, dim)

    # ---- relative-position bias; only tiled to nW when a shift mask exists ----
    bias = bp["rpb"][st["rel_index"].reshape(-1)].reshape(wl, wl, nh)
    bias = bias.transpose(2, 0, 1)                        # (nh, wl, wl)
    if st["mask"] is None:
        comb = bias[:, None, :, :]                        # (nh, 1, wl, wl)
    else:
        comb = bias[:, None, :, :] + jnp.asarray(st["mask"])[None, :, :, :]
    comb = comb.astype(jnp.float32)

    # ---- ONE kernel: LN1 -> QKV -> attention -> proj -> + residual ----
    o = fused_attn_block(h, bp["n1g"], bp["n1b"], bp["qkv_w"], bp["qkv_b"],
                         comb, bp["proj_w"], bp["proj_b"],
                         nh=nh, hd=hd, nW=nW, wl=wl)

    # ---- window reverse + un-shift (tiny XLA gather; residual already added) ----
    o = o.reshape(B, res // ws, res // ws, ws, ws, dim)
    o = o.transpose(0, 1, 3, 2, 4, 5).reshape(B, res, res, dim)
    if shift > 0:
        o = jnp.roll(o, shift=(shift, shift), axis=(1, 2))
    x = o.reshape(B * L, dim)

    # ---- ONE kernel: LN2 -> fc1 -> GELU -> fc2 -> + residual ----
    x = fused_ln_mlp_residual(x, bp["n2g"], bp["n2b"],
                              bp["fc1_w"], bp["fc1_b"],
                              bp["fc2_w"], bp["fc2_b"])
    return x.reshape(B, L, dim)


def patch_merging(x, dsp, B, res, dim):
    x = x.reshape(B, res, res, dim)
    x0 = x[:, 0::2, 0::2, :]
    x1 = x[:, 1::2, 0::2, :]
    x2 = x[:, 0::2, 1::2, :]
    x3 = x[:, 1::2, 1::2, :]
    x = jnp.concatenate([x0, x1, x2, x3], axis=-1).reshape(-1, 4 * dim)
    # fused LN -> reduction linear (bias=False)
    x = fused_ln_matmul(x, dsp["ng"], dsp["nb"], dsp["rw"],
                        jnp.zeros((2 * dim,), jnp.float32),
                        out_dtype=jnp.float32)
    return x.reshape(B, (res // 2) ** 2, 2 * dim)


def swin_forward_features(params, x_nchw):
    N, C, H, W = x_nchw.shape
    # --- patch embed: Conv2d(k=4, s=4) as im2col matmul fused with its LN ---
    Hp, Wp = H // PATCH, W // PATCH
    x = x_nchw.reshape(N, C, Hp, PATCH, Wp, PATCH)
    x = x.transpose(0, 2, 4, 1, 3, 5)                 # N, Hp, Wp, C, ph, pw
    x = x.reshape(N * Hp * Wp, C * PATCH * PATCH)     # im2col (c-major, matches torch)
    pe = params["patch_embed"]
    x = fused_patch_embed(x, pe["w"], pe["b"], pe["ng"], pe["nb"])

    res = Hp
    dim = EMBED
    x = x.reshape(N, res * res, dim)
    for i, depth in enumerate(DEPTHS):
        sp = params["stages"][i]
        for j in range(depth):
            x = swin_block(x, sp["blocks"][j], STATIC[i]["blocks"][j],
                           N, res, dim, HEADS[i])
        if i < len(DEPTHS) - 1:
            x = patch_merging(x, sp["ds"], N, res, dim)
            res //= 2
            dim *= 2

    # final LayerNorm + mean pool over tokens (avgpool + flatten), fused
    return fused_final_ln_pool(x, params["norm_g"], params["norm_b"])  # (N, feat)


@jax.jit
def video_processor_forward(params, inputs):
    # mirrors VideoProcessor.forward
    return swin_forward_features(params, inputs)


# ----------------------------------- main --------------------------------------
if __name__ == "__main__":
    params = init_params()
    key = jax.random.PRNGKey(0)
    inputs = jax.random.normal(key, (FRAME_SIZE, IN_CH, IMG, IMG), jnp.float32)

    N = inputs.shape[0]
    assert N == FRAME_SIZE  # VideoProcessor assertion

    out = video_processor_forward(params, inputs)
    out = jax.block_until_ready(out)

    assert out.shape[0] == N  # VideoProcessor assertion
    assert out.shape == (FRAME_SIZE, EMBED * 2 ** (len(DEPTHS) - 1))
    assert bool(jnp.all(jnp.isfinite(out)))
    print("KERNEL_OK")
</pallas_src>

<mosaic_0001>
module attributes {stable_mosaic.version = 11 : i64} {
  func.func @_matmul_ln_kernel(%arg0: i32, %arg1: memref<64x48xbf16, #tpu.memory_space<vmem>>, %arg2: memref<48x32xbf16, #tpu.memory_space<vmem>>, %arg3: memref<1x32xf32, #tpu.memory_space<vmem>>, %arg4: memref<1x32xf32, #tpu.memory_space<vmem>>, %arg5: memref<1x32xf32, #tpu.memory_space<vmem>>, %arg6: memref<64x32xf32, #tpu.memory_space<vmem>>) attributes {dimension_semantics = [#tpu.dimension_semantics<parallel>], iteration_bounds = array<i64: 2>, scalar_prefetch = 0 : i64, scratch_operands = 0 : i64, tpu.core_type = #tpu.core_type<tc>, window_params = [{transform_indices = @transform_0, window_bounds = array<i64: 64, 48>}, {pipeline_mode = #tpu.pipeline_mode<synchronous>, transform_indices = @transform_1, window_bounds = array<i64: 48, 32>}, {pipeline_mode = #tpu.pipeline_mode<synchronous>, transform_indices = @transform_2, window_bounds = array<i64: 1, 32>}, {pipeline_mode = #tpu.pipeline_mode<synchronous>, transform_indices = @transform_3, window_bounds = array<i64: 1, 32>}, {pipeline_mode = #tpu.pipeline_mode<synchronous>, transform_indices = @transform_4, window_bounds = array<i64: 1, 32>}, {transform_indices = @transform_5, window_bounds = array<i64: 64, 32>}]} {
    %c0 = arith.constant 0 : index
    %c0_0 = arith.constant 0 : index
    %0 = vector.load %arg1[%c0, %c0_0] : memref<64x48xbf16, #tpu.memory_space<vmem>>, vector<64x48xbf16>
    %c0_1 = arith.constant 0 : index
    %c0_2 = arith.constant 0 : index
    %1 = vector.load %arg2[%c0_1, %c0_2] : memref<48x32xbf16, #tpu.memory_space<vmem>>, vector<48x32xbf16>
    %cst = arith.constant dense<0.000000e+00> : vector<64x32xf32>
    %2 = tpu.matmul %0, %1, %cst {dimension_numbers = #tpu.dot_dimension_numbers<[1], [0], [0], [1], [0, 0, 1, 1], [], []>} : vector<64x48xbf16>, vector<48x32xbf16>, vector<64x32xf32> -> vector<64x32xf32>
    %c0_3 = arith.constant 0 : index
    %c0_4 = arith.constant 0 : index
    %3 = vector.load %arg3[%c0_3, %c0_4] : memref<1x32xf32, #tpu.memory_space<vmem>>, vector<1x32xf32>
    %4 = vector.broadcast %3 : vector<1x32xf32> to vector<64x32xf32>
    %5 = arith.addf %2, %4 : vector<64x32xf32>
    %c0_5 = arith.constant 0 : index
    %c0_6 = arith.constant 0 : index
    %6 = vector.load %arg4[%c0_5, %c0_6] : memref<1x32xf32, #tpu.memory_space<vmem>>, vector<1x32xf32>
    %c0_7 = arith.constant 0 : index
    %c0_8 = arith.constant 0 : index
    %7 = vector.load %arg5[%c0_7, %c0_8] : memref<1x32xf32, #tpu.memory_space<vmem>>, vector<1x32xf32>
    %cst_9 = arith.constant dense<0.000000e+00> : vector<64xf32>
    %8 = vector.multi_reduction <add>, %5, %cst_9 [1] : vector<64x32xf32> to vector<64xf32>
    %9 = vector.shape_cast %8 : vector<64xf32> to vector<64x1xf32>
    %cst_10 = arith.constant 3.200000e+01 : f32
    %10 = vector.broadcast %cst_10 : f32 to vector<64x1xf32>
    %11 = arith.divf %9, %10 : vector<64x1xf32>
    %12 = vector.broadcast %11 : vector<64x1xf32> to vector<64x32xf32>
    %13 = arith.subf %5, %12 : vector<64x32xf32>
    %14 = arith.mulf %13, %13 : vector<64x32xf32>
    %cst_11 = arith.constant dense<0.000000e+00> : vector<64xf32>
    %15 = vector.multi_reduction <add>, %14, %cst_11 [1] : vector<64x32xf32> to vector<64xf32>
    %16 = vector.shape_cast %15 : vector<64xf32> to vector<64x1xf32>
    %cst_12 = arith.constant 3.200000e+01 : f32
    %17 = vector.broadcast %cst_12 : f32 to vector<64x1xf32>
    %18 = arith.divf %16, %17 : vector<64x1xf32>
    %19 = vector.broadcast %11 : vector<64x1xf32> to vector<64x32xf32>
    %20 = arith.subf %5, %19 : vector<64x32xf32>
    %cst_13 = arith.constant 9.99999974E-6 : f32
    %21 = vector.broadcast %cst_13 : f32 to vector<64x1xf32>
    %22 = arith.addf %18, %21 : vector<64x1xf32>
    %23 = math.rsqrt %22 : vector<64x1xf32>
    %24 = vector.broadcast %23 : vector<64x1xf32> to vector<64x32xf32>
    %25 = arith.mulf %20, %24 : vector<64x32xf32>
    %26 = vector.broadcast %6 : vector<1x32xf32> to vector<64x32xf32>
    %27 = arith.mulf %25, %26 : vector<64x32xf32>
    %28 = vector.broadcast %7 : vector<1x32xf32> to vector<64x32xf32>
    %29 = arith.addf %27, %28 : vector<64x32xf32>
    %c0_14 = arith.constant 0 : index
    %c0_15 = arith.constant 0 : index
    %30 = vector.load %arg6[%c0_14, %c0_15] : memref<64x32xf32, #tpu.memory_space<vmem>>, vector<64x32xf32>
    tpu.vector_store %arg6[%c0_14, %c0_15], %29 {strides = array<i32>} : memref<64x32xf32, #tpu.memory_space<vmem>>, vector<64x32xf32>,
    return
  }
  func.func @transform_0(%arg0: i32) -> (i32, i32) {
    %c0_i32 = arith.constant 0 : i32
    %c0_i32_0 = arith.constant 0 : i32
    return %arg0, %c0_i32 : i32, i32
  }
  func.func @transform_1(%arg0: i32) -> (i32, i32) {
    %c0_i32 = arith.constant 0 : i32
    %c0_i32_0 = arith.constant 0 : i32
    %c0_i32_1 = arith.constant 0 : i32
    return %c0_i32, %c0_i32_0 : i32, i32
  }
  func.func @transform_2(%arg0: i32) -> (i32, i32) {
    %c0_i32 = arith.constant 0 : i32
    %c0_i32_0 = arith.constant 0 : i32
    %c0_i32_1 = arith.constant 0 : i32
    return %c0_i32, %c0_i32_0 : i32, i32
  }
  func.func @transform_3(%arg0: i32) -> (i32, i32) {
    %c0_i32 = arith.constant 0 : i32
    %c0_i32_0 = arith.constant 0 : i32
    %c0_i32_1 = arith.constant 0 : i32
    return %c0_i32, %c0_i32_0 : i32, i32
  }
  func.func @transform_4(%arg0: i32) -> (i32, i32) {
    %c0_i32 = arith.constant 0 : i32
    %c0_i32_0 = arith.constant 0 : i32
    %c0_i32_1 = arith.constant 0 : i32
    return %c0_i32, %c0_i32_0 : i32, i32
  }
  func.func @transform_5(%arg0: i32) -> (i32, i32) {
    %c0_i32 = arith.constant 0 : i32
    %c0_i32_0 = arith.constant 0 : i32
    return %arg0, %c0_i32 : i32, i32
  }
}

module attributes {stable_mosaic.version = 11 : i64} {
  func.func @_attn_block_kernel(%arg0: i32, %arg1: memref<1x64x32xf32, #tpu.memory_space<vmem>>, %arg2: memref<1x32xf32, #tpu.memory_space<vmem>>, %arg3: memref<1x32xf32, #tpu.memory_space<vmem>>, %arg4: memref<32x96xbf16, #tpu.memory_space<vmem>>, %arg5: memref<1x96xf32, #tpu.memory_space<vmem>>, %arg6: memref<2x1x16x16xf32, #tpu.memory_space<vmem>>, %arg7: memref<32x32xbf16, #tpu.memory_space<vmem>>, %arg8: memref<1x32xf32, #tpu.memory_space<vmem>>, %arg9: memref<1x64x32xf32, #tpu.memory_space<vmem>>) attributes {dimension_semantics = [#tpu.dimension_semantics<parallel>], iteration_bounds = array<i64: 2>, scalar_prefetch = 0 : i64, scratch_operands = 0 : i64, tpu.core_type = #tpu.core_type<tc>, window_params = [{transform_indices = @transform_0, window_bounds = array<i64: 1, 64, 32>}, {pipeline_mode = #tpu.pipeline_mode<synchronous>, transform_indices = @transform_1, window_bounds = array<i64: 1, 32>}, {pipeline_mode = #tpu.pipeline_mode<synchronous>, transform_indices = @transform_2, window_bounds = array<i64: 1, 32>}, {pipeline_mode = #tpu.pipeline_mode<synchronous>, transform_indices = @transform_3, window_bounds = array<i64: 32, 96>}, {pipeline_mode = #tpu.pipeline_mode<synchronous>, transform_indices = @transform_4, window_bounds = array<i64: 1, 96>}, {pipeline_mode = #tpu.pipeline_mode<synchronous>, transform_indices = @transform_5, window_bounds = array<i64: 2, 1, 16, 16>}, {pipeline_mode = #tpu.pipeline_mode<synchronous>, transform_indices = @transform_6, window_bounds = array<i64: 32, 32>}, {pipeline_mode = #tpu.pipeline_mode<synchronous>, transform_indices = @transform_7, window_bounds = array<i64: 1, 32>}, {transform_indices = @transform_8, window_bounds = array<i64: 1, 64, 32>}]} {
    %c0 = arith.constant 0 : index
    %c0_0 = arith.constant 0 : index
    %c0_1 = arith.constant 0 : index
    %0 = vector.load %arg1[%c0, %c0_0, %c0_1] : memref<1x64x32xf32, #tpu.memory_space<vmem>>, vector<1x64x32xf32>
    %1 = vector.shape_cast %0 : vector<1x64x32xf32> to vector<64x32xf32>
    %c0_2 = arith.constant 0 : index
    %c0_3 = arith.constant 0 : index
    %2 = vector.load %arg2[%c0_2, %c0_3] : memref<1x32xf32, #tpu.memory_space<vmem>>, vector<1x32xf32>
    %c0_4 = arith.constant 0 : index
    %c0_5 = arith.constant 0 : index
    %3 = vector.load %arg3[%c0_4, %c0_5] : memref<1x32xf32, #tpu.memory_space<vmem>>, vector<1x32xf32>
    %cst = arith.constant dense<0.000000e+00> : vector<64xf32>
    %4 = vector.multi_reduction <add>, %1, %cst [1] : vector<64x32xf32> to vector<64xf32>
    %5 = vector.shape_cast %4 : vector<64xf32> to vector<64x1xf32>
    %cst_6 = arith.constant 3.200000e+01 : f32
    %6 = vector.broadcast %cst_6 : f32 to vector<64x1xf32>
    %7 = arith.divf %5, %6 : vector<64x1xf32>
    %8 = vector.broadcast %7 : vector<64x1xf32> to vector<64x32xf32>
    %9 = arith.subf %1, %8 : vector<64x32xf32>
    %10 = arith.mulf %9, %9 : vector<64x32xf32>
    %cst_7 = arith.constant dense<0.000000e+00> : vector<64xf32>
    %11 = vector.multi_reduction <add>, %10, %cst_7 [1] : vector<64x32xf32> to vector<64xf32>
    %12 = vector.shape_cast %11 : vector<64xf32> to vector<64x1xf32>
    %cst_8 = arith.constant 3.200000e+01 : f32
    %13 = vector.broadcast %cst_8 : f32 to vector<64x1xf32>
    %14 = arith.divf %12, %13 : vector<64x1xf32>
    %15 = vector.broadcast %7 : vector<64x1xf32> to vector<64x32xf32>
    %16 = arith.subf %1, %15 : vector<64x32xf32>
    %cst_9 = arith.constant 9.99999974E-6 : f32
    %17 = vector.broadcast %cst_9 : f32 to vector<64x1xf32>
    %18 = arith.addf %14, %17 : vector<64x1xf32>
    %19 = math.rsqrt %18 : vector<64x1xf32>
    %20 = vector.broadcast %19 : vector<64x1xf32> to vector<64x32xf32>
    %21 = arith.mulf %16, %20 : vector<64x32xf32>
    %22 = vector.broadcast %2 : vector<1x32xf32> to vector<64x32xf32>
    %23 = arith.mulf %21, %22 : vector<64x32xf32>
    %24 = vector.broadcast %3 : vector<1x32xf32> to vector<64x32xf32>
    %25 = arith.addf %23, %24 : vector<64x32xf32>
    %26 = arith.truncf %25 : vector<64x32xf32> to vector<64x32xbf16>
    %c0_10 = arith.constant 0 : index
    %c0_11 = arith.constant 0 : index
    %27 = vector.load %arg4[%c0_10, %c0_11] : memref<32x96xbf16, #tpu.memory_space<vmem>>, vector<32x96xbf16>
    %cst_12 = arith.constant dense<0.000000e+00> : vector<64x96xf32>
    %28 = tpu.matmul %26, %27, %cst_12 {dimension_numbers = #tpu.dot_dimension_numbers<[1], [0], [0], [1], [0, 0, 1, 1], [], []>} : vector<64x32xbf16>, vector<32x96xbf16>, vector<64x96xf32> -> vector<64x96xf32>
    %c0_13 = arith.constant 0 : index
    %c0_14 = arith.constant 0 : index
    %29 = vector.load %arg5[%c0_13, %c0_14] : memref<1x96xf32, #tpu.memory_space<vmem>>, vector<1x96xf32>
    %30 = vector.broadcast %29 : vector<1x96xf32> to vector<64x96xf32>
    %31 = arith.addf %28, %30 : vector<64x96xf32>
    %32 = arith.truncf %31 : vector<64x96xf32> to vector<64x96xbf16>
    %33 = vector.extract_strided_slice %32 {offsets = [0, 0], sizes = [64, 16], strides = [1, 1]} : vector<64x96xbf16> to vector<64x16xbf16>
    %34 = vector.shape_cast %33 : vector<64x16xbf16> to vector<4x16x16xbf16>
    %35 = vector.extract_strided_slice %32 {offsets = [0, 32], sizes = [64, 16], strides = [1, 1]} : vector<64x96xbf16> to vector<64x16xbf16>
    %36 = vector.shape_cast %35 : vector<64x16xbf16> to vector<4x16x16xbf16>
    %37 = vector.extract_strided_slice %32 {offsets = [0, 64], sizes = [64, 16], strides = [1, 1]} : vector<64x96xbf16> to vector<64x16xbf16>
    %38 = vector.shape_cast %37 : vector<64x16xbf16> to vector<4x16x16xbf16>
    %39 = vector.extract_strided_slice %32 {offsets = [0, 16], sizes = [64, 16], strides = [1, 1]} : vector<64x96xbf16> to vector<64x16xbf16>
    %40 = vector.shape_cast %39 : vector<64x16xbf16> to vector<4x16x16xbf16>
    %41 = vector.extract_strided_slice %32 {offsets = [0, 48], sizes = [64, 16], strides = [1, 1]} : vector<64x96xbf16> to vector<64x16xbf16>
    %42 = vector.shape_cast %41 : vector<64x16xbf16> to vector<4x16x16xbf16>
    %43 = vector.extract_strided_slice %32 {offsets = [0, 80], sizes = [64, 16], strides = [1, 1]} : vector<64x96xbf16> to vector<64x16xbf16>
    %44 = vector.shape_cast %43 : vector<64x16xbf16> to vector<4x16x16xbf16>
    %45 = tpu.concatenate %34, %40 in 0 : vector<4x16x16xbf16>, vector<4x16x16xbf16> -> vector<8x16x16xbf16>
    %46 = tpu.concatenate %36, %42 in 0 : vector<4x16x16xbf16>, vector<4x16x16xbf16> -> vector<8x16x16xbf16>
    %47 = tpu.concatenate %38, %44 in 0 : vector<4x16x16xbf16>, vector<4x16x16xbf16> -> vector<8x16x16xbf16>
    "tpu.trace_start"() <{level = 10 : i32, message = "bqd,bkd->bqk"}> : () -> ()
    %cst_15 = arith.constant dense<0.000000e+00> : vector<8x16x16xf32>
    %48 = tpu.matmul %45, %46, %cst_15 {dimension_numbers = #tpu.dot_dimension_numbers<[2], [2], [1], [1], [0, 0, 0, 1, 1, 1], [0], [0]>} : vector<8x16x16xbf16>, vector<8x16x16xbf16>, vector<8x16x16xf32> -> vector<8x16x16xf32>
    "tpu.trace_stop"() : () -> ()
    %49 = vector.shape_cast %48 : vector<8x16x16xf32> to vector<2x4x16x16xf32>
    %c0_16 = arith.constant 0 : index
    %c0_17 = arith.constant 0 : index
    %c0_18 = arith.constant 0 : index
    %c0_19 = arith.constant 0 : index
    %50 = vector.load %arg6[%c0_16, %c0_17, %c0_18, %c0_19] : memref<2x1x16x16xf32, #tpu.memory_space<vmem>>, vector<2x1x16x16xf32>
    %51 = vector.broadcast %50 : vector<2x1x16x16xf32> to vector<2x4x16x16xf32>
    %52 = arith.addf %49, %51 : vector<2x4x16x16xf32>
    %53 = vector.shape_cast %52 : vector<2x4x16x16xf32> to vector<8x16x16xf32>
    %cst_20 = arith.constant dense<0xFF800000> : vector<8x16xf32>
    %54 = vector.multi_reduction <maximumf>, %53, %cst_20 [2] : vector<8x16x16xf32> to vector<8x16xf32>
    %55 = vector.shape_cast %54 : vector<8x16xf32> to vector<8x16x1xf32>
    %56 = vector.broadcast %55 : vector<8x16x1xf32> to vector<8x16x16xf32>
    %57 = arith.subf %53, %56 : vector<8x16x16xf32>
    %58 = math.exp %57 : vector<8x16x16xf32>
    %cst_21 = arith.constant dense<0.000000e+00> : vector<8x16xf32>
    %59 = vector.multi_reduction <add>, %58, %cst_21 [2] : vector<8x16x16xf32> to vector<8x16xf32>
    %60 = vector.shape_cast %59 : vector<8x16xf32> to vector<8x16x1xf32>
    %61 = arith.truncf %58 : vector<8x16x16xf32> to vector<8x16x16xbf16>
    "tpu.trace_start"() <{level = 10 : i32, message = "bqk,bkd->bqd"}> : () -> ()
    %cst_22 = arith.constant dense<0.000000e+00> : vector<8x16x16xf32>
    %62 = tpu.matmul %61, %47, %cst_22 {dimension_numbers = #tpu.dot_dimension_numbers<[2], [1], [1], [2], [0, 0, 0, 1, 1, 2], [0], [0]>} : vector<8x16x16xbf16>, vector<8x16x16xbf16>, vector<8x16x16xf32> -> vector<8x16x16xf32>
    "tpu.trace_stop"() : () -> ()
    %cst_23 = arith.constant 1.000000e+00 : f32
    %63 = vector.broadcast %cst_23 : f32 to vector<8x16x1xf32>
    %64 = arith.divf %63, %60 : vector<8x16x1xf32>
    %65 = vector.broadcast %64 : vector<8x16x1xf32> to vector<8x16x16xf32>
    %66 = arith.mulf %62, %65 : vector<8x16x16xf32>
    %67 = vector.extract_strided_slice %66 {offsets = [0, 0, 0], sizes = [4, 16, 16], strides = [1, 1, 1]} : vector<8x16x16xf32> to vector<4x16x16xf32>
    %68 = vector.shape_cast %67 : vector<4x16x16xf32> to vector<64x16xf32>
    %69 = vector.extract_strided_slice %66 {offsets = [4, 0, 0], sizes = [4, 16, 16], strides = [1, 1, 1]} : vector<8x16x16xf32> to vector<4x16x16xf32>
    %70 = vector.shape_cast %69 : vector<4x16x16xf32> to vector<64x16xf32>
    %71 = tpu.concatenate %68, %70 in 1 : vector<64x16xf32>, vector<64x16xf32> -> vector<64x32xf32>
    %72 = arith.truncf %71 : vector<64x32xf32> to vector<64x32xbf16>
    %c0_24 = arith.constant 0 : index
    %c0_25 = arith.constant 0 : index
    %73 = vector.load %arg7[%c0_24, %c0_25] : memref<32x32xbf16, #tpu.memory_space<vmem>>, vector<32x32xbf16>
    %cst_26 = arith.constant dense<0.000000e+00> : vector<64x32xf32>
    %74 = tpu.matmul %72, %73, %cst_26 {dimension_numbers = #tpu.dot_dimension_numbers<[1], [0], [0], [1], [0, 0, 1, 1], [], []>} : vector<64x32xbf16>, vector<32x32xbf16>, vector<64x32xf32> -> vector<64x32xf32>
    %c0_27 = arith.constant 0 : index
    %c0_28 = arith.constant 0 : index
    %75 = vector.load %arg8[%c0_27, %c0_28] : memref<1x32xf32, #tpu.memory_space<vmem>>, vector<1x32xf32>
    %76 = vector.broadcast %75 : vector<1x32xf32> to vector<64x32xf32>
    %77 = arith.addf %74, %76 : vector<64x32xf32>
    %78 = arith.addf %1, %77 : vector<64x32xf32>
    %c0_29 = arith.constant 0 : index
    %c0_30 = arith.constant 0 : index
    %c0_31 = arith.constant 0 : index
    %79 = vector.load %arg9[%c0_29, %c0_30, %c0_31] : memref<1x64x32xf32, #tpu.memory_space<vmem>>, vector<1x64x32xf32>
    %80 = vector.shape_cast %79 : vector<1x64x32xf32> to vector<64x32xf32>
    %81 = vector.shape_cast %78 : vector<64x32xf32> to vector<1x64x32xf32>
    tpu.vector_store %arg9[%c0_29, %c0_30, %c0_31], %81 {strides = array<i32>} : memref<1x64x32xf32, #tpu.memory_space<vmem>>, vector<1x64x32xf32>,
    return
  }
  func.func @transform_0(%arg0: i32) -> (i32, i32, i32) {
    %c0_i32 = arith.constant 0 : i32
    %c0_i32_0 = arith.constant 0 : i32
    %c0_i32_1 = arith.constant 0 : i32
    return %arg0, %c0_i32, %c0_i32_0 : i32, i32, i32
  }
  func.func @transform_1(%arg0: i32) -> (i32, i32) {
    %c0_i32 = arith.constant 0 : i32
    %c0_i32_0 = arith.constant 0 : i32
    %c0_i32_1 = arith.constant 0 : i32
    return %c0_i32, %c0_i32_0 : i32, i32
  }
  func.func @transform_2(%arg0: i32) -> (i32, i32) {
    %c0_i32 = arith.constant 0 : i32
    %c0_i32_0 = arith.constant 0 : i32
    %c0_i32_1 = arith.constant 0 : i32
    return %c0_i32, %c0_i32_0 : i32, i32
  }
  func.func @transform_3(%arg0: i32) -> (i32, i32) {
    %c0_i32 = arith.constant 0 : i32
    %c0_i32_0 = arith.constant 0 : i32
    %c0_i32_1 = arith.constant 0 : i32
    return %c0_i32, %c0_i32_0 : i32, i32
  }
  func.func @transform_4(%arg0: i32) -> (i32, i32) {
    %c0_i32 = arith.constant 0 : i32
    %c0_i32_0 = arith.constant 0 : i32
    %c0_i32_1 = arith.constant 0 : i32
    return %c0_i32, %c0_i32_0 : i32, i32
  }
  func.func @transform_5(%arg0: i32) -> (i32, i32, i32, i32) {
    %c0_i32 = arith.constant 0 : i32
    %c0_i32_0 = arith.constant 0 : i32
    %c0_i32_1 = arith.constant 0 : i32
    %c0_i32_2 = arith.constant 0 : i32
    %c0_i32_3 = arith.constant 0 : i32
    return %c0_i32, %c0_i32_0, %c0_i32_1, %c0_i32_2 : i32, i32, i32, i32
  }
  func.func @transform_6(%arg0: i32) -> (i32, i32) {
    %c0_i32 = arith.constant 0 : i32
    %c0_i32_0 = arith.constant 0 : i32
    %c0_i32_1 = arith.constant 0 : i32
    return %c0_i32, %c0_i32_0 : i32, i32
  }
  func.func @transform_7(%arg0: i32) -> (i32, i32) {
    %c0_i32 = arith.constant 0 : i32
    %c0_i32_0 = arith.constant 0 : i32
    %c0_i32_1 = arith.constant 0 : i32
    return %c0_i32, %c0_i32_0 : i32, i32
  }
  func.func @transform_8(%arg0: i32) -> (i32, i32, i32) {
    %c0_i32 = arith.constant 0 : i32
    %c0_i32_0 = arith.constant 0 : i32
    %c0_i32_1 = arith.constant 0 : i32
    return %arg0, %c0_i32, %c0_i32_0 : i32, i32, i32
  }
}

module attributes {stable_mosaic.version = 11 : i64} {
  func.func @_ln_mlp_kernel(%arg0: i32, %arg1: memref<64x32xf32, #tpu.memory_space<vmem>>, %arg2: memref<1x32xf32, #tpu.memory_space<vmem>>, %arg3: memref<1x32xf32, #tpu.memory_space<vmem>>, %arg4: memref<32x128xbf16, #tpu.memory_space<vmem>>, %arg5: memref<1x128xf32, #tpu.memory_space<vmem>>, %arg6: memref<128x32xbf16, #tpu.memory_space<vmem>>, %arg7: memref<1x32xf32, #tpu.memory_space<vmem>>, %arg8: memref<64x32xf32, #tpu.memory_space<vmem>>) attributes {dimension_semantics = [#tpu.dimension_semantics<parallel>], iteration_bounds = array<i64: 2>, scalar_prefetch = 0 : i64, scratch_operands = 0 : i64, tpu.core_type = #tpu.core_type<tc>, window_params = [{transform_indices = @transform_0, window_bounds = array<i64: 64, 32>}, {pipeline_mode = #tpu.pipeline_mode<synchronous>, transform_indices = @transform_1, window_bounds = array<i64: 1, 32>}, {pipeline_mode = #tpu.pipeline_mode<synchronous>, transform_indices = @transform_2, window_bounds = array<i64: 1, 32>}, {pipeline_mode = #tpu.pipeline_mode<synchronous>, transform_indices = @transform_3, window_bounds = array<i64: 32, 128>}, {pipeline_mode = #tpu.pipeline_mode<synchronous>, transform_indices = @transform_4, window_bounds = array<i64: 1, 128>}, {pipeline_mode = #tpu.pipeline_mode<synchronous>, transform_indices = @transform_5, window_bounds = array<i64: 128, 32>}, {pipeline_mode = #tpu.pipeline_mode<synchronous>, transform_indices = @transform_6, window_bounds = array<i64: 1, 32>}, {transform_indices = @transform_7, window_bounds = array<i64: 64, 32>}]} {
    %c0 = arith.constant 0 : index
    %c0_0 = arith.constant 0 : index
    %0 = vector.load %arg1[%c0, %c0_0] : memref<64x32xf32, #tpu.memory_space<vmem>>, vector<64x32xf32>
    %c0_1 = arith.constant 0 : index
    %c0_2 = arith.constant 0 : index
    %1 = vector.load %arg2[%c0_1, %c0_2] : memref<1x32xf32, #tpu.memory_space<vmem>>, vector<1x32xf32>
    %c0_3 = arith.constant 0 : index
    %c0_4 = arith.constant 0 : index
    %2 = vector.load %arg3[%c0_3, %c0_4] : memref<1x32xf32, #tpu.memory_space<vmem>>, vector<1x32xf32>
    %cst = arith.constant dense<0.000000e+00> : vector<64xf32>
    %3 = vector.multi_reduction <add>, %0, %cst [1] : vector<64x32xf32> to vector<64xf32>
    %4 = vector.shape_cast %3 : vector<64xf32> to vector<64x1xf32>
    %cst_5 = arith.constant 3.200000e+01 : f32
    %5 = vector.broadcast %cst_5 : f32 to vector<64x1xf32>
    %6 = arith.divf %4, %5 : vector<64x1xf32>
    %7 = vector.broadcast %6 : vector<64x1xf32> to vector<64x32xf32>
    %8 = arith.subf %0, %7 : vector<64x32xf32>
    %9 = arith.mulf %8, %8 : vector<64x32xf32>
    %cst_6 = arith.constant dense<0.000000e+00> : vector<64xf32>
    %10 = vector.multi_reduction <add>, %9, %cst_6 [1] : vector<64x32xf32> to vector<64xf32>
    %11 = vector.shape_cast %10 : vector<64xf32> to vector<64x1xf32>
    %cst_7 = arith.constant 3.200000e+01 : f32
    %12 = vector.broadcast %cst_7 : f32 to vector<64x1xf32>
    %13 = arith.divf %11, %12 : vector<64x1xf32>
    %14 = vector.broadcast %6 : vector<64x1xf32> to vector<64x32xf32>
    %15 = arith.subf %0, %14 : vector<64x32xf32>
    %cst_8 = arith.constant 9.99999974E-6 : f32
    %16 = vector.broadcast %cst_8 : f32 to vector<64x1xf32>
    %17 = arith.addf %13, %16 : vector<64x1xf32>
    %18 = math.rsqrt %17 : vector<64x1xf32>
    %19 = vector.broadcast %18 : vector<64x1xf32> to vector<64x32xf32>
    %20 = arith.mulf %15, %19 : vector<64x32xf32>
    %21 = vector.broadcast %1 : vector<1x32xf32> to vector<64x32xf32>
    %22 = arith.mulf %20, %21 : vector<64x32xf32>
    %23 = vector.broadcast %2 : vector<1x32xf32> to vector<64x32xf32>
    %24 = arith.addf %22, %23 : vector<64x32xf32>
    %25 = arith.truncf %24 : vector<64x32xf32> to vector<64x32xbf16>
    %c0_9 = arith.constant 0 : index
    %c0_10 = arith.constant 0 : index
    %26 = vector.load %arg4[%c0_9, %c0_10] : memref<32x128xbf16, #tpu.memory_space<vmem>>, vector<32x128xbf16>
    %cst_11 = arith.constant dense<0.000000e+00> : vector<64x128xf32>
    %27 = tpu.matmul %25, %26, %cst_11 {dimension_numbers = #tpu.dot_dimension_numbers<[1], [0], [0], [1], [0, 0, 1, 1], [], []>} : vector<64x32xbf16>, vector<32x128xbf16>, vector<64x128xf32> -> vector<64x128xf32>
    %c0_12 = arith.constant 0 : index
    %c0_13 = arith.constant 0 : index
    %28 = vector.load %arg5[%c0_12, %c0_13] : memref<1x128xf32, #tpu.memory_space<vmem>>, vector<1x128xf32>
    %29 = vector.broadcast %28 : vector<1x128xf32> to vector<64x128xf32>
    %30 = arith.addf %27, %29 : vector<64x128xf32>
    %cst_14 = arith.constant 5.000000e-01 : f32
    %31 = vector.broadcast %cst_14 : f32 to vector<64x128xf32>
    %32 = arith.mulf %31, %30 : vector<64x128xf32>
    %cst_15 = arith.constant 0.707106769 : f32
    %33 = vector.broadcast %cst_15 : f32 to vector<64x128xf32>
    %34 = arith.mulf %30, %33 : vector<64x128xf32>
    %35 = math.absf %34 : vector<64x128xf32>
    %cst_16 = arith.constant 0.327591091 : f32
    %36 = vector.broadcast %cst_16 : f32 to vector<64x128xf32>
    %37 = arith.mulf %36, %35 : vector<64x128xf32>
    %cst_17 = arith.constant 1.000000e+00 : f32
    %38 = vector.broadcast %cst_17 : f32 to vector<64x128xf32>
    %39 = arith.addf %38, %37 : vector<64x128xf32>
    %40 = tpu.reciprocal %39 {approx = true} : vector<64x128xf32> -> vector<64x128xf32>
    %cst_18 = arith.constant 1.06140542 : f32
    %41 = vector.broadcast %cst_18 : f32 to vector<64x128xf32>
    %42 = arith.mulf %41, %40 : vector<64x128xf32>
    %cst_19 = arith.constant -1.45315206 : f32
    %43 = vector.broadcast %cst_19 : f32 to vector<64x128xf32>
    %44 = arith.addf %42, %43 : vector<64x128xf32>
    %45 = arith.mulf %44, %40 : vector<64x128xf32>
    %cst_20 = arith.constant 1.42141378 : f32
    %46 = vector.broadcast %cst_20 : f32 to vector<64x128xf32>
    %47 = arith.addf %45, %46 : vector<64x128xf32>
    %48 = arith.mulf %47, %40 : vector<64x128xf32>
    %cst_21 = arith.constant -0.284496725 : f32
    %49 = vector.broadcast %cst_21 : f32 to vector<64x128xf32>
    %50 = arith.addf %48, %49 : vector<64x128xf32>
    %51 = arith.mulf %50, %40 : vector<64x128xf32>
    %cst_22 = arith.constant 0.254829586 : f32
    %52 = vector.broadcast %cst_22 : f32 to vector<64x128xf32>
    %53 = arith.addf %51, %52 : vector<64x128xf32>
    %54 = arith.mulf %53, %40 : vector<64x128xf32>
    %cst_23 = arith.constant 0.000000e+00 : f32
    %55 = vector.broadcast %cst_23 : f32 to vector<64x128xf32>
    %56 = arith.subf %55, %35 : vector<64x128xf32>
    %57 = arith.mulf %56, %35 : vector<64x128xf32>
    %58 = math.exp %57 : vector<64x128xf32>
    %59 = arith.mulf %54, %58 : vector<64x128xf32>
    %cst_24 = arith.constant 1.000000e+00 : f32
    %60 = vector.broadcast %cst_24 : f32 to vector<64x128xf32>
    %61 = arith.subf %60, %59 : vector<64x128xf32>
    %cst_25 = arith.constant 0.000000e+00 : f32
    %62 = vector.broadcast %cst_25 : f32 to vector<64x128xf32>
    %63 = arith.cmpf oge, %34, %62 : vector<64x128xf32>
    %cst_26 = arith.constant 0.000000e+00 : f32
    %64 = vector.broadcast %cst_26 : f32 to vector<64x128xf32>
    %65 = arith.subf %64, %61 : vector<64x128xf32>
    %66 = arith.select %63, %61, %65 : vector<64x128xi1>, vector<64x128xf32>
    %cst_27 = arith.constant 1.000000e+00 : f32
    %67 = vector.broadcast %cst_27 : f32 to vector<64x128xf32>
    %68 = arith.addf %67, %66 : vector<64x128xf32>
    %69 = arith.mulf %32, %68 : vector<64x128xf32>
    %70 = arith.truncf %69 : vector<64x128xf32> to vector<64x128xbf16>
    %c0_28 = arith.constant 0 : index
    %c0_29 = arith.constant 0 : index
    %71 = vector.load %arg6[%c0_28, %c0_29] : memref<128x32xbf16, #tpu.memory_space<vmem>>, vector<128x32xbf16>
    %cst_30 = arith.constant dense<0.000000e+00> : vector<64x32xf32>
    %72 = tpu.matmul %70, %71, %cst_30 {dimension_numbers = #tpu.dot_dimension_numbers<[1], [0], [0], [1], [0, 0, 1, 1], [], []>} : vector<64x128xbf16>, vector<128x32xbf16>, vector<64x32xf32> -> vector<64x32xf32>
    %c0_31 = arith.constant 0 : index
    %c0_32 = arith.constant 0 : index
    %73 = vector.load %arg7[%c0_31, %c0_32] : memref<1x32xf32, #tpu.memory_space<vmem>>, vector<1x32xf32>
    %74 = vector.broadcast %73 : vector<1x32xf32> to vector<64x32xf32>
    %75 = arith.addf %72, %74 : vector<64x32xf32>
    %76 = arith.addf %0, %75 : vector<64x32xf32>
    %c0_33 = arith.constant 0 : index
    %c0_34 = arith.constant 0 : index
    %77 = vector.load %arg8[%c0_33, %c0_34] : memref<64x32xf32, #tpu.memory_space<vmem>>, vector<64x32xf32>
    tpu.vector_store %arg8[%c0_33, %c0_34], %76 {strides = array<i32>} : memref<64x32xf32, #tpu.memory_space<vmem>>, vector<64x32xf32>,
    return
  }
  func.func @transform_0(%arg0: i32) -> (i32, i32) {
    %c0_i32 = arith.constant 0 : i32
    %c0_i32_0 = arith.constant 0 : i32
    return %arg0, %c0_i32 : i32, i32
  }
  func.func @transform_1(%arg0: i32) -> (i32, i32) {
    %c0_i32 = arith.constant 0 : i32
    %c0_i32_0 = arith.constant 0 : i32
    %c0_i32_1 = arith.constant 0 : i32
    return %c0_i32, %c0_i32_0 : i32, i32
  }
  func.func @transform_2(%arg0: i32) -> (i32, i32) {
    %c0_i32 = arith.constant 0 : i32
    %c0_i32_0 = arith.constant 0 : i32
    %c0_i32_1 = arith.constant 0 : i32
    return %c0_i32, %c0_i32_0 : i32, i32
  }
  func.func @transform_3(%arg0: i32) -> (i32, i32) {
    %c0_i32 = arith.constant 0 : i32
    %c0_i32_0 = arith.constant 0 : i32
    %c0_i32_1 = arith.constant 0 : i32
    return %c0_i32, %c0_i32_0 : i32, i32
  }
  func.func @transform_4(%arg0: i32) -> (i32, i32) {
    %c0_i32 = arith.constant 0 : i32
    %c0_i32_0 = arith.constant 0 : i32
    %c0_i32_1 = arith.constant 0 : i32
    return %c0_i32, %c0_i32_0 : i32, i32
  }
  func.func @transform_5(%arg0: i32) -> (i32, i32) {
    %c0_i32 = arith.constant 0 : i32
    %c0_i32_0 = arith.constant 0 : i32
    %c0_i32_1 = arith.constant 0 : i32
    return %c0_i32, %c0_i32_0 : i32, i32
  }
  func.func @transform_6(%arg0: i32) -> (i32, i32) {
    %c0_i32 = arith.constant 0 : i32
    %c0_i32_0 = arith.constant 0 : i32
    %c0_i32_1 = arith.constant 0 : i32
    return %c0_i32, %c0_i32_0 : i32, i32
  }
  func.func @transform_7(%arg0: i32) -> (i32, i32) {
    %c0_i32 = arith.constant 0 : i32
    %c0_i32_0 = arith.constant 0 : i32
    return %arg0, %c0_i32 : i32, i32
  }
}

module attributes {stable_mosaic.version = 11 : i64} {
  func.func @_attn_block_kernel(%arg0: i32, %arg1: memref<1x64x32xf32, #tpu.memory_space<vmem>>, %arg2: memref<1x32xf32, #tpu.memory_space<vmem>>, %arg3: memref<1x32xf32, #tpu.memory_space<vmem>>, %arg4: memref<32x96xbf16, #tpu.memory_space<vmem>>, %arg5: memref<1x96xf32, #tpu.memory_space<vmem>>, %arg6: memref<2x4x16x16xf32, #tpu.memory_space<vmem>>, %arg7: memref<32x32xbf16, #tpu.memory_space<vmem>>, %arg8: memref<1x32xf32, #tpu.memory_space<vmem>>, %arg9: memref<1x64x32xf32, #tpu.memory_space<vmem>>) attributes {dimension_semantics = [#tpu.dimension_semantics<parallel>], iteration_bounds = array<i64: 2>, scalar_prefetch = 0 : i64, scratch_operands = 0 : i64, tpu.core_type = #tpu.core_type<tc>, window_params = [{transform_indices = @transform_0, window_bounds = array<i64: 1, 64, 32>}, {pipeline_mode = #tpu.pipeline_mode<synchronous>, transform_indices = @transform_1, window_bounds = array<i64: 1, 32>}, {pipeline_mode = #tpu.pipeline_mode<synchronous>, transform_indices = @transform_2, window_bounds = array<i64: 1, 32>}, {pipeline_mode = #tpu.pipeline_mode<synchronous>, transform_indices = @transform_3, window_bounds = array<i64: 32, 96>}, {pipeline_mode = #tpu.pipeline_mode<synchronous>, transform_indices = @transform_4, window_bounds = array<i64: 1, 96>}, {pipeline_mode = #tpu.pipeline_mode<synchronous>, transform_indices = @transform_5, window_bounds = array<i64: 2, 4, 16, 16>}, {pipeline_mode = #tpu.pipeline_mode<synchronous>, transform_indices = @transform_6, window_bounds = array<i64: 32, 32>}, {pipeline_mode = #tpu.pipeline_mode<synchronous>, transform_indices = @transform_7, window_bounds = array<i64: 1, 32>}, {transform_indices = @transform_8, window_bounds = array<i64: 1, 64, 32>}]} {
    %c0 = arith.constant 0 : index
    %c0_0 = arith.constant 0 : index
    %c0_1 = arith.constant 0 : index
    %0 = vector.load %arg1[%c0, %c0_0, %c0_1] : memref<1x64x32xf32, #tpu.memory_space<vmem>>, vector<1x64x32xf32>
    %1 = vector.shape_cast %0 : vector<1x64x32xf32> to vector<64x32xf32>
    %c0_2 = arith.constant 0 : index
    %c0_3 = arith.constant 0 : index
    %2 = vector.load %arg2[%c0_2, %c0_3] : memref<1x32xf32, #tpu.memory_space<vmem>>, vector<1x32xf32>
    %c0_4 = arith.constant 0 : index
    %c0_5 = arith.constant 0 : index
    %3 = vector.load %arg3[%c0_4, %c0_5] : memref<1x32xf32, #tpu.memory_space<vmem>>, vector<1x32xf32>
    %cst = arith.constant dense<0.000000e+00> : vector<64xf32>
    %4 = vector.multi_reduction <add>, %1, %cst [1] : vector<64x32xf32> to vector<64xf32>
    %5 = vector.shape_cast %4 : vector<64xf32> to vector<64x1xf32>
    %cst_6 = arith.constant 3.200000e+01 : f32
    %6 = vector.broadcast %cst_6 : f32 to vector<64x1xf32>
    %7 = arith.divf %5, %6 : vector<64x1xf32>
    %8 = vector.broadcast %7 : vector<64x1xf32> to vector<64x32xf32>
    %9 = arith.subf %1, %8 : vector<64x32xf32>
    %10 = arith.mulf %9, %9 : vector<64x32xf32>
    %cst_7 = arith.constant dense<0.000000e+00> : vector<64xf32>
    %11 = vector.multi_reduction <add>, %10, %cst_7 [1] : vector<64x32xf32> to vector<64xf32>
    %12 = vector.shape_cast %11 : vector<64xf32> to vector<64x1xf32>
    %cst_8 = arith.constant 3.200000e+01 : f32
    %13 = vector.broadcast %cst_8 : f32 to vector<64x1xf32>
    %14 = arith.divf %12, %13 : vector<64x1xf32>
    %15 = vector.broadcast %7 : vector<64x1xf32> to vector<64x32xf32>
    %16 = arith.subf %1, %15 : vector<64x32xf32>
    %cst_9 = arith.constant 9.99999974E-6 : f32
    %17 = vector.broadcast %cst_9 : f32 to vector<64x1xf32>
    %18 = arith.addf %14, %17 : vector<64x1xf32>
    %19 = math.rsqrt %18 : vector<64x1xf32>
    %20 = vector.broadcast %19 : vector<64x1xf32> to vector<64x32xf32>
    %21 = arith.mulf %16, %20 : vector<64x32xf32>
    %22 = vector.broadcast %2 : vector<1x32xf32> to vector<64x32xf32>
    %23 = arith.mulf %21, %22 : vector<64x32xf32>
    %24 = vector.broadcast %3 : vector<1x32xf32> to vector<64x32xf32>
    %25 = arith.addf %23, %24 : vector<64x32xf32>
    %26 = arith.truncf %25 : vector<64x32xf32> to vector<64x32xbf16>
    %c0_10 = arith.constant 0 : index
    %c0_11 = arith.constant 0 : index
    %27 = vector.load %arg4[%c0_10, %c0_11] : memref<32x96xbf16, #tpu.memory_space<vmem>>, vector<32x96xbf16>
    %cst_12 = arith.constant dense<0.000000e+00> : vector<64x96xf32>
    %28 = tpu.matmul %26, %27, %cst_12 {dimension_numbers = #tpu.dot_dimension_numbers<[1], [0], [0], [1], [0, 0, 1, 1], [], []>} : vector<64x32xbf16>, vector<32x96xbf16>, vector<64x96xf32> -> vector<64x96xf32>
    %c0_13 = arith.constant 0 : index
    %c0_14 = arith.constant 0 : index
    %29 = vector.load %arg5[%c0_13, %c0_14] : memref<1x96xf32, #tpu.memory_space<vmem>>, vector<1x96xf32>
    %30 = vector.broadcast %29 : vector<1x96xf32> to vector<64x96xf32>
    %31 = arith.addf %28, %30 : vector<64x96xf32>
    %32 = arith.truncf %31 : vector<64x96xf32> to vector<64x96xbf16>
    %33 = vector.extract_strided_slice %32 {offsets = [0, 0], sizes = [64, 16], strides = [1, 1]} : vector<64x96xbf16> to vector<64x16xbf16>
    %34 = vector.shape_cast %33 : vector<64x16xbf16> to vector<4x16x16xbf16>
    %35 = vector.extract_strided_slice %32 {offsets = [0, 32], sizes = [64, 16], strides = [1, 1]} : vector<64x96xbf16> to vector<64x16xbf16>
    %36 = vector.shape_cast %35 : vector<64x16xbf16> to vector<4x16x16xbf16>
    %37 = vector.extract_strided_slice %32 {offsets = [0, 64], sizes = [64, 16], strides = [1, 1]} : vector<64x96xbf16> to vector<64x16xbf16>
    %38 = vector.shape_cast %37 : vector<64x16xbf16> to vector<4x16x16xbf16>
    %39 = vector.extract_strided_slice %32 {offsets = [0, 16], sizes = [64, 16], strides = [1, 1]} : vector<64x96xbf16> to vector<64x16xbf16>
    %40 = vector.shape_cast %39 : vector<64x16xbf16> to vector<4x16x16xbf16>
    %41 = vector.extract_strided_slice %32 {offsets = [0, 48], sizes = [64, 16], strides = [1, 1]} : vector<64x96xbf16> to vector<64x16xbf16>
    %42 = vector.shape_cast %41 : vector<64x16xbf16> to vector<4x16x16xbf16>
    %43 = vector.extract_strided_slice %32 {offsets = [0, 80], sizes = [64, 16], strides = [1, 1]} : vector<64x96xbf16> to vector<64x16xbf16>
    %44 = vector.shape_cast %43 : vector<64x16xbf16> to vector<4x16x16xbf16>
    %45 = tpu.concatenate %34, %40 in 0 : vector<4x16x16xbf16>, vector<4x16x16xbf16> -> vector<8x16x16xbf16>
    %46 = tpu.concatenate %36, %42 in 0 : vector<4x16x16xbf16>, vector<4x16x16xbf16> -> vector<8x16x16xbf16>
    %47 = tpu.concatenate %38, %44 in 0 : vector<4x16x16xbf16>, vector<4x16x16xbf16> -> vector<8x16x16xbf16>
    "tpu.trace_start"() <{level = 10 : i32, message = "bqd,bkd->bqk"}> : () -> ()
    %cst_15 = arith.constant dense<0.000000e+00> : vector<8x16x16xf32>
    %48 = tpu.matmul %45, %46, %cst_15 {dimension_numbers = #tpu.dot_dimension_numbers<[2], [2], [1], [1], [0, 0, 0, 1, 1, 1], [0], [0]>} : vector<8x16x16xbf16>, vector<8x16x16xbf16>, vector<8x16x16xf32> -> vector<8x16x16xf32>
    "tpu.trace_stop"() : () -> ()
    %49 = vector.shape_cast %48 : vector<8x16x16xf32> to vector<2x4x16x16xf32>
    %c0_16 = arith.constant 0 : index
    %c0_17 = arith.constant 0 : index
    %c0_18 = arith.constant 0 : index
    %c0_19 = arith.constant 0 : index
    %50 = vector.load %arg6[%c0_16, %c0_17, %c0_18, %c0_19] : memref<2x4x16x16xf32, #tpu.memory_space<vmem>>, vector<2x4x16x16xf32>
    %51 = arith.addf %49, %50 : vector<2x4x16x16xf32>
    %52 = vector.shape_cast %51 : vector<2x4x16x16xf32> to vector<8x16x16xf32>
    %cst_20 = arith.constant dense<0xFF800000> : vector<8x16xf32>
    %53 = vector.multi_reduction <maximumf>, %52, %cst_20 [2] : vector<8x16x16xf32> to vector<8x16xf32>
    %54 = vector.shape_cast %53 : vector<8x16xf32> to vector<8x16x1xf32>
    %55 = vector.broadcast %54 : vector<8x16x1xf32> to vector<8x16x16xf32>
    %56 = arith.subf %52, %55 : vector<8x16x16xf32>
    %57 = math.exp %56 : vector<8x16x16xf32>
    %cst_21 = arith.constant dense<0.000000e+00> : vector<8x16xf32>
    %58 = vector.multi_reduction <add>, %57, %cst_21 [2] : vector<8x16x16xf32> to vector<8x16xf32>
    %59 = vector.shape_cast %58 : vector<8x16xf32> to vector<8x16x1xf32>
    %60 = arith.truncf %57 : vector<8x16x16xf32> to vector<8x16x16xbf16>
    "tpu.trace_start"() <{level = 10 : i32, message = "bqk,bkd->bqd"}> : () -> ()
    %cst_22 = arith.constant dense<0.000000e+00> : vector<8x16x16xf32>
    %61 = tpu.matmul %60, %47, %cst_22 {dimension_numbers = #tpu.dot_dimension_numbers<[2], [1], [1], [2], [0, 0, 0, 1, 1, 2], [0], [0]>} : vector<8x16x16xbf16>, vector<8x16x16xbf16>, vector<8x16x16xf32> -> vector<8x16x16xf32>
    "tpu.trace_stop"() : () -> ()
    %cst_23 = arith.constant 1.000000e+00 : f32
    %62 = vector.broadcast %cst_23 : f32 to vector<8x16x1xf32>
    %63 = arith.divf %62, %59 : vector<8x16x1xf32>
    %64 = vector.broadcast %63 : vector<8x16x1xf32> to vector<8x16x16xf32>
    %65 = arith.mulf %61, %64 : vector<8x16x16xf32>
    %66 = vector.extract_strided_slice %65 {offsets = [0, 0, 0], sizes = [4, 16, 16], strides = [1, 1, 1]} : vector<8x16x16xf32> to vector<4x16x16xf32>
    %67 = vector.shape_cast %66 : vector<4x16x16xf32> to vector<64x16xf32>
    %68 = vector.extract_strided_slice %65 {offsets = [4, 0, 0], sizes = [4, 16, 16], strides = [1, 1, 1]} : vector<8x16x16xf32> to vector<4x16x16xf32>
    %69 = vector.shape_cast %68 : vector<4x16x16xf32> to vector<64x16xf32>
    %70 = tpu.concatenate %67, %69 in 1 : vector<64x16xf32>, vector<64x16xf32> -> vector<64x32xf32>
    %71 = arith.truncf %70 : vector<64x32xf32> to vector<64x32xbf16>
    %c0_24 = arith.constant 0 : index
    %c0_25 = arith.constant 0 : index
    %72 = vector.load %arg7[%c0_24, %c0_25] : memref<32x32xbf16, #tpu.memory_space<vmem>>, vector<32x32xbf16>
    %cst_26 = arith.constant dense<0.000000e+00> : vector<64x32xf32>
    %73 = tpu.matmul %71, %72, %cst_26 {dimension_numbers = #tpu.dot_dimension_numbers<[1], [0], [0], [1], [0, 0, 1, 1], [], []>} : vector<64x32xbf16>, vector<32x32xbf16>, vector<64x32xf32> -> vector<64x32xf32>
    %c0_27 = arith.constant 0 : index
    %c0_28 = arith.constant 0 : index
    %74 = vector.load %arg8[%c0_27, %c0_28] : memref<1x32xf32, #tpu.memory_space<vmem>>, vector<1x32xf32>
    %75 = vector.broadcast %74 : vector<1x32xf32> to vector<64x32xf32>
    %76 = arith.addf %73, %75 : vector<64x32xf32>
    %77 = arith.addf %1, %76 : vector<64x32xf32>
    %c0_29 = arith.constant 0 : index
    %c0_30 = arith.constant 0 : index
    %c0_31 = arith.constant 0 : index
    %78 = vector.load %arg9[%c0_29, %c0_30, %c0_31] : memref<1x64x32xf32, #tpu.memory_space<vmem>>, vector<1x64x32xf32>
    %79 = vector.shape_cast %78 : vector<1x64x32xf32> to vector<64x32xf32>
    %80 = vector.shape_cast %77 : vector<64x32xf32> to vector<1x64x32xf32>
    tpu.vector_store %arg9[%c0_29, %c0_30, %c0_31], %80 {strides = array<i32>} : memref<1x64x32xf32, #tpu.memory_space<vmem>>, vector<1x64x32xf32>,
    return
  }
  func.func @transform_0(%arg0: i32) -> (i32, i32, i32) {
    %c0_i32 = arith.constant 0 : i32
    %c0_i32_0 = arith.constant 0 : i32
    %c0_i32_1 = arith.constant 0 : i32
    return %arg0, %c0_i32, %c0_i32_0 : i32, i32, i32
  }
  func.func @transform_1(%arg0: i32) -> (i32, i32) {
    %c0_i32 = arith.constant 0 : i32
    %c0_i32_0 = arith.constant 0 : i32
    %c0_i32_1 = arith.constant 0 : i32
    return %c0_i32, %c0_i32_0 : i32, i32
  }
  func.func @transform_2(%arg0: i32) -> (i32, i32) {
    %c0_i32 = arith.constant 0 : i32
    %c0_i32_0 = arith.constant 0 : i32
    %c0_i32_1 = arith.constant 0 : i32
    return %c0_i32, %c0_i32_0 : i32, i32
  }
  func.func @transform_3(%arg0: i32) -> (i32, i32) {
    %c0_i32 = arith.constant 0 : i32
    %c0_i32_0 = arith.constant 0 : i32
    %c0_i32_1 = arith.constant 0 : i32
    return %c0_i32, %c0_i32_0 : i32, i32
  }
  func.func @transform_4(%arg0: i32) -> (i32, i32) {
    %c0_i32 = arith.constant 0 : i32
    %c0_i32_0 = arith.constant 0 : i32
    %c0_i32_1 = arith.constant 0 : i32
    return %c0_i32, %c0_i32_0 : i32, i32
  }
  func.func @transform_5(%arg0: i32) -> (i32, i32, i32, i32) {
    %c0_i32 = arith.constant 0 : i32
    %c0_i32_0 = arith.constant 0 : i32
    %c0_i32_1 = arith.constant 0 : i32
    %c0_i32_2 = arith.constant 0 : i32
    %c0_i32_3 = arith.constant 0 : i32
    return %c0_i32, %c0_i32_0, %c0_i32_1, %c0_i32_2 : i32, i32, i32, i32
  }
  func.func @transform_6(%arg0: i32) -> (i32, i32) {
    %c0_i32 = arith.constant 0 : i32
    %c0_i32_0 = arith.constant 0 : i32
    %c0_i32_1 = arith.constant 0 : i32
    return %c0_i32, %c0_i32_0 : i32, i32
  }
  func.func @transform_7(%arg0: i32) -> (i32, i32) {
    %c0_i32 = arith.constant 0 : i32
    %c0_i32_0 = arith.constant 0 : i32
    %c0_i32_1 = arith.constant 0 : i32
    return %c0_i32, %c0_i32_0 : i32, i32
  }
  func.func @transform_8(%arg0: i32) -> (i32, i32, i32) {
    %c0_i32 = arith.constant 0 : i32
    %c0_i32_0 = arith.constant 0 : i32
    %c0_i32_1 = arith.constant 0 : i32
    return %arg0, %c0_i32, %c0_i32_0 : i32, i32, i32
  }
}

module attributes {stable_mosaic.version = 11 : i64} {
  func.func @_ln_matmul_kernel(%arg0: i32, %arg1: memref<16x128xf32, #tpu.memory_space<vmem>>, %arg2: memref<1x128xf32, #tpu.memory_space<vmem>>, %arg3: memref<1x128xf32, #tpu.memory_space<vmem>>, %arg4: memref<128x64xbf16, #tpu.memory_space<vmem>>, %arg5: memref<1x64xf32, #tpu.memory_space<vmem>>, %arg6: memref<16x64xf32, #tpu.memory_space<vmem>>) attributes {dimension_semantics = [#tpu.dimension_semantics<parallel>], iteration_bounds = array<i64: 2>, scalar_prefetch = 0 : i64, scratch_operands = 0 : i64, tpu.core_type = #tpu.core_type<tc>, window_params = [{transform_indices = @transform_0, window_bounds = array<i64: 16, 128>}, {pipeline_mode = #tpu.pipeline_mode<synchronous>, transform_indices = @transform_1, window_bounds = array<i64: 1, 128>}, {pipeline_mode = #tpu.pipeline_mode<synchronous>, transform_indices = @transform_2, window_bounds = array<i64: 1, 128>}, {pipeline_mode = #tpu.pipeline_mode<synchronous>, transform_indices = @transform_3, window_bounds = array<i64: 128, 64>}, {pipeline_mode = #tpu.pipeline_mode<synchronous>, transform_indices = @transform_4, window_bounds = array<i64: 1, 64>}, {transform_indices = @transform_5, window_bounds = array<i64: 16, 64>}]} {
    %c0 = arith.constant 0 : index
    %c0_0 = arith.constant 0 : index
    %0 = vector.load %arg1[%c0, %c0_0] : memref<16x128xf32, #tpu.memory_space<vmem>>, vector<16x128xf32>
    %c0_1 = arith.constant 0 : index
    %c0_2 = arith.constant 0 : index
    %1 = vector.load %arg2[%c0_1, %c0_2] : memref<1x128xf32, #tpu.memory_space<vmem>>, vector<1x128xf32>
    %c0_3 = arith.constant 0 : index
    %c0_4 = arith.constant 0 : index
    %2 = vector.load %arg3[%c0_3, %c0_4] : memref<1x128xf32, #tpu.memory_space<vmem>>, vector<1x128xf32>
    %cst = arith.constant dense<0.000000e+00> : vector<16xf32>
    %3 = vector.multi_reduction <add>, %0, %cst [1] : vector<16x128xf32> to vector<16xf32>
    %4 = vector.shape_cast %3 : vector<16xf32> to vector<16x1xf32>
    %cst_5 = arith.constant 1.280000e+02 : f32
    %5 = vector.broadcast %cst_5 : f32 to vector<16x1xf32>
    %6 = arith.divf %4, %5 : vector<16x1xf32>
    %7 = vector.broadcast %6 : vector<16x1xf32> to vector<16x128xf32>
    %8 = arith.subf %0, %7 : vector<16x128xf32>
    %9 = arith.mulf %8, %8 : vector<16x128xf32>
    %cst_6 = arith.constant dense<0.000000e+00> : vector<16xf32>
    %10 = vector.multi_reduction <add>, %9, %cst_6 [1] : vector<16x128xf32> to vector<16xf32>
    %11 = vector.shape_cast %10 : vector<16xf32> to vector<16x1xf32>
    %cst_7 = arith.constant 1.280000e+02 : f32
    %12 = vector.broadcast %cst_7 : f32 to vector<16x1xf32>
    %13 = arith.divf %11, %12 : vector<16x1xf32>
    %14 = vector.broadcast %6 : vector<16x1xf32> to vector<16x128xf32>
    %15 = arith.subf %0, %14 : vector<16x128xf32>
    %cst_8 = arith.constant 9.99999974E-6 : f32
    %16 = vector.broadcast %cst_8 : f32 to vector<16x1xf32>
    %17 = arith.addf %13, %16 : vector<16x1xf32>
    %18 = math.rsqrt %17 : vector<16x1xf32>
    %19 = vector.broadcast %18 : vector<16x1xf32> to vector<16x128xf32>
    %20 = arith.mulf %15, %19 : vector<16x128xf32>
    %21 = vector.broadcast %1 : vector<1x128xf32> to vector<16x128xf32>
    %22 = arith.mulf %20, %21 : vector<16x128xf32>
    %23 = vector.broadcast %2 : vector<1x128xf32> to vector<16x128xf32>
    %24 = arith.addf %22, %23 : vector<16x128xf32>
    %25 = arith.truncf %24 : vector<16x128xf32> to vector<16x128xbf16>
    %c0_9 = arith.constant 0 : index
    %c0_10 = arith.constant 0 : index
    %26 = vector.load %arg4[%c0_9, %c0_10] : memref<128x64xbf16, #tpu.memory_space<vmem>>, vector<128x64xbf16>
    %cst_11 = arith.constant dense<0.000000e+00> : vector<16x64xf32>
    %27 = tpu.matmul %25, %26, %cst_11 {dimension_numbers = #tpu.dot_dimension_numbers<[1], [0], [0], [1], [0, 0, 1, 1], [], []>} : vector<16x128xbf16>, vector<128x64xbf16>, vector<16x64xf32> -> vector<16x64xf32>
    %c0_12 = arith.constant 0 : index
    %c0_13 = arith.constant 0 : index
    %28 = vector.load %arg5[%c0_12, %c0_13] : memref<1x64xf32, #tpu.memory_space<vmem>>, vector<1x64xf32>
    %29 = vector.broadcast %28 : vector<1x64xf32> to vector<16x64xf32>
    %30 = arith.addf %27, %29 : vector<16x64xf32>
    %c0_14 = arith.constant 0 : index
    %c0_15 = arith.constant 0 : index
    %31 = vector.load %arg6[%c0_14, %c0_15] : memref<16x64xf32, #tpu.memory_space<vmem>>, vector<16x64xf32>
    tpu.vector_store %arg6[%c0_14, %c0_15], %30 {strides = array<i32>} : memref<16x64xf32, #tpu.memory_space<vmem>>, vector<16x64xf32>,
    return
  }
  func.func @transform_0(%arg0: i32) -> (i32, i32) {
    %c0_i32 = arith.constant 0 : i32
    %c0_i32_0 = arith.constant 0 : i32
    return %arg0, %c0_i32 : i32, i32
  }
  func.func @transform_1(%arg0: i32) -> (i32, i32) {
    %c0_i32 = arith.constant 0 : i32
    %c0_i32_0 = arith.constant 0 : i32
    %c0_i32_1 = arith.constant 0 : i32
    return %c0_i32, %c0_i32_0 : i32, i32
  }
  func.func @transform_2(%arg0: i32) -> (i32, i32) {
    %c0_i32 = arith.constant 0 : i32
    %c0_i32_0 = arith.constant 0 : i32
    %c0_i32_1 = arith.constant 0 : i32
    return %c0_i32, %c0_i32_0 : i32, i32
  }
  func.func @transform_3(%arg0: i32) -> (i32, i32) {
    %c0_i32 = arith.constant 0 : i32
    %c0_i32_0 = arith.constant 0 : i32
    %c0_i32_1 = arith.constant 0 : i32
    return %c0_i32, %c0_i32_0 : i32, i32
  }
  func.func @transform_4(%arg0: i32) -> (i32, i32) {
    %c0_i32 = arith.constant 0 : i32
    %c0_i32_0 = arith.constant 0 : i32
    %c0_i32_1 = arith.constant 0 : i32
    return %c0_i32, %c0_i32_0 : i32, i32
  }
  func.func @transform_5(%arg0: i32) -> (i32, i32) {
    %c0_i32 = arith.constant 0 : i32
    %c0_i32_0 = arith.constant 0 : i32
    return %arg0, %c0_i32 : i32, i32
  }
}

module attributes {stable_mosaic.version = 11 : i64} {
  func.func @_attn_block_kernel(%arg0: i32, %arg1: memref<1x16x64xf32, #tpu.memory_space<vmem>>, %arg2: memref<1x64xf32, #tpu.memory_space<vmem>>, %arg3: memref<1x64xf32, #tpu.memory_space<vmem>>, %arg4: memref<64x192xbf16, #tpu.memory_space<vmem>>, %arg5: memref<1x192xf32, #tpu.memory_space<vmem>>, %arg6: memref<4x1x16x16xf32, #tpu.memory_space<vmem>>, %arg7: memref<64x64xbf16, #tpu.memory_space<vmem>>, %arg8: memref<1x64xf32, #tpu.memory_space<vmem>>, %arg9: memref<1x16x64xf32, #tpu.memory_space<vmem>>) attributes {dimension_semantics = [#tpu.dimension_semantics<parallel>], iteration_bounds = array<i64: 2>, scalar_prefetch = 0 : i64, scratch_operands = 0 : i64, tpu.core_type = #tpu.core_type<tc>, window_params = [{transform_indices = @transform_0, window_bounds = array<i64: 1, 16, 64>}, {pipeline_mode = #tpu.pipeline_mode<synchronous>, transform_indices = @transform_1, window_bounds = array<i64: 1, 64>}, {pipeline_mode = #tpu.pipeline_mode<synchronous>, transform_indices = @transform_2, window_bounds = array<i64: 1, 64>}, {pipeline_mode = #tpu.pipeline_mode<synchronous>, transform_indices = @transform_3, window_bounds = array<i64: 64, 192>}, {pipeline_mode = #tpu.pipeline_mode<synchronous>, transform_indices = @transform_4, window_bounds = array<i64: 1, 192>}, {pipeline_mode = #tpu.pipeline_mode<synchronous>, transform_indices = @transform_5, window_bounds = array<i64: 4, 1, 16, 16>}, {pipeline_mode = #tpu.pipeline_mode<synchronous>, transform_indices = @transform_6, window_bounds = array<i64: 64, 64>}, {pipeline_mode = #tpu.pipeline_mode<synchronous>, transform_indices = @transform_7, window_bounds = array<i64: 1, 64>}, {transform_indices = @transform_8, window_bounds = array<i64: 1, 16, 64>}]} {
    %c0 = arith.constant 0 : index
    %c0_0 = arith.constant 0 : index
    %c0_1 = arith.constant 0 : index
    %0 = vector.load %arg1[%c0, %c0_0, %c0_1] : memref<1x16x64xf32, #tpu.memory_space<vmem>>, vector<1x16x64xf32>
    %1 = vector.shape_cast %0 : vector<1x16x64xf32> to vector<16x64xf32>
    %c0_2 = arith.constant 0 : index
    %c0_3 = arith.constant 0 : index
    %2 = vector.load %arg2[%c0_2, %c0_3] : memref<1x64xf32, #tpu.memory_space<vmem>>, vector<1x64xf32>
    %c0_4 = arith.constant 0 : index
    %c0_5 = arith.constant 0 : index
    %3 = vector.load %arg3[%c0_4, %c0_5] : memref<1x64xf32, #tpu.memory_space<vmem>>, vector<1x64xf32>
    %cst = arith.constant dense<0.000000e+00> : vector<16xf32>
    %4 = vector.multi_reduction <add>, %1, %cst [1] : vector<16x64xf32> to vector<16xf32>
    %5 = vector.shape_cast %4 : vector<16xf32> to vector<16x1xf32>
    %cst_6 = arith.constant 6.400000e+01 : f32
    %6 = vector.broadcast %cst_6 : f32 to vector<16x1xf32>
    %7 = arith.divf %5, %6 : vector<16x1xf32>
    %8 = vector.broadcast %7 : vector<16x1xf32> to vector<16x64xf32>
    %9 = arith.subf %1, %8 : vector<16x64xf32>
    %10 = arith.mulf %9, %9 : vector<16x64xf32>
    %cst_7 = arith.constant dense<0.000000e+00> : vector<16xf32>
    %11 = vector.multi_reduction <add>, %10, %cst_7 [1] : vector<16x64xf32> to vector<16xf32>
    %12 = vector.shape_cast %11 : vector<16xf32> to vector<16x1xf32>
    %cst_8 = arith.constant 6.400000e+01 : f32
    %13 = vector.broadcast %cst_8 : f32 to vector<16x1xf32>
    %14 = arith.divf %12, %13 : vector<16x1xf32>
    %15 = vector.broadcast %7 : vector<16x1xf32> to vector<16x64xf32>
    %16 = arith.subf %1, %15 : vector<16x64xf32>
    %cst_9 = arith.constant 9.99999974E-6 : f32
    %17 = vector.broadcast %cst_9 : f32 to vector<16x1xf32>
    %18 = arith.addf %14, %17 : vector<16x1xf32>
    %19 = math.rsqrt %18 : vector<16x1xf32>
    %20 = vector.broadcast %19 : vector<16x1xf32> to vector<16x64xf32>
    %21 = arith.mulf %16, %20 : vector<16x64xf32>
    %22 = vector.broadcast %2 : vector<1x64xf32> to vector<16x64xf32>
    %23 = arith.mulf %21, %22 : vector<16x64xf32>
    %24 = vector.broadcast %3 : vector<1x64xf32> to vector<16x64xf32>
    %25 = arith.addf %23, %24 : vector<16x64xf32>
    %26 = arith.truncf %25 : vector<16x64xf32> to vector<16x64xbf16>
    %c0_10 = arith.constant 0 : index
    %c0_11 = arith.constant 0 : index
    %27 = vector.load %arg4[%c0_10, %c0_11] : memref<64x192xbf16, #tpu.memory_space<vmem>>, vector<64x192xbf16>
    %cst_12 = arith.constant dense<0.000000e+00> : vector<16x192xf32>
    %28 = tpu.matmul %26, %27, %cst_12 {dimension_numbers = #tpu.dot_dimension_numbers<[1], [0], [0], [1], [0, 0, 1, 1], [], []>} : vector<16x64xbf16>, vector<64x192xbf16>, vector<16x192xf32> -> vector<16x192xf32>
    %c0_13 = arith.constant 0 : index
    %c0_14 = arith.constant 0 : index
    %29 = vector.load %arg5[%c0_13, %c0_14] : memref<1x192xf32, #tpu.memory_space<vmem>>, vector<1x192xf32>
    %30 = vector.broadcast %29 : vector<1x192xf32> to vector<16x192xf32>
    %31 = arith.addf %28, %30 : vector<16x192xf32>
    %32 = arith.truncf %31 : vector<16x192xf32> to vector<16x192xbf16>
    %33 = vector.extract_strided_slice %32 {offsets = [0, 0], sizes = [16, 16], strides = [1, 1]} : vector<16x192xbf16> to vector<16x16xbf16>
    %34 = vector.shape_cast %33 : vector<16x16xbf16> to vector<1x16x16xbf16>
    %35 = vector.extract_strided_slice %32 {offsets = [0, 64], sizes = [16, 16], strides = [1, 1]} : vector<16x192xbf16> to vector<16x16xbf16>
    %36 = vector.shape_cast %35 : vector<16x16xbf16> to vector<1x16x16xbf16>
    %37 = vector.extract_strided_slice %32 {offsets = [0, 128], sizes = [16, 16], strides = [1, 1]} : vector<16x192xbf16> to vector<16x16xbf16>
    %38 = vector.shape_cast %37 : vector<16x16xbf16> to vector<1x16x16xbf16>
    %39 = vector.extract_strided_slice %32 {offsets = [0, 16], sizes = [16, 16], strides = [1, 1]} : vector<16x192xbf16> to vector<16x16xbf16>
    %40 = vector.shape_cast %39 : vector<16x16xbf16> to vector<1x16x16xbf16>
    %41 = vector.extract_strided_slice %32 {offsets = [0, 80], sizes = [16, 16], strides = [1, 1]} : vector<16x192xbf16> to vector<16x16xbf16>
    %42 = vector.shape_cast %41 : vector<16x16xbf16> to vector<1x16x16xbf16>
    %43 = vector.extract_strided_slice %32 {offsets = [0, 144], sizes = [16, 16], strides = [1, 1]} : vector<16x192xbf16> to vector<16x16xbf16>
    %44 = vector.shape_cast %43 : vector<16x16xbf16> to vector<1x16x16xbf16>
    %45 = vector.extract_strided_slice %32 {offsets = [0, 32], sizes = [16, 16], strides = [1, 1]} : vector<16x192xbf16> to vector<16x16xbf16>
    %46 = vector.shape_cast %45 : vector<16x16xbf16> to vector<1x16x16xbf16>
    %47 = vector.extract_strided_slice %32 {offsets = [0, 96], sizes = [16, 16], strides = [1, 1]} : vector<16x192xbf16> to vector<16x16xbf16>
    %48 = vector.shape_cast %47 : vector<16x16xbf16> to vector<1x16x16xbf16>
    %49 = vector.extract_strided_slice %32 {offsets = [0, 160], sizes = [16, 16], strides = [1, 1]} : vector<16x192xbf16> to vector<16x16xbf16>
    %50 = vector.shape_cast %49 : vector<16x16xbf16> to vector<1x16x16xbf16>
    %51 = vector.extract_strided_slice %32 {offsets = [0, 48], sizes = [16, 16], strides = [1, 1]} : vector<16x192xbf16> to vector<16x16xbf16>
    %52 = vector.shape_cast %51 : vector<16x16xbf16> to vector<1x16x16xbf16>
    %53 = vector.extract_strided_slice %32 {offsets = [0, 112], sizes = [16, 16], strides = [1, 1]} : vector<16x192xbf16> to vector<16x16xbf16>
    %54 = vector.shape_cast %53 : vector<16x16xbf16> to vector<1x16x16xbf16>
    %55 = vector.extract_strided_slice %32 {offsets = [0, 176], sizes = [16, 16], strides = [1, 1]} : vector<16x192xbf16> to vector<16x16xbf16>
    %56 = vector.shape_cast %55 : vector<16x16xbf16> to vector<1x16x16xbf16>
    %57 = tpu.concatenate %34, %40, %46, %52 in 0 : vector<1x16x16xbf16>, vector<1x16x16xbf16>, vector<1x16x16xbf16>, vector<1x16x16xbf16> -> vector<4x16x16xbf16>
    %58 = tpu.concatenate %36, %42, %48, %54 in 0 : vector<1x16x16xbf16>, vector<1x16x16xbf16>, vector<1x16x16xbf16>, vector<1x16x16xbf16> -> vector<4x16x16xbf16>
    %59 = tpu.concatenate %38, %44, %50, %56 in 0 : vector<1x16x16xbf16>, vector<1x16x16xbf16>, vector<1x16x16xbf16>, vector<1x16x16xbf16> -> vector<4x16x16xbf16>
    "tpu.trace_start"() <{level = 10 : i32, message = "bqd,bkd->bqk"}> : () -> ()
    %cst_15 = arith.constant dense<0.000000e+00> : vector<4x16x16xf32>
    %60 = tpu.matmul %57, %58, %cst_15 {dimension_numbers = #tpu.dot_dimension_numbers<[2], [2], [1], [1], [0, 0, 0, 1, 1, 1], [0], [0]>} : vector<4x16x16xbf16>, vector<4x16x16xbf16>, vector<4x16x16xf32> -> vector<4x16x16xf32>
    "tpu.trace_stop"() : () -> ()
    %61 = vector.shape_cast %60 : vector<4x16x16xf32> to vector<4x1x16x16xf32>
    %c0_16 = arith.constant 0 : index
    %c0_17 = arith.constant 0 : index
    %c0_18 = arith.constant 0 : index
    %c0_19 = arith.constant 0 : index
    %62 = vector.load %arg6[%c0_16, %c0_17, %c0_18, %c0_19] : memref<4x1x16x16xf32, #tpu.memory_space<vmem>>, vector<4x1x16x16xf32>
    %63 = arith.addf %61, %62 : vector<4x1x16x16xf32>
    %64 = vector.shape_cast %63 : vector<4x1x16x16xf32> to vector<4x16x16xf32>
    %cst_20 = arith.constant dense<0xFF800000> : vector<4x16xf32>
    %65 = vector.multi_reduction <maximumf>, %64, %cst_20 [2] : vector<4x16x16xf32> to vector<4x16xf32>
    %66 = vector.shape_cast %65 : vector<4x16xf32> to vector<4x16x1xf32>
    %67 = vector.broadcast %66 : vector<4x16x1xf32> to vector<4x16x16xf32>
    %68 = arith.subf %64, %67 : vector<4x16x16xf32>
    %69 = math.exp %68 : vector<4x16x16xf32>
    %cst_21 = arith.constant dense<0.000000e+00> : vector<4x16xf32>
    %70 = vector.multi_reduction <add>, %69, %cst_21 [2] : vector<4x16x16xf32> to vector<4x16xf32>
    %71 = vector.shape_cast %70 : vector<4x16xf32> to vector<4x16x1xf32>
    %72 = arith.truncf %69 : vector<4x16x16xf32> to vector<4x16x16xbf16>
    "tpu.trace_start"() <{level = 10 : i32, message = "bqk,bkd->bqd"}> : () -> ()
    %cst_22 = arith.constant dense<0.000000e+00> : vector<4x16x16xf32>
    %73 = tpu.matmul %72, %59, %cst_22 {dimension_numbers = #tpu.dot_dimension_numbers<[2], [1], [1], [2], [0, 0, 0, 1, 1, 2], [0], [0]>} : vector<4x16x16xbf16>, vector<4x16x16xbf16>, vector<4x16x16xf32> -> vector<4x16x16xf32>
    "tpu.trace_stop"() : () -> ()
    %cst_23 = arith.constant 1.000000e+00 : f32
    %74 = vector.broadcast %cst_23 : f32 to vector<4x16x1xf32>
    %75 = arith.divf %74, %71 : vector<4x16x1xf32>
    %76 = vector.broadcast %75 : vector<4x16x1xf32> to vector<4x16x16xf32>
    %77 = arith.mulf %73, %76 : vector<4x16x16xf32>
    %78 = vector.extract_strided_slice %77 {offsets = [0, 0, 0], sizes = [1, 16, 16], strides = [1, 1, 1]} : vector<4x16x16xf32> to vector<1x16x16xf32>
    %79 = vector.shape_cast %78 : vector<1x16x16xf32> to vector<16x16xf32>
    %80 = vector.extract_strided_slice %77 {offsets = [1, 0, 0], sizes = [1, 16, 16], strides = [1, 1, 1]} : vector<4x16x16xf32> to vector<1x16x16xf32>
    %81 = vector.shape_cast %80 : vector<1x16x16xf32> to vector<16x16xf32>
    %82 = vector.extract_strided_slice %77 {offsets = [2, 0, 0], sizes = [1, 16, 16], strides = [1, 1, 1]} : vector<4x16x16xf32> to vector<1x16x16xf32>
    %83 = vector.shape_cast %82 : vector<1x16x16xf32> to vector<16x16xf32>
    %84 = vector.extract_strided_slice %77 {offsets = [3, 0, 0], sizes = [1, 16, 16], strides = [1, 1, 1]} : vector<4x16x16xf32> to vector<1x16x16xf32>
    %85 = vector.shape_cast %84 : vector<1x16x16xf32> to vector<16x16xf32>
    %86 = tpu.concatenate %79, %81, %83, %85 in 1 : vector<16x16xf32>, vector<16x16xf32>, vector<16x16xf32>, vector<16x16xf32> -> vector<16x64xf32>
    %87 = arith.truncf %86 : vector<16x64xf32> to vector<16x64xbf16>
    %c0_24 = arith.constant 0 : index
    %c0_25 = arith.constant 0 : index
    %88 = vector.load %arg7[%c0_24, %c0_25] : memref<64x64xbf16, #tpu.memory_space<vmem>>, vector<64x64xbf16>
    %cst_26 = arith.constant dense<0.000000e+00> : vector<16x64xf32>
    %89 = tpu.matmul %87, %88, %cst_26 {dimension_numbers = #tpu.dot_dimension_numbers<[1], [0], [0], [1], [0, 0, 1, 1], [], []>} : vector<16x64xbf16>, vector<64x64xbf16>, vector<16x64xf32> -> vector<16x64xf32>
    %c0_27 = arith.constant 0 : index
    %c0_28 = arith.constant 0 : index
    %90 = vector.load %arg8[%c0_27, %c0_28] : memref<1x64xf32, #tpu.memory_space<vmem>>, vector<1x64xf32>
    %91 = vector.broadcast %90 : vector<1x64xf32> to vector<16x64xf32>
    %92 = arith.addf %89, %91 : vector<16x64xf32>
    %93 = arith.addf %1, %92 : vector<16x64xf32>
    %c0_29 = arith.constant 0 : index
    %c0_30 = arith.constant 0 : index
    %c0_31 = arith.constant 0 : index
    %94 = vector.load %arg9[%c0_29, %c0_30, %c0_31] : memref<1x16x64xf32, #tpu.memory_space<vmem>>, vector<1x16x64xf32>
    %95 = vector.shape_cast %94 : vector<1x16x64xf32> to vector<16x64xf32>
    %96 = vector.shape_cast %93 : vector<16x64xf32> to vector<1x16x64xf32>
    tpu.vector_store %arg9[%c0_29, %c0_30, %c0_31], %96 {strides = array<i32>} : memref<1x16x64xf32, #tpu.memory_space<vmem>>, vector<1x16x64xf32>,
    return
  }
  func.func @transform_0(%arg0: i32) -> (i32, i32, i32) {
    %c0_i32 = arith.constant 0 : i32
    %c0_i32_0 = arith.constant 0 : i32
    %c0_i32_1 = arith.constant 0 : i32
    return %arg0, %c0_i32, %c0_i32_0 : i32, i32, i32
  }
  func.func @transform_1(%arg0: i32) -> (i32, i32) {
    %c0_i32 = arith.constant 0 : i32
    %c0_i32_0 = arith.constant 0 : i32
    %c0_i32_1 = arith.constant 0 : i32
    return %c0_i32, %c0_i32_0 : i32, i32
  }
  func.func @transform_2(%arg0: i32) -> (i32, i32) {
    %c0_i32 = arith.constant 0 : i32
    %c0_i32_0 = arith.constant 0 : i32
    %c0_i32_1 = arith.constant 0 : i32
    return %c0_i32, %c0_i32_0 : i32, i32
  }
  func.func @transform_3(%arg0: i32) -> (i32, i32) {
    %c0_i32 = arith.constant 0 : i32
    %c0_i32_0 = arith.constant 0 : i32
    %c0_i32_1 = arith.constant 0 : i32
    return %c0_i32, %c0_i32_0 : i32, i32
  }
  func.func @transform_4(%arg0: i32) -> (i32, i32) {
    %c0_i32 = arith.constant 0 : i32
    %c0_i32_0 = arith.constant 0 : i32
    %c0_i32_1 = arith.constant 0 : i32
    return %c0_i32, %c0_i32_0 : i32, i32
  }
  func.func @transform_5(%arg0: i32) -> (i32, i32, i32, i32) {
    %c0_i32 = arith.constant 0 : i32
    %c0_i32_0 = arith.constant 0 : i32
    %c0_i32_1 = arith.constant 0 : i32
    %c0_i32_2 = arith.constant 0 : i32
    %c0_i32_3 = arith.constant 0 : i32
    return %c0_i32, %c0_i32_0, %c0_i32_1, %c0_i32_2 : i32, i32, i32, i32
  }
  func.func @transform_6(%arg0: i32) -> (i32, i32) {
    %c0_i32 = arith.constant 0 : i32
    %c0_i32_0 = arith.constant 0 : i32
    %c0_i32_1 = arith.constant 0 : i32
    return %c0_i32, %c0_i32_0 : i32, i32
  }
  func.func @transform_7(%arg0: i32) -> (i32, i32) {
    %c0_i32 = arith.constant 0 : i32
    %c0_i32_0 = arith.constant 0 : i32
    %c0_i32_1 = arith.constant 0 : i32
    return %c0_i32, %c0_i32_0 : i32, i32
  }
  func.func @transform_8(%arg0: i32) -> (i32, i32, i32) {
    %c0_i32 = arith.constant 0 : i32
    %c0_i32_0 = arith.constant 0 : i32
    %c0_i32_1 = arith.constant 0 : i32
    return %arg0, %c0_i32, %c0_i32_0 : i32, i32, i32
  }
}

module attributes {stable_mosaic.version = 11 : i64} {
  func.func @_final_ln_pool_kernel(%arg0: i32, %arg1: memref<2x16x64xf32, #tpu.memory_space<vmem>>, %arg2: memref<1x1x64xf32, #tpu.memory_space<vmem>>, %arg3: memref<1x1x64xf32, #tpu.memory_space<vmem>>, %arg4: memref<2x64xf32, #tpu.memory_space<vmem>>) attributes {dimension_semantics = [#tpu.dimension_semantics<arbitrary>], iteration_bounds = array<i64: 1>, scalar_prefetch = 0 : i64, scratch_operands = 0 : i64, tpu.core_type = #tpu.core_type<tc>, window_params = [{pipeline_mode = #tpu.pipeline_mode<synchronous>, transform_indices = @transform_0, window_bounds = array<i64: 2, 16, 64>}, {pipeline_mode = #tpu.pipeline_mode<synchronous>, transform_indices = @transform_1, window_bounds = array<i64: 1, 1, 64>}, {pipeline_mode = #tpu.pipeline_mode<synchronous>, transform_indices = @transform_2, window_bounds = array<i64: 1, 1, 64>}, {pipeline_mode = #tpu.pipeline_mode<synchronous>, transform_indices = @transform_3, window_bounds = array<i64: 2, 64>}]} {
    %c0 = arith.constant 0 : index
    %c0_0 = arith.constant 0 : index
    %c0_1 = arith.constant 0 : index
    %0 = vector.load %arg1[%c0, %c0_0, %c0_1] : memref<2x16x64xf32, #tpu.memory_space<vmem>>, vector<2x16x64xf32>
    %c0_2 = arith.constant 0 : index
    %c0_3 = arith.constant 0 : index
    %c0_4 = arith.constant 0 : index
    %1 = vector.load %arg2[%c0_2, %c0_3, %c0_4] : memref<1x1x64xf32, #tpu.memory_space<vmem>>, vector<1x1x64xf32>
    %c0_5 = arith.constant 0 : index
    %c0_6 = arith.constant 0 : index
    %c0_7 = arith.constant 0 : index
    %2 = vector.load %arg3[%c0_5, %c0_6, %c0_7] : memref<1x1x64xf32, #tpu.memory_space<vmem>>, vector<1x1x64xf32>
    %cst = arith.constant dense<0.000000e+00> : vector<2x16xf32>
    %3 = vector.multi_reduction <add>, %0, %cst [2] : vector<2x16x64xf32> to vector<2x16xf32>
    %4 = vector.shape_cast %3 : vector<2x16xf32> to vector<2x16x1xf32>
    %cst_8 = arith.constant 6.400000e+01 : f32
    %5 = vector.broadcast %cst_8 : f32 to vector<2x16x1xf32>
    %6 = arith.divf %4, %5 : vector<2x16x1xf32>
    %7 = vector.broadcast %6 : vector<2x16x1xf32> to vector<2x16x64xf32>
    %8 = arith.subf %0, %7 : vector<2x16x64xf32>
    %9 = arith.mulf %8, %8 : vector<2x16x64xf32>
    %cst_9 = arith.constant dense<0.000000e+00> : vector<2x16xf32>
    %10 = vector.multi_reduction <add>, %9, %cst_9 [2] : vector<2x16x64xf32> to vector<2x16xf32>
    %11 = vector.shape_cast %10 : vector<2x16xf32> to vector<2x16x1xf32>
    %cst_10 = arith.constant 6.400000e+01 : f32
    %12 = vector.broadcast %cst_10 : f32 to vector<2x16x1xf32>
    %13 = arith.divf %11, %12 : vector<2x16x1xf32>
    %14 = vector.broadcast %6 : vector<2x16x1xf32> to vector<2x16x64xf32>
    %15 = arith.subf %0, %14 : vector<2x16x64xf32>
    %cst_11 = arith.constant 9.99999974E-6 : f32
    %16 = vector.broadcast %cst_11 : f32 to vector<2x16x1xf32>
    %17 = arith.addf %13, %16 : vector<2x16x1xf32>
    %18 = math.rsqrt %17 : vector<2x16x1xf32>
    %19 = vector.broadcast %18 : vector<2x16x1xf32> to vector<2x16x64xf32>
    %20 = arith.mulf %15, %19 : vector<2x16x64xf32>
    %21 = vector.broadcast %1 : vector<1x1x64xf32> to vector<2x16x64xf32>
    %22 = arith.mulf %20, %21 : vector<2x16x64xf32>
    %23 = vector.broadcast %2 : vector<1x1x64xf32> to vector<2x16x64xf32>
    %24 = arith.addf %22, %23 : vector<2x16x64xf32>
    %cst_12 = arith.constant dense<0.000000e+00> : vector<2x64xf32>
    %25 = vector.multi_reduction <add>, %24, %cst_12 [1] : vector<2x16x64xf32> to vector<2x64xf32>
    %cst_13 = arith.constant 1.600000e+01 : f32
    %26 = vector.broadcast %cst_13 : f32 to vector<2x64xf32>
    %27 = arith.divf %25, %26 : vector<2x64xf32>
    %c0_14 = arith.constant 0 : index
    %c0_15 = arith.constant 0 : index
    %28 = vector.load %arg4[%c0_14, %c0_15] : memref<2x64xf32, #tpu.memory_space<vmem>>, vector<2x64xf32>
    tpu.vector_store %arg4[%c0_14, %c0_15], %27 {strides = array<i32>} : memref<2x64xf32, #tpu.memory_space<vmem>>, vector<2x64xf32>,
    return
  }
  func.func @transform_0(%arg0: i32) -> (i32, i32, i32) {
    %c0_i32 = arith.constant 0 : i32
    %c0_i32_0 = arith.constant 0 : i32
    %c0_i32_1 = arith.constant 0 : i32
    %c0_i32_2 = arith.constant 0 : i32
    return %c0_i32, %c0_i32_0, %c0_i32_1 : i32, i32, i32
  }
  func.func @transform_1(%arg0: i32) -> (i32, i32, i32) {
    %c0_i32 = arith.constant 0 : i32
    %c0_i32_0 = arith.constant 0 : i32
    %c0_i32_1 = arith.constant 0 : i32
    %c0_i32_2 = arith.constant 0 : i32
    return %c0_i32, %c0_i32_0, %c0_i32_1 : i32, i32, i32
  }
  func.func @transform_2(%arg0: i32) -> (i32, i32, i32) {
    %c0_i32 = arith.constant 0 : i32
    %c0_i32_0 = arith.constant 0 : i32
    %c0_i32_1 = arith.constant 0 : i32
    %c0_i32_2 = arith.constant 0 : i32
    return %c0_i32, %c0_i32_0, %c0_i32_1 : i32, i32, i32
  }
  func.func @transform_3(%arg0: i32) -> (i32, i32) {
    %c0_i32 = arith.constant 0 : i32
    %c0_i32_0 = arith.constant 0 : i32
    %c0_i32_1 = arith.constant 0 : i32
    return %c0_i32, %c0_i32_0 : i32, i32
  }
}

module attributes {stable_mosaic.version = 11 : i64} {
  func.func @_ln_mlp_kernel(%arg0: i32, %arg1: memref<16x64xf32, #tpu.memory_space<vmem>>, %arg2: memref<1x64xf32, #tpu.memory_space<vmem>>, %arg3: memref<1x64xf32, #tpu.memory_space<vmem>>, %arg4: memref<64x256xbf16, #tpu.memory_space<vmem>>, %arg5: memref<1x256xf32, #tpu.memory_space<vmem>>, %arg6: memref<256x64xbf16, #tpu.memory_space<vmem>>, %arg7: memref<1x64xf32, #tpu.memory_space<vmem>>, %arg8: memref<16x64xf32, #tpu.memory_space<vmem>>) attributes {dimension_semantics = [#tpu.dimension_semantics<parallel>], iteration_bounds = array<i64: 2>, scalar_prefetch = 0 : i64, scratch_operands = 0 : i64, tpu.core_type = #tpu.core_type<tc>, window_params = [{transform_indices = @transform_0, window_bounds = array<i64: 16, 64>}, {pipeline_mode = #tpu.pipeline_mode<synchronous>, transform_indices = @transform_1, window_bounds = array<i64: 1, 64>}, {pipeline_mode = #tpu.pipeline_mode<synchronous>, transform_indices = @transform_2, window_bounds = array<i64: 1, 64>}, {pipeline_mode = #tpu.pipeline_mode<synchronous>, transform_indices = @transform_3, window_bounds = array<i64: 64, 256>}, {pipeline_mode = #tpu.pipeline_mode<synchronous>, transform_indices = @transform_4, window_bounds = array<i64: 1, 256>}, {pipeline_mode = #tpu.pipeline_mode<synchronous>, transform_indices = @transform_5, window_bounds = array<i64: 256, 64>}, {pipeline_mode = #tpu.pipeline_mode<synchronous>, transform_indices = @transform_6, window_bounds = array<i64: 1, 64>}, {transform_indices = @transform_7, window_bounds = array<i64: 16, 64>}]} {
    %c0 = arith.constant 0 : index
    %c0_0 = arith.constant 0 : index
    %0 = vector.load %arg1[%c0, %c0_0] : memref<16x64xf32, #tpu.memory_space<vmem>>, vector<16x64xf32>
    %c0_1 = arith.constant 0 : index
    %c0_2 = arith.constant 0 : index
    %1 = vector.load %arg2[%c0_1, %c0_2] : memref<1x64xf32, #tpu.memory_space<vmem>>, vector<1x64xf32>
    %c0_3 = arith.constant 0 : index
    %c0_4 = arith.constant 0 : index
    %2 = vector.load %arg3[%c0_3, %c0_4] : memref<1x64xf32, #tpu.memory_space<vmem>>, vector<1x64xf32>
    %cst = arith.constant dense<0.000000e+00> : vector<16xf32>
    %3 = vector.multi_reduction <add>, %0, %cst [1] : vector<16x64xf32> to vector<16xf32>
    %4 = vector.shape_cast %3 : vector<16xf32> to vector<16x1xf32>
    %cst_5 = arith.constant 6.400000e+01 : f32
    %5 = vector.broadcast %cst_5 : f32 to vector<16x1xf32>
    %6 = arith.divf %4, %5 : vector<16x1xf32>
    %7 = vector.broadcast %6 : vector<16x1xf32> to vector<16x64xf32>
    %8 = arith.subf %0, %7 : vector<16x64xf32>
    %9 = arith.mulf %8, %8 : vector<16x64xf32>
    %cst_6 = arith.constant dense<0.000000e+00> : vector<16xf32>
    %10 = vector.multi_reduction <add>, %9, %cst_6 [1] : vector<16x64xf32> to vector<16xf32>
    %11 = vector.shape_cast %10 : vector<16xf32> to vector<16x1xf32>
    %cst_7 = arith.constant 6.400000e+01 : f32
    %12 = vector.broadcast %cst_7 : f32 to vector<16x1xf32>
    %13 = arith.divf %11, %12 : vector<16x1xf32>
    %14 = vector.broadcast %6 : vector<16x1xf32> to vector<16x64xf32>
    %15 = arith.subf %0, %14 : vector<16x64xf32>
    %cst_8 = arith.constant 9.99999974E-6 : f32
    %16 = vector.broadcast %cst_8 : f32 to vector<16x1xf32>
    %17 = arith.addf %13, %16 : vector<16x1xf32>
    %18 = math.rsqrt %17 : vector<16x1xf32>
    %19 = vector.broadcast %18 : vector<16x1xf32> to vector<16x64xf32>
    %20 = arith.mulf %15, %19 : vector<16x64xf32>
    %21 = vector.broadcast %1 : vector<1x64xf32> to vector<16x64xf32>
    %22 = arith.mulf %20, %21 : vector<16x64xf32>
    %23 = vector.broadcast %2 : vector<1x64xf32> to vector<16x64xf32>
    %24 = arith.addf %22, %23 : vector<16x64xf32>
    %25 = arith.truncf %24 : vector<16x64xf32> to vector<16x64xbf16>
    %c0_9 = arith.constant 0 : index
    %c0_10 = arith.constant 0 : index
    %26 = vector.load %arg4[%c0_9, %c0_10] : memref<64x256xbf16, #tpu.memory_space<vmem>>, vector<64x256xbf16>
    %cst_11 = arith.constant dense<0.000000e+00> : vector<16x256xf32>
    %27 = tpu.matmul %25, %26, %cst_11 {dimension_numbers = #tpu.dot_dimension_numbers<[1], [0], [0], [1], [0, 0, 1, 1], [], []>} : vector<16x64xbf16>, vector<64x256xbf16>, vector<16x256xf32> -> vector<16x256xf32>
    %c0_12 = arith.constant 0 : index
    %c0_13 = arith.constant 0 : index
    %28 = vector.load %arg5[%c0_12, %c0_13] : memref<1x256xf32, #tpu.memory_space<vmem>>, vector<1x256xf32>
    %29 = vector.broadcast %28 : vector<1x256xf32> to vector<16x256xf32>
    %30 = arith.addf %27, %29 : vector<16x256xf32>
    %cst_14 = arith.constant 5.000000e-01 : f32
    %31 = vector.broadcast %cst_14 : f32 to vector<16x256xf32>
    %32 = arith.mulf %31, %30 : vector<16x256xf32>
    %cst_15 = arith.constant 0.707106769 : f32
    %33 = vector.broadcast %cst_15 : f32 to vector<16x256xf32>
    %34 = arith.mulf %30, %33 : vector<16x256xf32>
    %35 = math.absf %34 : vector<16x256xf32>
    %cst_16 = arith.constant 0.327591091 : f32
    %36 = vector.broadcast %cst_16 : f32 to vector<16x256xf32>
    %37 = arith.mulf %36, %35 : vector<16x256xf32>
    %cst_17 = arith.constant 1.000000e+00 : f32
    %38 = vector.broadcast %cst_17 : f32 to vector<16x256xf32>
    %39 = arith.addf %38, %37 : vector<16x256xf32>
    %40 = tpu.reciprocal %39 {approx = true} : vector<16x256xf32> -> vector<16x256xf32>
    %cst_18 = arith.constant 1.06140542 : f32
    %41 = vector.broadcast %cst_18 : f32 to vector<16x256xf32>
    %42 = arith.mulf %41, %40 : vector<16x256xf32>
    %cst_19 = arith.constant -1.45315206 : f32
    %43 = vector.broadcast %cst_19 : f32 to vector<16x256xf32>
    %44 = arith.addf %42, %43 : vector<16x256xf32>
    %45 = arith.mulf %44, %40 : vector<16x256xf32>
    %cst_20 = arith.constant 1.42141378 : f32
    %46 = vector.broadcast %cst_20 : f32 to vector<16x256xf32>
    %47 = arith.addf %45, %46 : vector<16x256xf32>
    %48 = arith.mulf %47, %40 : vector<16x256xf32>
    %cst_21 = arith.constant -0.284496725 : f32
    %49 = vector.broadcast %cst_21 : f32 to vector<16x256xf32>
    %50 = arith.addf %48, %49 : vector<16x256xf32>
    %51 = arith.mulf %50, %40 : vector<16x256xf32>
    %cst_22 = arith.constant 0.254829586 : f32
    %52 = vector.broadcast %cst_22 : f32 to vector<16x256xf32>
    %53 = arith.addf %51, %52 : vector<16x256xf32>
    %54 = arith.mulf %53, %40 : vector<16x256xf32>
    %cst_23 = arith.constant 0.000000e+00 : f32
    %55 = vector.broadcast %cst_23 : f32 to vector<16x256xf32>
    %56 = arith.subf %55, %35 : vector<16x256xf32>
    %57 = arith.mulf %56, %35 : vector<16x256xf32>
    %58 = math.exp %57 : vector<16x256xf32>
    %59 = arith.mulf %54, %58 : vector<16x256xf32>
    %cst_24 = arith.constant 1.000000e+00 : f32
    %60 = vector.broadcast %cst_24 : f32 to vector<16x256xf32>
    %61 = arith.subf %60, %59 : vector<16x256xf32>
    %cst_25 = arith.constant 0.000000e+00 : f32
    %62 = vector.broadcast %cst_25 : f32 to vector<16x256xf32>
    %63 = arith.cmpf oge, %34, %62 : vector<16x256xf32>
    %cst_26 = arith.constant 0.000000e+00 : f32
    %64 = vector.broadcast %cst_26 : f32 to vector<16x256xf32>
    %65 = arith.subf %64, %61 : vector<16x256xf32>
    %66 = arith.select %63, %61, %65 : vector<16x256xi1>, vector<16x256xf32>
    %cst_27 = arith.constant 1.000000e+00 : f32
    %67 = vector.broadcast %cst_27 : f32 to vector<16x256xf32>
    %68 = arith.addf %67, %66 : vector<16x256xf32>
    %69 = arith.mulf %32, %68 : vector<16x256xf32>
    %70 = arith.truncf %69 : vector<16x256xf32> to vector<16x256xbf16>
    %c0_28 = arith.constant 0 : index
    %c0_29 = arith.constant 0 : index
    %71 = vector.load %arg6[%c0_28, %c0_29] : memref<256x64xbf16, #tpu.memory_space<vmem>>, vector<256x64xbf16>
    %cst_30 = arith.constant dense<0.000000e+00> : vector<16x64xf32>
    %72 = tpu.matmul %70, %71, %cst_30 {dimension_numbers = #tpu.dot_dimension_numbers<[1], [0], [0], [1], [0, 0, 1, 1], [], []>} : vector<16x256xbf16>, vector<256x64xbf16>, vector<16x64xf32> -> vector<16x64xf32>
    %c0_31 = arith.constant 0 : index
    %c0_32 = arith.constant 0 : index
    %73 = vector.load %arg7[%c0_31, %c0_32] : memref<1x64xf32, #tpu.memory_space<vmem>>, vector<1x64xf32>
    %74 = vector.broadcast %73 : vector<1x64xf32> to vector<16x64xf32>
    %75 = arith.addf %72, %74 : vector<16x64xf32>
    %76 = arith.addf %0, %75 : vector<16x64xf32>
    %c0_33 = arith.constant 0 : index
    %c0_34 = arith.constant 0 : index
    %77 = vector.load %arg8[%c0_33, %c0_34] : memref<16x64xf32, #tpu.memory_space<vmem>>, vector<16x64xf32>
    tpu.vector_store %arg8[%c0_33, %c0_34], %76 {strides = array<i32>} : memref<16x64xf32, #tpu.memory_space<vmem>>, vector<16x64xf32>,
    return
  }
  func.func @transform_0(%arg0: i32) -> (i32, i32) {
    %c0_i32 = arith.constant 0 : i32
    %c0_i32_0 = arith.constant 0 : i32
    return %arg0, %c0_i32 : i32, i32
  }
  func.func @transform_1(%arg0: i32) -> (i32, i32) {
    %c0_i32 = arith.constant 0 : i32
    %c0_i32_0 = arith.constant 0 : i32
    %c0_i32_1 = arith.constant 0 : i32
    return %c0_i32, %c0_i32_0 : i32, i32
  }
  func.func @transform_2(%arg0: i32) -> (i32, i32) {
    %c0_i32 = arith.constant 0 : i32
    %c0_i32_0 = arith.constant 0 : i32
    %c0_i32_1 = arith.constant 0 : i32
    return %c0_i32, %c0_i32_0 : i32, i32
  }
  func.func @transform_3(%arg0: i32) -> (i32, i32) {
    %c0_i32 = arith.constant 0 : i32
    %c0_i32_0 = arith.constant 0 : i32
    %c0_i32_1 = arith.constant 0 : i32
    return %c0_i32, %c0_i32_0 : i32, i32
  }
  func.func @transform_4(%arg0: i32) -> (i32, i32) {
    %c0_i32 = arith.constant 0 : i32
    %c0_i32_0 = arith.constant 0 : i32
    %c0_i32_1 = arith.constant 0 : i32
    return %c0_i32, %c0_i32_0 : i32, i32
  }
  func.func @transform_5(%arg0: i32) -> (i32, i32) {
    %c0_i32 = arith.constant 0 : i32
    %c0_i32_0 = arith.constant 0 : i32
    %c0_i32_1 = arith.constant 0 : i32
    return %c0_i32, %c0_i32_0 : i32, i32
  }
  func.func @transform_6(%arg0: i32) -> (i32, i32) {
    %c0_i32 = arith.constant 0 : i32
    %c0_i32_0 = arith.constant 0 : i32
    %c0_i32_1 = arith.constant 0 : i32
    return %c0_i32, %c0_i32_0 : i32, i32
  }
  func.func @transform_7(%arg0: i32) -> (i32, i32) {
    %c0_i32 = arith.constant 0 : i32
    %c0_i32_0 = arith.constant 0 : i32
    return %arg0, %c0_i32 : i32, i32
  }
}

</mosaic_0001>

<bundles_post_ra>
// kernel: video_processor_forward.11
= control target key start
LH: loop header
LB: loop body
LE: loop exit
PB: predicated region body
PF: predicated region fallthrough
CT: control target
= control target key end

     0   :  { %s687_s18 = smov 0   ;;  %s800_s0 = inlined_call_operand.vmem [shape: bf16[128,48], index: 0, kind: input, shape index: {}]   ;;  %s801_s1 = inlined_call_operand.vmem [shape: bf16[48,32], index: 1, kind: input, shape index: {}]   ;;  %s802_s2 = inlined_call_operand.vmem [shape: f32[1,32], index: 2, kind: input, shape index: {}]   ;;  %s803_s3 = inlined_call_operand.vmem [shape: f32[1,32], index: 3, kind: input, shape index: {}]   ;;  %s804_s4 = inlined_call_operand.vmem [shape: f32[1,32], index: 4, kind: input, shape index: {}]   ;;  %s805_s5 = inlined_call_operand.vmem [shape: f32[128,32], index: 5, kind: output, shape index: {}]  }
   0x1 LB: > { %s566_s19 = sadd.s32 4294967295, %s655_s18   ;;  %p570_p0 = scmp.ge.s32.totalorder %s655_s18, 1  ;;  %s655_s18 = sphi %s687_s18, %s15_s18  }
   0x2   : > { %p188_p1 = scmp.lt.s32.totalorder %s655_s18, 3 }
   0x4   : > { %p189_p2 = pnand %p570_p0, %p188_p1 }
   0x5   : > { %v626_v0 = vld [vmem:[%s801_s1] sm:$0xff] (!%p189_p2)   ;;  %s571_s22 = sshll.u32 (!%p189_p2), %s566_s19, 3  ;;  %v627_v1 = vld [vmem:[%s801_s1 + $0x8] sm:$0xff] (!%p189_p2)   ;;  %v628_v2 = vld [vmem:[%s801_s1 + $0x10] sm:$0xff] (!%p189_p2)   ;;  %vm288_vm0 = vcmask (!%p189_p2), 392192   ;;  %vm368_vm1 = vcmask (!%p189_p2), 261120  }
   0x6   : > { %192 = sbr.rel (%p189_p2) target bundleno = 563 (0x233), region = 40  ;;  %p217_p3 = scmp.lt.s32.totalorder (!%p189_p2), %s571_s22, 15  ;;  %598 = vmatprep.subr.bf16.mxu0 (!%p189_p2), %v626_v0  ;;  %612 = vmatprep.subr.bf16.mxu1 (!%p189_p2), %v626_v0  ;;  %v575_v7 = vld [vmem:[%s802_s2] ss:$0 sm:$0xff] (!%p189_p2) }
   0x7   : > { %599 = vmatpush3.bf16.msra.mxu0 (!%p189_p2), %v626_v0  ;;  %615 = vmatpush3.bf16.msra.mxu1 (!%p189_p2), %v626_v0 }
   0x8   : > { %600 = vmatprep.subr.bf16.mxu0 (!%p189_p2), %v627_v1  ;;  %613 = vmatprep.subr.bf16.mxu1 (!%p189_p2), %v627_v1 }
   0xb   : > { %601 = vmatpush3.bf16.msra.mxu0 (!%p189_p2), %v627_v1  ;;  %616 = vmatpush3.bf16.msra.mxu1 (!%p189_p2), %v627_v1 }
   0xc   : > { %602 = vmatprep.subr.bf16.mxu0 (!%p189_p2), %v628_v2  ;;  %614 = vmatprep.subr.bf16.mxu1 (!%p189_p2), %v628_v2 }
   0xd   : > { %s807_s22 = smov (!%p217_p3, %s571_s22), 15 }
   0xe   : > { %s572_s27 = sshll.u32 %s807_s22, 2  ;;  %s574_s10 = sshll.u32 %s807_s22, 3 }
   0xf   : > { %s220_s30 = scalar_lea.vmem %s800_s0, %s572_s27  ;;  %603 = vmatpush3.bf16.msra.mxu0 %v628_v2  ;;  %617 = vmatpush3.bf16.msra.mxu1 %v628_v2  ;;  %s772_s15 = scalar_lea.vmem %s805_s5, %s574_s10 }
  0x10   : > { %v629_v3 = vld [vmem:[%s220_s30] sm:$0xff]   ;;  %v630_v4 = vld [vmem:[%s220_s30 + $0x8] sm:$0xff]   ;;  %v631_v5 = vld [vmem:[%s220_s30 + $0x10] sm:$0xff]  }
  0x11   : > { %604 = vmatprep.mubr.msk.bf16.mxu0 %vm288_vm0, %v629_v3  ;;  %v632_v6 = vld [vmem:[%s220_s30 + $0x18] sm:$0xff]   ;;  %608 = vmatprep.mubr.msk.bf16.mxu1 %vm288_vm0, %v631_v5 }
  0x12   : > { %605 = vmatmul.mubr.msk.bf16.vlgmr.msra.gmra.mrb[0].mxu0 %vm288_vm0, %v630_v4  ;;  %609 = vmatmul.mubr.msk.bf16.vlgmr.msra.gmra.mrb[0].mxu1 %vm288_vm0, %v632_v6 }
  0xe5   : > { %v606_v8 = vpop.f32.mrb[0].mxu0  ;;  %v610_v9 = vpop.f32.mrb[0].mxu1 }
  0xe6   : > { %v344_v10 = vadd.f32 %v606_v8, %v575_v7  ;;  %v335_v11 = vpop.f32.mrb[1].mxu0  ;;  %v351_v12 = vpop.f32.mrb[1].mxu1  ;;  %v360_v28 = vadd.f32 %v610_v9, %v575_v7 }
  0xe7   : > { %v336_v13 = vadd.f32 %v575_v7, %v335_v11  ;;  %v607_v14 = vpop.f32.mrb[2].mxu0  ;;  %v352_v15 = vadd.f32 %v575_v7, %v351_v12  ;;  %v611_v16 = vpop.f32.mrb[2].mxu1 }
  0xe8   : > { %v347_v17 = vadd.f32 %v607_v14, %v575_v7  ;;  %v338_v18 = vpop.f32.mrb[3].mxu0  ;;  %v354_v19 = vpop.f32.mrb[3].mxu1  ;;  %v375_v20 = vsel %vm368_vm1, %v344_v10, 0.0  ;;  %v363_v26 = vadd.f32 %v611_v16, %v575_v7  ;;  %v387_v31 = vsel %vm368_vm1, %v360_v28, 0.0 }
  0xe9   : > { %376 = vadd.xlane.f32.xlu1 %v375_v20  ;;  %v369_v21 = vsel %vm368_vm1, %v336_v13, 0.0  ;;  %v381_v22 = vsel %vm368_vm1, %v352_v15, 0.0  ;;  %v355_v23 = vadd.f32 %v575_v7, %v354_v19  ;;  %v339_v25 = vadd.f32 %v575_v7, %v338_v18 }
  0xea   : > { %370 = vadd.xlane.f32.xlu0 %v369_v21  ;;  %v378_v24 = vsel %vm368_vm1, %v347_v17, 0.0  ;;  %v390_v30 = vsel %vm368_vm1, %v363_v26, 0.0 }
  0xeb   : > { %v384_v27 = vsel %vm368_vm1, %v355_v23, 0.0  ;;  %v372_v29 = vsel %vm368_vm1, %v339_v25, 0.0 }
  0xed   : > { %379 = vadd.xlane.f32.xlu1 %v378_v24 }
  0xee   : > { %382 = vadd.xlane.f32.xlu0 %v381_v22 }
  0xf1   : > { %385 = vadd.xlane.f32.xlu1 %v384_v27 }
  0xf2   : > { %373 = vadd.xlane.f32.xlu0 %v372_v29 }
  0xf5   : > { %391 = vadd.xlane.f32.xlu1 %v390_v30 }
  0xf6   : > { %388 = vadd.xlane.f32.xlu0 %v387_v31 }
 0x176   : > { %v377_v32 = vpop.xlane.xlu1 %376 }
 0x177   : > { %v396_v33 = vmul.f32 0.03125, %v377_v32  ;;  %v371_v34 = vpop.xlane.xlu0 %370  ;;  %v588_v32 = vld [vmem:[%s804_s4] ss:$0 sm:$0xff] }
 0x178   : > { %v394_v35 = vmul.f32 0.03125, %v371_v34 }
 0x179   : > { %v721_v36 = vsub.f32 %v344_v10, %v396_v33 }
 0x17a   : > { %v723_v37 = vsub.f32 %v336_v13, %v394_v35  ;;  %v380_v38 = vpop.xlane.xlu1 %379 }
 0x17b   : > { %v397_v39 = vmul.f32 0.03125, %v380_v38  ;;  %v383_v40 = vpop.xlane.xlu0 %382  ;;  %v412_v41 = vmul.f32 %v721_v36, %v721_v36 }
 0x17c   : > { %v398_v42 = vmul.f32 0.03125, %v383_v40  ;;  %v410_v45 = vmul.f32 %v723_v37, %v723_v37 }
 0x17d   : > { %v727_v43 = vsub.f32 %v347_v17, %v397_v39  ;;  %v424_v44 = vsel %vm368_vm1, %v412_v41, 0.0 }
 0x17e   : > { %v732_v46 = vsub.f32 %v352_v15, %v398_v42  ;;  %v386_v47 = vpop.xlane.xlu1 %385  ;;  %425 = vadd.xlane.f32.xlu0 %v424_v44  ;;  %v418_v53 = vsel %vm368_vm1, %v410_v45, 0.0 }
 0x17f   : > { %v399_v48 = vmul.f32 0.03125, %v386_v47  ;;  %v374_v49 = vpop.xlane.xlu0 %373  ;;  %v413_v50 = vmul.f32 %v727_v43, %v727_v43 }
 0x180   : > { %v395_v51 = vmul.f32 0.03125, %v374_v49  ;;  %v414_v54 = vmul.f32 %v732_v46, %v732_v46 }
 0x181   : > { %v427_v52 = vsel %vm368_vm1, %v413_v50, 0.0  ;;  %v740_v55 = vsub.f32 %v355_v23, %v399_v48 }
 0x182   : > { %v742_v56 = vsub.f32 %v339_v25, %v395_v51  ;;  %428 = vadd.xlane.f32.xlu1 %v427_v52  ;;  %v392_v57 = vpop.xlane.xlu1 %391  ;;  %419 = vadd.xlane.f32.xlu0 %v418_v53  ;;  %v430_v62 = vsel %vm368_vm1, %v414_v54, 0.0 }
 0x183   : > { %v401_v58 = vmul.f32 0.03125, %v392_v57  ;;  %v389_v59 = vpop.xlane.xlu0 %388  ;;  %v415_v2 = vmul.f32 %v740_v55, %v740_v55 }
 0x184   : > { %v400_v60 = vmul.f32 0.03125, %v389_v59  ;;  %v411_v61 = vmul.f32 %v742_v56, %v742_v56 }
 0x185   : > { %v747_v63 = vsub.f32 %v363_v26, %v401_v58  ;;  %v433_v4 = vsel %vm368_vm1, %v415_v2, 0.0 }
 0x186   : > { %v749_v0 = vsub.f32 %v360_v28, %v400_v60  ;;  %431 = vadd.xlane.f32.xlu0 %v430_v62  ;;  %v421_v1 = vsel %vm368_vm1, %v411_v61, 0.0  ;;  %v587_v28 = vld [vmem:[%s803_s3] ss:$0 sm:$0xff] }
 0x187   : > { %422 = vadd.xlane.f32.xlu1 %v421_v1  ;;  %v417_v6 = vmul.f32 %v747_v63, %v747_v63 }
 0x188   : > { %v416_v3 = vmul.f32 %v749_v0, %v749_v0 }
 0x189   : > { %v439_v7 = vsel %vm368_vm1, %v417_v6, 0.0 }
 0x18a   : > { %v436_v5 = vsel %vm368_vm1, %v416_v3, 0.0 }
 0x18b   : > { %434 = vadd.xlane.f32.xlu1 %v433_v4  ;;  %437 = vadd.xlane.f32.xlu0 %v436_v5 }
 0x18f   : > { %440 = vadd.xlane.f32.xlu1 %v439_v7 }
 0x20b   : > { %v426_v8 = vpop.xlane.xlu0 %425 }
 0x20c   : > { %v444_v9 = vmul.f32 0.03125, %v426_v8 }
 0x20e   : > { %v452_v10 = vadd.f32 1e-05, %v444_v9 }
 0x20f   : > { %v429_v11 = vpop.xlane.xlu1 %428  ;;  %v420_v12 = vpop.xlane.xlu0 %419 }
 0x210   : > { %633 = vrsqrt.f32 %v452_v10  ;;  %v445_v13 = vmul.f32 0.03125, %v429_v11  ;;  %v442_v14 = vmul.f32 0.03125, %v420_v12 }
 0x212   : > { %v453_v15 = vadd.f32 1e-05, %v445_v13  ;;  %v450_v16 = vadd.f32 1e-05, %v442_v14 }
 0x213   : > { %v432_v17 = vpop.xlane.xlu0 %431 }
 0x214   : > { %635 = vrsqrt.f32 %v453_v15  ;;  %v446_v18 = vmul.f32 0.03125, %v432_v17  ;;  %v423_v19 = vpop.xlane.xlu1 %422 }
 0x215   : > { %637 = vrsqrt.f32 %v450_v16  ;;  %v443_v20 = vmul.f32 0.03125, %v423_v19 }
 0x216   : > { %v454_v21 = vadd.f32 1e-05, %v446_v18 }
 0x217   : > { %v451_v22 = vadd.f32 1e-05, %v443_v20 }
 0x218   : > { %639 = vrsqrt.f32 %v454_v21  ;;  %v435_v23 = vpop.xlane.xlu1 %434  ;;  %v438_v24 = vpop.xlane.xlu0 %437 }
 0x219   : > { %641 = vrsqrt.f32 %v451_v22  ;;  %v447_v25 = vmul.f32 0.03125, %v435_v23  ;;  %v448_v26 = vmul.f32 0.03125, %v438_v24 }
 0x21a   : > { %v634_v27 = vpop.eup %633 }
 0x21b   : > { %v468_v29 = vmul.f32 %v634_v27, %v721_v36  ;;  %v455_v30 = vadd.f32 1e-05, %v447_v25  ;;  %v456_v31 = vadd.f32 1e-05, %v448_v26 }
 0x21c   : > { %v441_v33 = vpop.xlane.xlu1 %440 }
 0x21d   : > { %v482_v34 = vmul.f32 %v587_v28, %v468_v29  ;;  %643 = vrsqrt.f32 %v455_v30  ;;  %v449_v35 = vmul.f32 0.03125, %v441_v33 }
 0x21e   : > { %v636_v38 = vpop.eup %635  ;;  %645 = vrsqrt.f32 %v456_v31 }
 0x21f   : > { %v638_v36 = vpop.eup %637  ;;  %v496_v39 = vadd.f32 %v588_v32, %v482_v34  ;;  %v469_v40 = vmul.f32 %v636_v38, %v727_v43  ;;  %v457_v41 = vadd.f32 1e-05, %v449_v35 }
 0x220   : > { %v466_v42 = vmul.f32 %v638_v36, %v723_v37 }
 0x221   : > { %504 = vst.msk [vmem:[%s772_s15 + $0x10] sm:$0xff] %vm368_vm1, %v496_v39  ;;  %v483_v44 = vmul.f32 %v587_v28, %v469_v40  ;;  %647 = vrsqrt.f32 %v457_v41 }
 0x222   : > { %v640_v45 = vpop.eup %639  ;;  %v480_v47 = vmul.f32 %v587_v28, %v466_v42 }
 0x223   : > { %v642_v48 = vpop.eup %641  ;;  %v497_v49 = vadd.f32 %v588_v32, %v483_v44  ;;  %v470_v50 = vmul.f32 %v640_v45, %v732_v46 }
 0x224   : > { %v494_v51 = vadd.f32 %v588_v32, %v480_v47  ;;  %v467_v52 = vmul.f32 %v642_v48, %v742_v56 }
 0x225   : > { %505 = vst.msk [vmem:[%s772_s15 + $0x18] sm:$0xff] %vm368_vm1, %v497_v49  ;;  %v484_v43 = vmul.f32 %v587_v28, %v470_v50 }
 0x226   : > { %502 = vst.msk [vmem:[%s772_s15] sm:$0xff] %vm368_vm1, %v494_v51  ;;  %v481_v37 = vmul.f32 %v587_v28, %v467_v52 }
 0x227   : > { %v644_v53 = vpop.eup %643  ;;  %v498_v54 = vadd.f32 %v588_v32, %v484_v43 }
 0x228   : > { %v646_v57 = vpop.eup %645  ;;  %v495_v58 = vadd.f32 %v588_v32, %v481_v37  ;;  %v471_v59 = vmul.f32 %v644_v53, %v740_v55 }
 0x229   : > { %506 = vst.msk [vmem:[%s772_s15 + $0x20] sm:$0xff] %vm368_vm1, %v498_v54  ;;  %v472_v46 = vmul.f32 %v646_v57, %v749_v0 }
 0x22a   : > { %503 = vst.msk [vmem:[%s772_s15 + $0x8] sm:$0xff] %vm368_vm1, %v495_v58  ;;  %v485_v56 = vmul.f32 %v587_v28, %v471_v59 }
 0x22b   : > { %v648_v60 = vpop.eup %647  ;;  %v486_v61 = vmul.f32 %v587_v28, %v472_v46 }
 0x22c   : > { %v499_v62 = vadd.f32 %v588_v32, %v485_v56  ;;  %v473_v1 = vmul.f32 %v648_v60, %v747_v63 }
 0x22d   : > { %v500_v2 = vadd.f32 %v588_v32, %v486_v61 }
 0x22e   : > { %507 = vst.msk [vmem:[%s772_s15 + $0x28] sm:$0xff] %vm368_vm1, %v499_v62  ;;  %v487_v3 = vmul.f32 %v587_v28, %v473_v1 }
 0x22f   : > { %508 = vst.msk [vmem:[%s772_s15 + $0x30] sm:$0xff] %vm368_vm1, %v500_v2 }
 0x230   : > { %v501_v4 = vadd.f32 %v588_v32, %v487_v3 }
 0x232   : > { %509 = vst.msk [vmem:[%s772_s15 + $0x38] sm:$0xff] %vm368_vm1, %v501_v4 }
 0x233 PF: > { %s15_s18 = sadd.s32 1, %s655_s18  }
 0x234   : > { %p12_p4 = scmp.ge.s32.totalorder %s15_s18, 4  }
 0x236   :  { %14 = sbr.rel (!%p12_p4) target bundleno = 1 (0x1), region = 70 }

// kernel: video_processor_forward.13
= control target key start
LH: loop header
LB: loop body
LE: loop exit
PB: predicated region body
PF: predicated region fallthrough
CT: control target
= control target key end

     0   :  { %s1148_s24 = smov 0   ;;  %s1451_s0 = inlined_call_operand.vmem [shape: f32[128,32], index: 0, kind: input, shape index: {}]   ;;  %s1452_s1 = inlined_call_operand.vmem [shape: f32[1,32], index: 1, kind: input, shape index: {}]   ;;  %s1453_s2 = inlined_call_operand.vmem [shape: f32[1,32], index: 2, kind: input, shape index: {}]   ;;  %s1454_s3 = inlined_call_operand.vmem [shape: bf16[32,128], index: 3, kind: input, shape index: {}]   ;;  %s1455_s4 = inlined_call_operand.vmem [shape: f32[1,128], index: 4, kind: input, shape index: {}]   ;;  %s1456_s5 = inlined_call_operand.vmem [shape: bf16[128,32], index: 5, kind: input, shape index: {}]   ;;  %s1457_s6 = inlined_call_operand.vmem [shape: f32[1,32], index: 6, kind: input, shape index: {}]   ;;  %s1458_s7 = inlined_call_operand.vmem [shape: f32[128,32], index: 7, kind: output, shape index: {}]  }
   0x1 LB: > { %s951_s25 = sadd.s32 4294967295, %s1106_s24   ;;  %p955_p0 = scmp.ge.s32.totalorder %s1106_s24, 1  ;;  %s1106_s24 = sphi %s1148_s24, %s17_s24  }
   0x2   : > { %p238_p1 = scmp.lt.s32.totalorder %s1106_s24, 3 }
   0x4   : > { %p239_p2 = pnand %p955_p0, %p238_p1 }
   0x5   : > { %s956_s26 = sshll.u32 (!%p239_p2), %s951_s25, 3  ;;  %vm293_vm0 = vcmask (!%p239_p2), 261120   ;;  %v1042_v56 = vld [vmem:[%s1454_s3] sm:$0xff] (!%p239_p2)   ;;  %v1043_v57 = vld [vmem:[%s1454_s3 + $0x8] sm:$0xff] (!%p239_p2)  }
   0x6   : > { %242 = sbr.rel (%p239_p2) target bundleno = 840 (0x348), region = 48  ;;  %p271_p3 = scmp.lt.s32.totalorder (!%p239_p2), %s956_s26, 15  ;;  %998 = vmatprep.subr.bf16.mxu0 (!%p239_p2), %v1042_v56 }
   0x7   : > { %999 = vmatpush3.bf16.msra.mxu0 (!%p239_p2), %v1042_v56 }
   0x8   : > { %1000 = vmatprep.subr.bf16.mxu0 (!%p239_p2), %v1043_v57 }
   0xb   : > { %1001 = vmatpush3.bf16.msra.mxu0 (!%p239_p2), %v1043_v57 }
   0xd   : > { %s1460_s26 = smov (!%p271_p3, %s956_s26), 15 }
   0xe   : > { %s957_s27 = sshll.u32 %s1460_s26, 3 }
   0xf   : > { %s274_s30 = scalar_lea.vmem %s1451_s0, %s957_s27  ;;  %s280_s18 = scalar_lea.vmem %s1458_s7, %s957_s27 }
  0x10   : > { %v1164_v0 = vld [vmem:[%s274_s30] sm:$0xff]  ;;  %v1166_v1 = vld [vmem:[%s274_s30 + $0x10] sm:$0xff]  ;;  %v1168_v2 = vld [vmem:[%s274_s30 + $0x8] sm:$0xff] }
  0x11   : > { %v294_v3 = vsel %vm293_vm0, %v1164_v0, 0.0  ;;  %v300_v4 = vsel %vm293_vm0, %v1166_v1, 0.0  ;;  %v1174_v5 = vld [vmem:[%s274_s30 + $0x18] sm:$0xff]  ;;  %v297_v6 = vsel %vm293_vm0, %v1168_v2, 0.0  ;;  %v1180_v8 = vld [vmem:[%s274_s30 + $0x20] sm:$0xff]  ;;  %v1182_v9 = vld [vmem:[%s274_s30 + $0x28] sm:$0xff] }
  0x12   : > { %295 = vadd.xlane.f32.xlu0 %v294_v3  ;;  %301 = vadd.xlane.f32.xlu1 %v300_v4  ;;  %v303_v7 = vsel %vm293_vm0, %v1174_v5, 0.0  ;;  %v306_v10 = vsel %vm293_vm0, %v1180_v8, 0.0  ;;  %v309_v11 = vsel %vm293_vm0, %v1182_v9, 0.0  ;;  %v1188_v12 = vld [vmem:[%s274_s30 + $0x30] sm:$0xff]  ;;  %v1190_v13 = vld [vmem:[%s274_s30 + $0x38] sm:$0xff] }
  0x13   : > { %v312_v14 = vsel %vm293_vm0, %v1188_v12, 0.0  ;;  %v315_v15 = vsel %vm293_vm0, %v1190_v13, 0.0 }
  0x16   : > { %298 = vadd.xlane.f32.xlu0 %v297_v6  ;;  %304 = vadd.xlane.f32.xlu1 %v303_v7 }
  0x1a   : > { %307 = vadd.xlane.f32.xlu0 %v306_v10  ;;  %310 = vadd.xlane.f32.xlu1 %v309_v11 }
  0x1e   : > { %313 = vadd.xlane.f32.xlu0 %v312_v14  ;;  %316 = vadd.xlane.f32.xlu1 %v315_v15 }
  0x9f   : > { %v296_v16 = vpop.xlane.xlu0 %295  ;;  %v302_v17 = vpop.xlane.xlu1 %301 }
  0xa0   : > { %v319_v18 = vmul.f32 0.03125, %v296_v16  ;;  %v321_v19 = vmul.f32 0.03125, %v302_v17 }
  0xa2   : > { %v1197_v20 = vsub.f32 %v1164_v0, %v319_v18  ;;  %v1200_v21 = vsub.f32 %v1166_v1, %v321_v19 }
  0xa3   : > { %v299_v22 = vpop.xlane.xlu0 %298  ;;  %v305_v23 = vpop.xlane.xlu1 %304 }
  0xa4   : > { %v320_v24 = vmul.f32 0.03125, %v299_v22  ;;  %v322_v25 = vmul.f32 0.03125, %v305_v23  ;;  %v335_v26 = vmul.f32 %v1197_v20, %v1197_v20  ;;  %v337_v27 = vmul.f32 %v1200_v21, %v1200_v21 }
  0xa6   : > { %v1207_v28 = vsub.f32 %v1168_v2, %v320_v24  ;;  %v1210_v29 = vsub.f32 %v1174_v5, %v322_v25  ;;  %v343_v30 = vsel %vm293_vm0, %v335_v26, 0.0  ;;  %v349_v33 = vsel %vm293_vm0, %v337_v27, 0.0 }
  0xa7   : > { %344 = vadd.xlane.f32.xlu0 %v343_v30  ;;  %v308_v31 = vpop.xlane.xlu0 %307  ;;  %v311_v32 = vpop.xlane.xlu1 %310 }
  0xa8   : > { %v323_v34 = vmul.f32 0.03125, %v308_v31  ;;  %v324_v35 = vmul.f32 0.03125, %v311_v32  ;;  %v336_v36 = vmul.f32 %v1207_v28, %v1207_v28  ;;  %v338_v37 = vmul.f32 %v1210_v29, %v1210_v29  ;;  %v960_v31 = vld [vmem:[%s1452_s1] ss:$0 sm:$0xff] }
  0xaa   : > { %v1219_v38 = vsub.f32 %v1180_v8, %v323_v34  ;;  %v1222_v39 = vsub.f32 %v1182_v9, %v324_v35  ;;  %v346_v40 = vsel %vm293_vm0, %v336_v36, 0.0  ;;  %v352_v43 = vsel %vm293_vm0, %v338_v37, 0.0 }
  0xab   : > { %350 = vadd.xlane.f32.xlu0 %v349_v33  ;;  %347 = vadd.xlane.f32.xlu1 %v346_v40  ;;  %v314_v41 = vpop.xlane.xlu0 %313  ;;  %v317_v42 = vpop.xlane.xlu1 %316 }
  0xac   : > { %v325_v44 = vmul.f32 0.03125, %v314_v41  ;;  %v326_v45 = vmul.f32 0.03125, %v317_v42  ;;  %v339_v46 = vmul.f32 %v1219_v38, %v1219_v38  ;;  %v340_v47 = vmul.f32 %v1222_v39, %v1222_v39 }
  0xae   : > { %v1231_v48 = vsub.f32 %v1188_v12, %v325_v44  ;;  %v1234_v49 = vsub.f32 %v1190_v13, %v326_v45  ;;  %v355_v50 = vsel %vm293_vm0, %v339_v46, 0.0  ;;  %v358_v51 = vsel %vm293_vm0, %v340_v47, 0.0 }
  0xaf   : > { %353 = vadd.xlane.f32.xlu1 %v352_v43  ;;  %356 = vadd.xlane.f32.xlu0 %v355_v50 }
  0xb0   : > { %v341_v52 = vmul.f32 %v1231_v48, %v1231_v48  ;;  %v342_v53 = vmul.f32 %v1234_v49, %v1234_v49 }
  0xb2   : > { %v361_v54 = vsel %vm293_vm0, %v341_v52, 0.0  ;;  %v364_v55 = vsel %vm293_vm0, %v342_v53, 0.0 }
  0xb3   : > { %359 = vadd.xlane.f32.xlu1 %v358_v51  ;;  %362 = vadd.xlane.f32.xlu0 %v361_v54 }
  0xb7   : > { %365 = vadd.xlane.f32.xlu1 %v364_v55 }
 0x134   : > { %v345_v58 = vpop.xlane.xlu0 %344 }
 0x135   : > { %v367_v59 = vmul.f32 0.03125, %v345_v58 }
 0x137   : > { %v375_v60 = vadd.f32 1e-05, %v367_v59 }
 0x138   : > { %v348_v61 = vpop.xlane.xlu1 %347  ;;  %v351_v62 = vpop.xlane.xlu0 %350 }
 0x139   : > { %1052 = vrsqrt.f32 %v375_v60  ;;  %v368_v63 = vmul.f32 0.03125, %v348_v61  ;;  %v369_v3 = vmul.f32 0.03125, %v351_v62 }
 0x13b   : > { %v376_v4 = vadd.f32 1e-05, %v368_v63  ;;  %v377_v6 = vadd.f32 1e-05, %v369_v3 }
 0x13c   : > { %v354_v7 = vpop.xlane.xlu1 %353  ;;  %v357_v10 = vpop.xlane.xlu0 %356 }
 0x13d   : > { %1054 = vrsqrt.f32 %v376_v4  ;;  %v370_v11 = vmul.f32 0.03125, %v354_v7  ;;  %v371_v14 = vmul.f32 0.03125, %v357_v10  ;;  %v1047_v7 = vld [vmem:[%s1456_s5 + $0x18] sm:$0xff]   ;;  %v1048_v10 = vld [vmem:[%s1456_s5 + $0x20] sm:$0xff]  }
 0x13e   : > { %1056 = vrsqrt.f32 %v377_v6  ;;  %v1046_v6 = vld [vmem:[%s1456_s5 + $0x10] sm:$0xff]  }
 0x13f   : > { %v378_v15 = vadd.f32 1e-05, %v370_v11  ;;  %v379_v16 = vadd.f32 1e-05, %v371_v14  ;;  %v1049_v11 = vld [vmem:[%s1456_s5 + $0x28] sm:$0xff]   ;;  %v1050_v14 = vld [vmem:[%s1456_s5 + $0x30] sm:$0xff]  }
 0x140   : > { %v360_v17 = vpop.xlane.xlu1 %359  ;;  %v363_v18 = vpop.xlane.xlu0 %362 }
 0x141   : > { %1058 = vrsqrt.f32 %v378_v15  ;;  %v372_v19 = vmul.f32 0.03125, %v360_v17  ;;  %v373_v22 = vmul.f32 0.03125, %v363_v18  ;;  %v1051_v15 = vld [vmem:[%s1456_s5 + $0x38] sm:$0xff]  }
 0x142   : > { %1060 = vrsqrt.f32 %v379_v16  ;;  %v962_v16 = vld [vmem:[%s1455_s4] ss:$0 sm:$0xff] }
 0x143   : > { %v1053_v23 = vpop.eup %1052  ;;  %v380_v24 = vadd.f32 1e-05, %v372_v19  ;;  %v381_v25 = vadd.f32 1e-05, %v373_v22 }
 0x144   : > { %v366_v26 = vpop.xlane.xlu1 %365  ;;  %v391_v27 = vmul.f32 %v1053_v23, %v1197_v20  ;;  %v961_v20 = vld [vmem:[%s1453_s2] ss:$0 sm:$0xff] }
 0x145   : > { %1062 = vrsqrt.f32 %v380_v24  ;;  %v374_v30 = vmul.f32 0.03125, %v366_v26 }
 0x146   : > { %1064 = vrsqrt.f32 %v381_v25  ;;  %v405_v36 = vmul.f32 %v960_v31, %v391_v27 }
 0x147   : > { %v1055_v32 = vpop.eup %1054  ;;  %v382_v33 = vadd.f32 1e-05, %v374_v30 }
 0x148   : > { %v1057_v34 = vpop.eup %1056  ;;  %v392_v35 = vmul.f32 %v1055_v32, %v1207_v28  ;;  %v419_v44 = vadd.f32 %v961_v20, %v405_v36 }
 0x149   : > { %v393_v37 = vmul.f32 %v1057_v34, %v1200_v21  ;;  %1066 = vrsqrt.f32 %v382_v33 }
 0x14a   : > { %v406_v40 = vmul.f32 %v960_v31, %v392_v35 }
 0x14b   : > { %v1059_v41 = vpop.eup %1058  ;;  %v407_v46 = vmul.f32 %v960_v31, %v393_v37 }
 0x14c   : > { %v1061_v42 = vpop.eup %1060  ;;  %v394_v43 = vmul.f32 %v1059_v41, %v1210_v29  ;;  %v420_v45 = vadd.f32 %v961_v20, %v406_v40 }
 0x14d   : > { %v395_v47 = vmul.f32 %v1061_v42, %v1219_v38  ;;  %v421_v53 = vadd.f32 %v961_v20, %v407_v46 }
 0x14e   : > { %v427_v50 = vpack.c.bf16 %v420_v45, %v419_v44  ;;  %v408_v28 = vmul.f32 %v960_v31, %v394_v43 }
 0x14f   : > { %v1063_v51 = vpop.eup %1062  ;;  %v409_v55 = vmul.f32 %v960_v31, %v395_v47 }
 0x150   : > { %v1065_v52 = vpop.eup %1064  ;;  %v396_v21 = vmul.f32 %v1063_v51, %v1222_v39  ;;  %1002 = vmatprep.mubr.msk.bf16.mxu0 %vm293_vm0, %v427_v50  ;;  %v422_v54 = vadd.f32 %v961_v20, %v408_v28 }
 0x151   : > { %v397_v56 = vmul.f32 %v1065_v52, %v1231_v48  ;;  %v423_v38 = vadd.f32 %v961_v20, %v409_v55  ;;  %v1044_v48 = vld [vmem:[%s1456_s5] sm:$0xff]  }
 0x152   : > { %v428_v57 = vpack.c.bf16 %v422_v54, %v421_v53  ;;  %v410_v29 = vmul.f32 %v960_v31, %v396_v21  ;;  %1010 = vmatprep.subr.bf16.mxu1 %v1044_v48 }
 0x153   : > { %v1067_v58 = vpop.eup %1066  ;;  %v411_v61 = vmul.f32 %v960_v31, %v397_v56  ;;  %1011 = vmatpush3.bf16.msra.mxu1 %v1044_v48 }
 0x154   : > { %v398_v59 = vmul.f32 %v1067_v58, %v1234_v49  ;;  %1003 = vmatmul.mubr.msk.bf16.vlgmr.msra.gmra.mrb[0].mxu0 %vm293_vm0, %v428_v57  ;;  %v424_v60 = vadd.f32 %v961_v20, %v410_v29  ;;  %v1045_v49 = vld [vmem:[%s1456_s5 + $0x8] sm:$0xff]  }
 0x155   : > { %v425_v39 = vadd.f32 %v961_v20, %v411_v61  ;;  %1012 = vmatprep.subr.bf16.mxu1 %v1045_v49 }
 0x156   : > { %v429_v62 = vpack.c.bf16 %v424_v60, %v423_v38  ;;  %v412_v63 = vmul.f32 %v960_v31, %v398_v59 }
 0x157   : > { %1013 = vmatpush3.bf16.msra.mxu1 %v1045_v49 }
 0x158   : > { %1006 = vmatprep.mubr.msk.bf16.mxu0 %vm293_vm0, %v429_v62  ;;  %v426_v3 = vadd.f32 %v961_v20, %v412_v63  ;;  %1014 = vmatprep.subr.bf16.mxu1 %v1046_v6 }
 0x15a   : > { %v430_v4 = vpack.c.bf16 %v426_v3, %v425_v39 }
 0x15b   : > { %1015 = vmatpush3.bf16.msra.mxu1 %v1046_v6 }
 0x15c   : > { %1007 = vmatmul.mubr.msk.bf16.gmra.mrb[4].mxu0 %vm293_vm0, %v430_v4  ;;  %1016 = vmatprep.subr.bf16.mxu1 %v1047_v7 }
 0x15f   : > { %1017 = vmatpush3.bf16.msra.mxu1 %v1047_v7 }
 0x160   : > { %1018 = vmatprep.subr.bf16.mxu1 %v1048_v10 }
 0x163   : > { %1019 = vmatpush3.bf16.msra.mxu1 %v1048_v10 }
 0x164   : > { %1020 = vmatprep.subr.bf16.mxu1 %v1049_v11 }
 0x167   : > { %1021 = vmatpush3.bf16.msra.mxu1 %v1049_v11 }
 0x168   : > { %1022 = vmatprep.subr.bf16.mxu1 %v1050_v14 }
 0x16b   : > { %1023 = vmatpush3.bf16.msra.mxu1 %v1050_v14 }
 0x16c   : > { %1024 = vmatprep.subr.bf16.mxu1 %v1051_v15 }
 0x16f   : > { %1025 = vmatpush3.bf16.msra.mxu1 %v1051_v15 }
 0x227   : > { %v1004_v17 = vpop.f32.mrb[0].mxu0 }
 0x228   : > { %v509_v18 = vadd.f32 %v1004_v17, %v962_v16  ;;  %v500_v19 = vpop.f32.mrb[1].mxu0 }
 0x229   : > { %v501_v22 = vadd.f32 %v962_v16, %v500_v19  ;;  %v1005_v23 = vpop.f32.mrb[2].mxu0 }
 0x22a   : > { %v1295_v24 = vmul.f32 0.70710677, %v509_v18  ;;  %v1297_v25 = vadd.f32 %v1005_v23, %v962_v16  ;;  %v503_v26 = vpop.f32.mrb[3].mxu0  ;;  %v1336_v39 = vmul.f32 0.5, %v509_v18 }
 0x22b   : > { %v1299_v27 = vmul.f32 0.70710677, %v501_v22  ;;  %v1301_v30 = vadd.f32 %v962_v16, %v503_v26  ;;  %v1340_v6 = vmul.f32 0.5, %v501_v22 }
 0x22c   : > { %v549_v31 = vand.u32 2147483647, %v1295_v24  ;;  %v1305_v32 = vmul.f32 0.70710677, %v1297_v25  ;;  %vm701_vm1 = vcmp.ge.f32.partialorder %v1295_v24, 0.0 }
 0x22d   : > { %v547_v33 = vand.u32 2147483647, %v1299_v27  ;;  %v1309_v34 = vmul.f32 0.70710677, %v1301_v30  ;;  %vm699_vm2 = vcmp.ge.f32.partialorder %v1299_v27, 0.0  ;;  %v532_v27 = vmul.f32 0.5, %v1301_v30 }
 0x22e   : > { %v557_v35 = vmul.f32 0.3275911, %v549_v31  ;;  %v550_v36 = vand.u32 2147483647, %v1305_v32  ;;  %v653_v21 = vsub.f32 0.0, %v549_v31  ;;  %vm702_vm3 = vcmp.ge.f32.partialorder %v1305_v32, 0.0 }
 0x22f   : > { %v555_v37 = vmul.f32 0.3275911, %v547_v33  ;;  %v548_v20 = vand.u32 2147483647, %v1309_v34  ;;  %v1008_v42 = vpop.f32.mrb[4].mxu0  ;;  %v651_v29 = vsub.f32 0.0, %v547_v33 }
 0x230   : > { %v565_v40 = vadd.f32 1.0, %v557_v35  ;;  %v558_v41 = vmul.f32 0.3275911, %v550_v36  ;;  %v516_v45 = vpop.f32.mrb[5].mxu0  ;;  %v1313_v51 = vadd.f32 %v1008_v42, %v962_v16  ;;  %v661_v59 = vmul.f32 %v653_v21, %v549_v31 }
 0x231   : > { %v563_v43 = vadd.f32 1.0, %v555_v37  ;;  %v556_v44 = vmul.f32 0.3275911, %v548_v20  ;;  %v1009_v47 = vpop.f32.mrb[6].mxu0  ;;  %v1315_v52 = vadd.f32 %v962_v16, %v516_v45  ;;  %v654_v38 = vsub.f32 0.0, %v550_v36 }
 0x232   : > { %1068 = vrcp.f32 %v565_v40  ;;  %v566_v46 = vadd.f32 1.0, %v558_v41  ;;  %v519_v50 = vpop.f32.mrb[7].mxu0  ;;  %v1317_v53 = vadd.f32 %v1009_v47, %v962_v16  ;;  %v1320_v54 = vmul.f32 0.70710677, %v1313_v51 }
 0x233   : > { %1070 = vrcp.f32 %v563_v43  ;;  %v564_v28 = vadd.f32 1.0, %v556_v44  ;;  %v1322_v55 = vadd.f32 %v962_v16, %v519_v50  ;;  %v1325_v56 = vmul.f32 0.70710677, %v1315_v52 }
 0x234   : > { %1072 = vrcp.f32 %v566_v46  ;;  %v1328_v57 = vmul.f32 0.70710677, %v1317_v53  ;;  %v553_v58 = vand.u32 2147483647, %v1320_v54  ;;  %v652_v3 = vsub.f32 0.0, %v548_v20 }
 0x235   : > { %1074 = vrcp.f32 %v564_v28  ;;  %v551_v60 = vand.u32 2147483647, %v1325_v56  ;;  %v1334_v63 = vmul.f32 0.70710677, %v1322_v55  ;;  %v659_v7 = vmul.f32 %v651_v29, %v547_v33 }
 0x236   : > { %v554_v61 = vand.u32 2147483647, %v1328_v57  ;;  %v561_v62 = vmul.f32 0.3275911, %v553_v58  ;;  %v671_v16 = vmul.f32 1.442695, %v661_v59  ;;  %v662_v17 = vmul.f32 %v654_v38, %v550_v36 }
 0x237   : > { %v559_v4 = vmul.f32 0.3275911, %v551_v60  ;;  %v552_v11 = vand.u32 2147483647, %v1334_v63  ;;  %v657_v18 = vsub.f32 0.0, %v553_v58  ;;  %v660_v35 = vmul.f32 %v652_v3, %v548_v20 }
 0x238   : > { %v562_v48 = vmul.f32 0.3275911, %v554_v61  ;;  %v569_v10 = vadd.f32 1.0, %v561_v62  ;;  %v655_v22 = vsub.f32 0.0, %v551_v60  ;;  %v667_v33 = vmul.f32 1.442695, %v659_v7 }
 0x239   : > { %v567_v19 = vadd.f32 1.0, %v559_v4  ;;  %v560_v26 = vmul.f32 0.3275911, %v552_v11  ;;  %v658_v40 = vsub.f32 0.0, %v554_v61  ;;  %v656_v44 = vsub.f32 0.0, %v552_v11 }
 0x23a   : > { %1076 = vrcp.f32 %v569_v10  ;;  %v570_v23 = vadd.f32 1.0, %v562_v48  ;;  %v673_v46 = vmul.f32 1.442695, %v662_v17  ;;  %v665_v47 = vmul.f32 %v657_v18, %v553_v58 }
 0x23b   : > { %1078 = vrcp.f32 %v567_v19  ;;  %v568_v41 = vadd.f32 1.0, %v560_v26  ;;  %v669_v21 = vmul.f32 1.442695, %v660_v35  ;;  %v663_v29 = vmul.f32 %v655_v22, %v551_v60 }
 0x23c   : > { %v1338_v49 = vpop.eup %1068  ;;  %1080 = vpow2.f32 %v671_v16  ;;  %v666_v59 = vmul.f32 %v658_v40, %v554_v61  ;;  %v1357_v4 = vmul.f32 0.5, %v1297_v25  ;;  %v664_v58 = vmul.f32 %v656_v44, %v552_v11 }
 0x23d   : > { %v1343_v14 = vpop.eup %1070  ;;  %v581_v15 = vmul.f32 1.0614054, %v1338_v49  ;;  %1082 = vrcp.f32 %v570_v23  ;;  %v679_v7 = vmul.f32 1.442695, %v665_v47  ;;  %v675_v61 = vmul.f32 1.442695, %v663_v29 }
 0x23e   : > { %v1346_v37 = vpop.eup %1072  ;;  %v579_v42 = vmul.f32 1.0614054, %v1343_v14  ;;  %1084 = vrcp.f32 %v568_v41  ;;  %v681_v19 = vmul.f32 1.442695, %v666_v59  ;;  %v677_v35 = vmul.f32 1.442695, %v664_v58 }
 0x23f   : > { %v589_v31 = vadd.f32 -1.4531521, %v581_v15  ;;  %v582_v36 = vmul.f32 1.0614054, %v1346_v37  ;;  %v1351_v45 = vpop.eup %1074  ;;  %1086 = vpow2.f32 %v667_v33  ;;  %vm700_vm4 = vcmp.ge.f32.partialorder %v1309_v34, 0.0 }
 0x240   : > { %v587_v20 = vadd.f32 -1.4531521, %v579_v42  ;;  %v580_v38 = vmul.f32 1.0614054, %v1351_v45  ;;  %1088 = vpow2.f32 %v673_v46  ;;  %vm705_vm5 = vcmp.ge.f32.partialorder %v1320_v54, 0.0 }
 0x241   : > { %v597_v43 = vmul.f32 %v1338_v49, %v589_v31  ;;  %v590_v28 = vadd.f32 -1.4531521, %v582_v36  ;;  %1090 = vpow2.f32 %v669_v21  ;;  %vm703_vm6 = vcmp.ge.f32.partialorder %v1325_v56, 0.0 }
 0x242   : > { %v595_v62 = vmul.f32 %v1343_v14, %v587_v20  ;;  %v588_v10 = vadd.f32 -1.4531521, %v580_v38  ;;  %1092 = vpow2.f32 %v679_v7  ;;  %vm706_vm7 = vcmp.ge.f32.partialorder %v1328_v57, 0.0 }
 0x243   : > { %v605_v50 = vadd.f32 1.4214138, %v597_v43  ;;  %v598_v48 = vmul.f32 %v1346_v37, %v590_v28  ;;  %1094 = vpow2.f32 %v675_v61  ;;  %v537_v54 = vmul.f32 0.5, %v1313_v51 }
 0x244   : > { %v603_v15 = vadd.f32 1.4214138, %v595_v62  ;;  %v1360_v17 = vpop.eup %1076  ;;  %v596_v18 = vmul.f32 %v1351_v45, %v588_v10  ;;  %1096 = vpow2.f32 %v681_v19  ;;  %vm704_vm8 = vcmp.ge.f32.partialorder %v1334_v63, 0.0 }
 0x245   : > { %v613_v3 = vmul.f32 %v1338_v49, %v605_v50  ;;  %v606_v60 = vadd.f32 1.4214138, %v598_v48  ;;  %v1364_v23 = vpop.eup %1078  ;;  %v585_v31 = vmul.f32 1.0614054, %v1360_v17  ;;  %1098 = vpow2.f32 %v677_v35 }
 0x246   : > { %v611_v25 = vmul.f32 %v1343_v14, %v603_v15  ;;  %v583_v22 = vmul.f32 1.0614054, %v1364_v23  ;;  %v604_v33 = vadd.f32 1.4214138, %v596_v18  ;;  %v1081_v41 = vpop.eup %1080  ;;  %v536_v57 = vmul.f32 0.5, %v1322_v55 }
 0x247   : > { %v621_v16 = vadd.f32 -0.28449672, %v613_v3  ;;  %v614_v26 = vmul.f32 %v1346_v37, %v606_v60  ;;  %v593_v36 = vadd.f32 -1.4531521, %v585_v31  ;;  %v1370_v44 = vpop.eup %1082 }
 0x248   : > { %v619_v40 = vadd.f32 -0.28449672, %v611_v25  ;;  %v591_v46 = vadd.f32 -1.4531521, %v583_v22  ;;  %v612_v47 = vmul.f32 %v1351_v45, %v604_v33  ;;  %v586_v29 = vmul.f32 1.0614054, %v1370_v44  ;;  %v1379_v59 = vpop.eup %1084 }
 0x249   : > { %v629_v11 = vmul.f32 %v1338_v49, %v621_v16  ;;  %v622_v43 = vadd.f32 -0.28449672, %v614_v26  ;;  %v601_v21 = vmul.f32 %v1360_v17, %v593_v36  ;;  %v1087_v15 = vpop.eup %1086  ;;  %v584_v16 = vmul.f32 1.0614054, %v1379_v59 }
 0x24a   : > { %v627_v20 = vmul.f32 %v1343_v14, %v619_v40  ;;  %v599_v38 = vmul.f32 %v1364_v23, %v591_v46  ;;  %v620_v62 = vadd.f32 -0.28449672, %v612_v47  ;;  %v594_v10 = vadd.f32 -1.4531521, %v586_v29  ;;  %v1089_v19 = vpop.eup %1088 }
 0x24b   : > { %v637_v42 = vadd.f32 0.2548296, %v629_v11  ;;  %v630_v28 = vmul.f32 %v1346_v37, %v622_v43  ;;  %v609_v7 = vadd.f32 1.4214138, %v601_v21  ;;  %v1091_v31 = vpop.eup %1090  ;;  %v592_v22 = vadd.f32 -1.4531521, %v584_v16 }
 0x24c   : > { %v635_v3 = vadd.f32 0.2548296, %v627_v20  ;;  %v628_v60 = vmul.f32 %v1351_v45, %v620_v62  ;;  %v602_v26 = vmul.f32 %v1370_v44, %v594_v10  ;;  %v1093_v46 = vpop.eup %1092 }
 0x24d   : > { %v645_v50 = vmul.f32 %v1338_v49, %v637_v42  ;;  %v638_v58 = vadd.f32 0.2548296, %v630_v28  ;;  %v607_v49 = vadd.f32 1.4214138, %v599_v38  ;;  %v617_v11 = vmul.f32 %v1360_v17, %v609_v7 }
 0x24e   : > { %v643_v61 = vmul.f32 %v1343_v14, %v635_v3  ;;  %v636_v33 = vadd.f32 0.2548296, %v628_v60  ;;  %v610_v36 = vadd.f32 1.4214138, %v602_v26  ;;  %v600_v47 = vmul.f32 %v1379_v59, %v592_v22 }
 0x24f   : > { %v685_v48 = vmul.f32 %v1081_v41, %v645_v50  ;;  %v646_v25 = vmul.f32 %v1346_v37, %v638_v58  ;;  %v615_v35 = vmul.f32 %v1364_v23, %v607_v49  ;;  %v625_v43 = vadd.f32 -0.28449672, %v617_v11  ;;  %v1095_v50 = vpop.eup %1094 }
 0x250   : > { %v683_v40 = vmul.f32 %v1087_v15, %v643_v61  ;;  %v644_v37 = vmul.f32 %v1351_v45, %v636_v33  ;;  %v618_v38 = vmul.f32 %v1370_v44, %v610_v36  ;;  %v1097_v62 = vpop.eup %1096  ;;  %v608_v58 = vadd.f32 1.4214138, %v600_v47 }
 0x251   : > { %v693_v18 = vsub.f32 1.0, %v685_v48  ;;  %v686_v42 = vmul.f32 %v1089_v19, %v646_v25  ;;  %v623_v14 = vadd.f32 -0.28449672, %v615_v35  ;;  %v633_v29 = vmul.f32 %v1360_v17, %v625_v43  ;;  %v1099_v16 = vpop.eup %1098 }
 0x252   : > { %v691_v20 = vsub.f32 1.0, %v683_v40  ;;  %v684_v7 = vmul.f32 %v1091_v31, %v644_v37  ;;  %v626_v49 = vadd.f32 -0.28449672, %v618_v38  ;;  %v616_v60 = vmul.f32 %v1379_v59, %v608_v58 }
 0x253   : > { %v709_v41 = vsub.f32 0.0, %v693_v18  ;;  %v694_v21 = vsub.f32 1.0, %v686_v42  ;;  %v631_v48 = vmul.f32 %v1364_v23, %v623_v14  ;;  %v641_v15 = vadd.f32 0.2548296, %v633_v29 }
 0x254   : > { %v707_v45 = vsub.f32 0.0, %v691_v20  ;;  %v692_v61 = vsub.f32 1.0, %v684_v7  ;;  %v634_v25 = vmul.f32 %v1370_v44, %v626_v49  ;;  %v624_v35 = vadd.f32 -0.28449672, %v616_v60 }
 0x255   : > { %v717_v28 = vsel %vm701_vm1, %v693_v18, %v709_v41  ;;  %v710_v10 = vsub.f32 0.0, %v694_v21  ;;  %v639_v24 = vadd.f32 0.2548296, %v631_v48  ;;  %v649_v18 = vmul.f32 %v1360_v17, %v641_v15 }
 0x256   : > { %v725_v3 = vadd.f32 1.0, %v717_v28  ;;  %v715_v11 = vsel %vm699_vm2, %v691_v20, %v707_v45  ;;  %v708_v22 = vsub.f32 0.0, %v692_v61  ;;  %v642_v41 = vadd.f32 0.2548296, %v634_v25 }
 0x257   : > { %v718_v19 = vsel %vm702_vm3, %v694_v21, %v710_v10  ;;  %v647_v31 = vmul.f32 %v1364_v23, %v639_v24  ;;  %v689_v40 = vmul.f32 %v1093_v46, %v649_v18  ;;  %v723_v42 = vadd.f32 1.0, %v715_v11 }
 0x258   : > { %v726_v26 = vadd.f32 1.0, %v718_v19  ;;  %v733_v33 = vmul.f32 %v725_v3, %v1336_v39  ;;  %v632_v17 = vmul.f32 %v1379_v59, %v624_v35  ;;  %v716_v36 = vsel %vm700_vm4, %v692_v61, %v708_v22 }
 0x259   : > { %v687_v43 = vmul.f32 %v1095_v50, %v647_v31  ;;  %v697_v14 = vsub.f32 1.0, %v689_v40  ;;  %v650_v23 = vmul.f32 %v1370_v44, %v642_v41  ;;  %v724_v47 = vadd.f32 1.0, %v716_v36 }
 0x25a   : > { %v734_v32 = vmul.f32 %v726_v26, %v1357_v4  ;;  %v640_v20 = vadd.f32 0.2548296, %v632_v17  ;;  %v731_v21 = vmul.f32 %v723_v42, %v1340_v6  ;;  %v538_v7 = vmul.f32 0.5, %v1317_v53  ;;  %v969_v53 = vld [vmem:[%s1457_s6] ss:$0 sm:$0xff] }
 0x25b   : > { %v695_v37 = vsub.f32 1.0, %v687_v43  ;;  %v713_v46 = vsub.f32 0.0, %v697_v14  ;;  %v690_v28 = vmul.f32 %v1097_v62, %v650_v23  ;;  %v732_v4 = vmul.f32 %v724_v47, %v532_v27 }
 0x25c   : > { %v740_v39 = vpack.c.bf16 %v734_v32, %v733_v33  ;;  %v648_v34 = vmul.f32 %v1379_v59, %v640_v20 }
 0x25d   : > { %v711_v50 = vsub.f32 0.0, %v695_v37  ;;  %v721_v29 = vsel %vm705_vm5, %v697_v14, %v713_v46  ;;  %v698_v38 = vsub.f32 1.0, %v690_v28  ;;  %v739_v30 = vpack.c.bf16 %v732_v4, %v731_v21 }
 0x25e   : > { %v688_v3 = vmul.f32 %v1099_v16, %v648_v34  ;;  %v729_v48 = vadd.f32 1.0, %v721_v29  ;;  %v535_v16 = vmul.f32 0.5, %v1315_v52 }
 0x25f   : > { %v714_v44 = vsub.f32 0.0, %v698_v38  ;;  %1026 = vmatprep.mubr.bf16.mxu1 %v739_v30  ;;  %v719_v58 = vsel %vm703_vm6, %v695_v37, %v711_v50 }
 0x260   : > { %v696_v62 = vsub.f32 1.0, %v688_v3  ;;  %1027 = vmatmul.mubr.bf16.vlgmr.msra.gmra.mrb[0].mxu1 %v740_v39  ;;  %v727_v15 = vadd.f32 1.0, %v719_v58  ;;  %v737_v49 = vmul.f32 %v729_v48, %v537_v54 }
 0x261   : > { %v722_v6 = vsel %vm706_vm7, %v698_v38, %v714_v44 }
 0x262   : > { %v730_v59 = vadd.f32 1.0, %v722_v6  ;;  %v712_v10 = vsub.f32 0.0, %v696_v62  ;;  %v735_v61 = vmul.f32 %v727_v15, %v535_v16 }
 0x264   : > { %v738_v56 = vmul.f32 %v730_v59, %v538_v7  ;;  %v720_v45 = vsel %vm704_vm8, %v696_v62, %v712_v10 }
 0x265   : > { %v728_v24 = vadd.f32 1.0, %v720_v45 }
 0x266   : > { %v742_v60 = vpack.c.bf16 %v738_v56, %v737_v49 }
 0x267   : > { %v736_v19 = vmul.f32 %v728_v24, %v536_v57 }
 0x269   : > { %v741_v51 = vpack.c.bf16 %v736_v19, %v735_v61 }
 0x26b   : > { %1030 = vmatprep.mubr.bf16.mxu1 %v741_v51 }
 0x26c   : > { %1031 = vmatmul.mubr.bf16.gmra.mrb[4].mxu1 %v742_v60 }
 0x333   : > { %v1028_v63 = vpop.f32.mrb[0].mxu1 }
 0x334   : > { %v857_v18 = vadd.f32 %v1028_v63, %v969_v53  ;;  %v848_v25 = vpop.f32.mrb[1].mxu1 }
 0x335   : > { %v849_v52 = vadd.f32 %v969_v53, %v848_v25  ;;  %v1029_v55 = vpop.f32.mrb[2].mxu1 }
 0x336   : > { %v881_v11 = vadd.f32 %v857_v18, %v1166_v1  ;;  %v860_v26 = vadd.f32 %v1029_v55, %v969_v53  ;;  %v851_v31 = vpop.f32.mrb[3].mxu1 }
 0x337   : > { %v879_v35 = vadd.f32 %v849_v52, %v1164_v0  ;;  %v852_v22 = vadd.f32 %v969_v53, %v851_v31 }
 0x338   : > { %889 = vst.msk [vmem:[%s280_s18 + $0x10] sm:$0xff] %vm293_vm0, %v881_v11  ;;  %v882_v33 = vadd.f32 %v860_v26, %v1174_v5 }
 0x339   : > { %887 = vst.msk [vmem:[%s280_s18] sm:$0xff] %vm293_vm0, %v879_v35  ;;  %v880_v40 = vadd.f32 %v852_v22, %v1168_v2 }
 0x33a   : > { %890 = vst.msk [vmem:[%s280_s18 + $0x18] sm:$0xff] %vm293_vm0, %v882_v33 }
 0x33b   : > { %888 = vst.msk [vmem:[%s280_s18 + $0x8] sm:$0xff] %vm293_vm0, %v880_v40 }
 0x33f   : > { %v1032_v41 = vpop.f32.mrb[4].mxu1 }
 0x340   : > { %v873_v42 = vadd.f32 %v1032_v41, %v969_v53  ;;  %v864_v1 = vpop.f32.mrb[5].mxu1 }
 0x341   : > { %v865_v32 = vadd.f32 %v969_v53, %v864_v1  ;;  %v1033_v43 = vpop.f32.mrb[6].mxu1 }
 0x342   : > { %v885_v0 = vadd.f32 %v873_v42, %v1188_v12  ;;  %v876_v17 = vadd.f32 %v1033_v43, %v969_v53  ;;  %v867_v36 = vpop.f32.mrb[7].mxu1 }
 0x343   : > { %v883_v27 = vadd.f32 %v865_v32, %v1180_v8  ;;  %v868_v5 = vadd.f32 %v969_v53, %v867_v36 }
 0x344   : > { %893 = vst.msk [vmem:[%s280_s18 + $0x30] sm:$0xff] %vm293_vm0, %v885_v0  ;;  %v886_v2 = vadd.f32 %v876_v17, %v1190_v13 }
 0x345   : > { %891 = vst.msk [vmem:[%s280_s18 + $0x20] sm:$0xff] %vm293_vm0, %v883_v27  ;;  %v884_v14 = vadd.f32 %v868_v5, %v1182_v9 }
 0x346   : > { %894 = vst.msk [vmem:[%s280_s18 + $0x38] sm:$0xff] %vm293_vm0, %v886_v2 }
 0x347   : > { %892 = vst.msk [vmem:[%s280_s18 + $0x28] sm:$0xff] %vm293_vm0, %v884_v14 }
 0x348 PF: > { %s17_s24 = sadd.s32 1, %s1106_s24  }
 0x349   : > { %p14_p4 = scmp.ge.s32.totalorder %s17_s24, 4  }
 0x34b   :  { %16 = sbr.rel (!%p14_p4) target bundleno = 1 (0x1), region = 78 }

// kernel: video_processor_forward.12
= control target key start
LH: loop header
LB: loop body
LE: loop exit
PB: predicated region body
PF: predicated region fallthrough
CT: control target
= control target key end

     0   :  { %s2173_s27 = smov 0   ;;  %s2583_s0 = inlined_call_operand.vmem [shape: f32[2,64,32], index: 0, kind: input, shape index: {}]   ;;  %s2584_s1 = inlined_call_operand.vmem [shape: f32[1,32], index: 1, kind: input, shape index: {}]   ;;  %s2585_s2 = inlined_call_operand.vmem [shape: f32[1,32], index: 2, kind: input, shape index: {}]   ;;  %s2586_s3 = inlined_call_operand.vmem [shape: bf16[32,96], index: 3, kind: input, shape index: {}]   ;;  %s2587_s4 = inlined_call_operand.vmem [shape: f32[1,96], index: 4, kind: input, shape index: {}]   ;;  %s2588_s5 = inlined_call_operand.vmem [shape: f32[2,1,16,16], index: 5, kind: input, shape index: {}]   ;;  %s2589_s6 = inlined_call_operand.vmem [shape: bf16[32,32], index: 6, kind: input, shape index: {}]   ;;  %s2590_s7 = inlined_call_operand.vmem [shape: f32[1,32], index: 7, kind: input, shape index: {}]   ;;  %s2591_s8 = inlined_call_operand.vmem [shape: f32[2,64,32], index: 8, kind: output, shape index: {}]  }
   0x1 LB: > { %s1775_s28 = sadd.s32 4294967295, %s2120_s27   ;;  %p1779_p0 = scmp.ge.s32.totalorder %s2120_s27, 1  ;;  %s2120_s27 = sphi %s2173_s27, %s18_s27  }
   0x2   : > { %p262_p1 = scmp.lt.s32.totalorder %s2120_s27, 3 }
   0x4   : > { %p263_p2 = pnand %p1779_p0, %p262_p1 }
   0x5   : > { %p296_p3 = scmp.lt.s32.totalorder (!%p263_p2), %s1775_s28, 1  ;;  %vm317_vm0 = vcmask (!%p263_p2), 261120   ;;  %v2022_v56 = vld [vmem:[%s2586_s3] sm:$0xff] (!%p263_p2)   ;;  %v2023_v57 = vld [vmem:[%s2586_s3 + $0x8] sm:$0xff] (!%p263_p2)   ;;  %vm2123_vm1 = vmmov (!%p263_p2), 0   ;;  %s2124_s21 = smov (!%p263_p2), 112  }
   0x6   : > { %266 = sbr.rel (%p263_p2) target bundleno = 1751 (0x6d7), region = 52  ;;  %1864 = vmatprep.subr.bf16.mxu0 (!%p263_p2), %v2022_v56  ;;  %1984 = vmatprep.subr.bf16.mxu1 (!%p263_p2), %v2022_v56  ;;  %s2125_s22 = smov (!%p263_p2), 96   ;;  %vm573_vm2 = vcmask (!%p263_p2), 130048  }
   0x7   : > { %1865 = vmatpush3.bf16.msra.mxu0 (!%p263_p2), %v2022_v56  ;;  %1986 = vmatpush3.bf16.msra.mxu1 (!%p263_p2), %v2022_v56  ;;  %s2126_s23 = smov (!%p263_p2), 64   ;;  %s2127_s18 = smov (!%p263_p2), 16  }
   0x8   : > { %1866 = vmatprep.subr.bf16.mxu0 (!%p263_p2), %v2023_v57  ;;  %1985 = vmatprep.subr.bf16.mxu1 (!%p263_p2), %v2023_v57 }
   0xb   : > { %1867 = vmatpush3.bf16.msra.mxu0 (!%p263_p2), %v2023_v57  ;;  %1987 = vmatpush3.bf16.msra.mxu1 (!%p263_p2), %v2023_v57 }
   0xd   : > { %s2593_s28 = smov (!%p296_p3, %s1775_s28), 1 }
   0xe   : > { %s1818_s29 = sshll.u32 %s2593_s28, 6 }
   0xf   : > { %s2189_s10 = scalar_lea.vmem %s2583_s0, %s1818_s29 }
  0x10   : > { %v307_v0 = vld [vmem:[%s2189_s10] sm:$0xff]  ;;  %v309_v1 = vld [vmem:[%s2189_s10 + $0x10] sm:$0xff]  ;;  %v308_v2 = vld [vmem:[%s2189_s10 + $0x8] sm:$0xff] }
  0x11   : > { %v318_v3 = vsel %vm317_vm0, %v307_v0, 0.0  ;;  %v324_v4 = vsel %vm317_vm0, %v309_v1, 0.0  ;;  %v310_v5 = vld [vmem:[%s2189_s10 + $0x18] sm:$0xff]  ;;  %v321_v6 = vsel %vm317_vm0, %v308_v2, 0.0  ;;  %v311_v8 = vld [vmem:[%s2189_s10 + $0x20] sm:$0xff]  ;;  %v312_v9 = vld [vmem:[%s2189_s10 + $0x28] sm:$0xff] }
  0x12   : > { %319 = vadd.xlane.f32.xlu0 %v318_v3  ;;  %325 = vadd.xlane.f32.xlu1 %v324_v4  ;;  %v327_v7 = vsel %vm317_vm0, %v310_v5, 0.0  ;;  %v330_v10 = vsel %vm317_vm0, %v311_v8, 0.0  ;;  %v333_v11 = vsel %vm317_vm0, %v312_v9, 0.0  ;;  %v313_v12 = vld [vmem:[%s2189_s10 + $0x30] sm:$0xff]  ;;  %v314_v13 = vld [vmem:[%s2189_s10 + $0x38] sm:$0xff] }
  0x13   : > { %v336_v14 = vsel %vm317_vm0, %v313_v12, 0.0  ;;  %v339_v15 = vsel %vm317_vm0, %v314_v13, 0.0 }
  0x16   : > { %322 = vadd.xlane.f32.xlu0 %v321_v6  ;;  %328 = vadd.xlane.f32.xlu1 %v327_v7 }
  0x1a   : > { %331 = vadd.xlane.f32.xlu0 %v330_v10  ;;  %334 = vadd.xlane.f32.xlu1 %v333_v11 }
  0x1e   : > { %337 = vadd.xlane.f32.xlu0 %v336_v14  ;;  %340 = vadd.xlane.f32.xlu1 %v339_v15 }
  0x9f   : > { %v320_v16 = vpop.xlane.xlu0 %319  ;;  %v326_v17 = vpop.xlane.xlu1 %325 }
  0xa0   : > { %v343_v18 = vmul.f32 0.03125, %v320_v16  ;;  %v345_v19 = vmul.f32 0.03125, %v326_v17 }
  0xa2   : > { %v2207_v20 = vsub.f32 %v307_v0, %v343_v18  ;;  %v2209_v21 = vsub.f32 %v309_v1, %v345_v19  ;;  %v1784_v19 = vld [vmem:[%s2584_s1] ss:$0 sm:$0xff] }
  0xa3   : > { %v323_v22 = vpop.xlane.xlu0 %322  ;;  %v329_v23 = vpop.xlane.xlu1 %328 }
  0xa4   : > { %v344_v24 = vmul.f32 0.03125, %v323_v22  ;;  %v346_v25 = vmul.f32 0.03125, %v329_v23  ;;  %v359_v26 = vmul.f32 %v2207_v20, %v2207_v20  ;;  %v361_v27 = vmul.f32 %v2209_v21, %v2209_v21 }
  0xa6   : > { %v2215_v28 = vsub.f32 %v308_v2, %v344_v24  ;;  %v2217_v29 = vsub.f32 %v310_v5, %v346_v25  ;;  %v367_v30 = vsel %vm317_vm0, %v359_v26, 0.0  ;;  %v373_v33 = vsel %vm317_vm0, %v361_v27, 0.0 }
  0xa7   : > { %368 = vadd.xlane.f32.xlu0 %v367_v30  ;;  %v332_v31 = vpop.xlane.xlu0 %331  ;;  %v335_v32 = vpop.xlane.xlu1 %334 }
  0xa8   : > { %v347_v34 = vmul.f32 0.03125, %v332_v31  ;;  %v348_v35 = vmul.f32 0.03125, %v335_v32  ;;  %v360_v36 = vmul.f32 %v2215_v28, %v2215_v28  ;;  %v362_v37 = vmul.f32 %v2217_v29, %v2217_v29 }
  0xaa   : > { %v2225_v38 = vsub.f32 %v311_v8, %v347_v34  ;;  %v2227_v39 = vsub.f32 %v312_v9, %v348_v35  ;;  %v370_v40 = vsel %vm317_vm0, %v360_v36, 0.0  ;;  %v376_v43 = vsel %vm317_vm0, %v362_v37, 0.0 }
  0xab   : > { %374 = vadd.xlane.f32.xlu0 %v373_v33  ;;  %371 = vadd.xlane.f32.xlu1 %v370_v40  ;;  %v338_v41 = vpop.xlane.xlu0 %337  ;;  %v341_v42 = vpop.xlane.xlu1 %340 }
  0xac   : > { %v349_v44 = vmul.f32 0.03125, %v338_v41  ;;  %v350_v45 = vmul.f32 0.03125, %v341_v42  ;;  %v363_v46 = vmul.f32 %v2225_v38, %v2225_v38  ;;  %v364_v47 = vmul.f32 %v2227_v39, %v2227_v39 }
  0xae   : > { %v2235_v48 = vsub.f32 %v313_v12, %v349_v44  ;;  %v2237_v49 = vsub.f32 %v314_v13, %v350_v45  ;;  %v379_v50 = vsel %vm317_vm0, %v363_v46, 0.0  ;;  %v382_v51 = vsel %vm317_vm0, %v364_v47, 0.0 }
  0xaf   : > { %377 = vadd.xlane.f32.xlu1 %v376_v43  ;;  %380 = vadd.xlane.f32.xlu0 %v379_v50 }
  0xb0   : > { %v365_v52 = vmul.f32 %v2235_v48, %v2235_v48  ;;  %v366_v53 = vmul.f32 %v2237_v49, %v2237_v49 }
  0xb2   : > { %v385_v54 = vsel %vm317_vm0, %v365_v52, 0.0  ;;  %v388_v55 = vsel %vm317_vm0, %v366_v53, 0.0 }
  0xb3   : > { %383 = vadd.xlane.f32.xlu1 %v382_v51  ;;  %386 = vadd.xlane.f32.xlu0 %v385_v54 }
  0xb7   : > { %389 = vadd.xlane.f32.xlu1 %v388_v55 }
 0x134   : > { %v369_v58 = vpop.xlane.xlu0 %368 }
 0x135   : > { %v391_v59 = vmul.f32 0.03125, %v369_v58  ;;  %v1786_v58 = vld [vmem:[%s2587_s4] ss:$0 sm:$0xff] }
 0x137   : > { %v399_v60 = vadd.f32 1e-05, %v391_v59 }
 0x138   : > { %v372_v61 = vpop.xlane.xlu1 %371  ;;  %v375_v62 = vpop.xlane.xlu0 %374 }
 0x139   : > { %2026 = vrsqrt.f32 %v399_v60  ;;  %v392_v63 = vmul.f32 0.03125, %v372_v61  ;;  %v393_v0 = vmul.f32 0.03125, %v375_v62 }
 0x13b   : > { %v400_v1 = vadd.f32 1e-05, %v392_v63  ;;  %v401_v2 = vadd.f32 1e-05, %v393_v0 }
 0x13c   : > { %v378_v3 = vpop.xlane.xlu1 %377  ;;  %v381_v4 = vpop.xlane.xlu0 %380 }
 0x13d   : > { %2028 = vrsqrt.f32 %v400_v1  ;;  %v394_v5 = vmul.f32 0.03125, %v378_v3  ;;  %v395_v6 = vmul.f32 0.03125, %v381_v4 }
 0x13e   : > { %2030 = vrsqrt.f32 %v401_v2 }
 0x13f   : > { %v402_v7 = vadd.f32 1e-05, %v394_v5  ;;  %v403_v8 = vadd.f32 1e-05, %v395_v6 }
 0x140   : > { %v384_v9 = vpop.xlane.xlu1 %383  ;;  %v387_v10 = vpop.xlane.xlu0 %386 }
 0x141   : > { %2032 = vrsqrt.f32 %v402_v7  ;;  %v396_v11 = vmul.f32 0.03125, %v384_v9  ;;  %v397_v12 = vmul.f32 0.03125, %v387_v10 }
 0x142   : > { %2034 = vrsqrt.f32 %v403_v8 }
 0x143   : > { %v2027_v13 = vpop.eup %2026  ;;  %v404_v14 = vadd.f32 1e-05, %v396_v11  ;;  %v405_v15 = vadd.f32 1e-05, %v397_v12 }
 0x144   : > { %v390_v16 = vpop.xlane.xlu1 %389  ;;  %v415_v17 = vmul.f32 %v2027_v13, %v2207_v20  ;;  %v1785_v20 = vld [vmem:[%s2585_s2] ss:$0 sm:$0xff] }
 0x145   : > { %2036 = vrsqrt.f32 %v404_v14  ;;  %v398_v18 = vmul.f32 0.03125, %v390_v16 }
 0x146   : > { %2038 = vrsqrt.f32 %v405_v15  ;;  %v429_v26 = vmul.f32 %v1784_v19, %v415_v17 }
 0x147   : > { %v2029_v22 = vpop.eup %2028  ;;  %v406_v23 = vadd.f32 1e-05, %v398_v18 }
 0x148   : > { %v2031_v24 = vpop.eup %2030  ;;  %v416_v25 = vmul.f32 %v2029_v22, %v2215_v28  ;;  %v443_v34 = vadd.f32 %v1785_v20, %v429_v26 }
 0x149   : > { %v417_v27 = vmul.f32 %v2031_v24, %v2209_v21  ;;  %2040 = vrsqrt.f32 %v406_v23 }
 0x14a   : > { %v430_v30 = vmul.f32 %v1784_v19, %v416_v25 }
 0x14b   : > { %v2033_v31 = vpop.eup %2032  ;;  %v431_v36 = vmul.f32 %v1784_v19, %v417_v27 }
 0x14c   : > { %v2035_v32 = vpop.eup %2034  ;;  %v418_v33 = vmul.f32 %v2033_v31, %v2217_v29  ;;  %v444_v35 = vadd.f32 %v1785_v20, %v430_v30 }
 0x14d   : > { %v419_v37 = vmul.f32 %v2035_v32, %v2225_v38  ;;  %v445_v21 = vadd.f32 %v1785_v20, %v431_v36 }
 0x14e   : > { %v451_v40 = vpack.c.bf16 %v444_v35, %v443_v34  ;;  %v432_v28 = vmul.f32 %v1784_v19, %v418_v33 }
 0x14f   : > { %v2037_v41 = vpop.eup %2036  ;;  %v433_v45 = vmul.f32 %v1784_v19, %v419_v37 }
 0x150   : > { %v2039_v42 = vpop.eup %2038  ;;  %1868 = vmatprep.mubr.msk.bf16.mxu0 %vm317_vm0, %v451_v40  ;;  %v446_v43 = vadd.f32 %v1785_v20, %v432_v28  ;;  %v420_v44 = vmul.f32 %v2037_v41, %v2227_v39  ;;  %v964_v28 = vld [vmem:[%s2588_s5] sm:$0xff] }
 0x151   : > { %v421_v46 = vmul.f32 %v2039_v42, %v2235_v48  ;;  %v447_v38 = vadd.f32 %v1785_v20, %v433_v45  ;;  %v965_v42 = vld [vmem:[%s2588_s5 + $0x8] sm:$0xff] }
 0x152   : > { %v452_v47 = vpack.c.bf16 %v446_v43, %v445_v21  ;;  %v434_v29 = vmul.f32 %v1784_v19, %v420_v44 }
 0x153   : > { %v2041_v50 = vpop.eup %2040  ;;  %v435_v53 = vmul.f32 %v1784_v19, %v421_v46 }
 0x154   : > { %v422_v51 = vmul.f32 %v2041_v50, %v2237_v49  ;;  %1869 = vmatmul.mubr.msk.bf16.vlgmr.msra.gmra.mrb[0].mxu0 %vm317_vm0, %v452_v47  ;;  %v448_v52 = vadd.f32 %v1785_v20, %v434_v29  ;;  %v2122_v49 = vmov 0.0  }
 0x155   : > { %v449_v56 = vadd.f32 %v1785_v20, %v435_v53  ;;  %1876 = vmatprep.subr.bf16.mxu1 %v2122_v49  ;;  %1888 = vmatprep.subr.bf16.mxu0 %v2122_v49 }
 0x156   : > { %v453_v54 = vpack.c.bf16 %v448_v52, %v447_v38  ;;  %v436_v55 = vmul.f32 %v1784_v19, %v422_v51  ;;  %1890 = vmatprep.mubr.msk.bf16.mxu0 %vm2123_vm1, %v2122_v49 }
 0x158   : > { %1872 = vmatprep.mubr.msk.bf16.mxu1 %vm317_vm0, %v453_v54  ;;  %v450_v57 = vadd.f32 %v1785_v20, %v436_v55 }
 0x15a   : > { %v454_v39 = vpack.c.bf16 %v450_v57, %v449_v56 }
 0x15c   : > { %1873 = vmatmul.mubr.msk.bf16.vlgmr.msra.gmra.mrb[0].mxu1 %vm317_vm0, %v454_v39 }
 0x15d   : > { %1878 = vmatprep.mubr.msk.bf16.mxu1 %vm2123_vm1, %v2122_v49 }
 0x227   : > { %v1870_v48 = vpop.f32.mrb[0].mxu0 }
 0x228   : > { %v524_v59 = vpop.f32.mrb[1].mxu0  ;;  %v533_v61 = vadd.f32 %v1870_v48, %v1786_v58 }
 0x229   : > { %v1871_v60 = vpop.f32.mrb[2].mxu0  ;;  %v525_v0 = vadd.f32 %v1786_v58, %v524_v59 }
 0x22a   : > { %v536_v62 = vadd.f32 %v1871_v60, %v1786_v58  ;;  %v527_v63 = vpop.f32.mrb[3].mxu0 }
 0x22b   : > { %v528_v1 = vadd.f32 %v1786_v58, %v527_v63 }
 0x22c   : > { %v556_v2 = vpack.c.bf16 %v536_v62, %v533_v61 }
 0x22d   : > { %v555_v3 = vpack.c.bf16 %v528_v1, %v525_v0 }
 0x22e   : > { %565 = vrot.lane.b32.xlu1 %v556_v2, %s2124_s21 }
 0x22f   : > { %563 = vrot.lane.b32.xlu0 %v555_v3, %s2124_s21  ;;  %v1874_v4 = vpop.f32.mrb[0].mxu1 }
 0x230   : > { %v540_v5 = vpop.f32.mrb[1].mxu1  ;;  %v549_v7 = vadd.f32 %v1874_v4, %v1786_v58 }
 0x231   : > { %v1875_v6 = vpop.f32.mrb[2].mxu1  ;;  %v541_v10 = vadd.f32 %v1786_v58, %v540_v5 }
 0x232   : > { %v552_v8 = vadd.f32 %v1875_v6, %v1786_v58  ;;  %v543_v9 = vpop.f32.mrb[3].mxu1 }
 0x233   : > { %v544_v11 = vadd.f32 %v1786_v58, %v543_v9  ;;  %571 = vrot.lane.b32.xlu0 %v555_v3, %s2125_s22  ;;  %v967_v9 = vld [vmem:[%s2588_s5 + $0x18] sm:$0xff] }
 0x234   : > { %v558_v12 = vpack.c.bf16 %v552_v8, %v549_v7  ;;  %v966_v7 = vld [vmem:[%s2588_s5 + $0x10] sm:$0xff] }
 0x235   : > { %v557_v13 = vpack.c.bf16 %v544_v11, %v541_v10 }
 0x237   : > { %670 = vrot.lane.b32.xlu0 %v557_v13, %s2125_s22  ;;  %567 = vrot.lane.b32.xlu1 %v557_v13, %s2124_s21 }
 0x23b   : > { %569 = vrot.lane.b32.xlu1 %v558_v12, %s2124_s21 }
 0x23f   : > { %621 = vrot.lane.b32.xlu1 %v556_v2, %s2125_s22 }
 0x243   : > { %719 = vrot.lane.b32.xlu1 %v558_v12, %s2125_s22 }
 0x2a0   : > { %v566_v14 = vpop.permute.xlu1 %565 }
 0x2a1   : > { %817 = vrot.lane.b32.xlu1 %v566_v14, %s2125_s22  ;;  %v564_v15 = vpop.permute.xlu0 %563 }
 0x2a2   : > { %768 = vrot.lane.b32.xlu0 %v564_v15, %s2125_s22 }
 0x2a5   : > { %v572_v16 = vpop.permute.xlu0 %571 }
 0x2a6   : > { %v578_v17 = vsel %vm573_vm2, %v572_v16, 0 }
 0x2a7   : > { %1877 = vmatpush3.bf16.xpose.msra.mxu1 %v578_v17 }
 0x2a8   : > { %1882 = vmatprep.subr.bf16.mxu1 %v2122_v49 }
 0x2a9   : > { %v2282_v18 = vpop.permute.xlu1 %567  ;;  %v671_v19 = vpop.permute.xlu0 %670 }
 0x2aa   : > { %v676_v22 = vsel %vm573_vm2, %v671_v19, 0  ;;  %866 = vrot.lane.b32.xlu0 %v2282_v18, %s2125_s22 }
 0x2ab   : > { %1889 = vmatpush3.bf16.xpose.msra.mxu0 %v676_v22 }
 0x2ac   : > { %1900 = vmatprep.subr.bf16.mxu0 %v2122_v49 }
 0x2ad   : > { %v2287_v23 = vpop.permute.xlu1 %569 }
 0x2ae   : > { %915 = vrot.lane.b32.xlu1 %v2287_v23, %s2125_s22  ;;  %1136 = vrot.lane.b32.xlu0 %v555_v3, %s2126_s23 }
 0x2af   : > { %1879 = vmatmul.mubr.msk.bf16.vlgmr.msra.gmra.mrb[4].mxu1 %vm573_vm2, %v555_v3 }
 0x2b0   : > { %1884 = vmatprep.mubr.msk.bf16.mxu1 %vm2123_vm1, %v2122_v49 }
 0x2b1   : > { %v622_v24 = vpop.permute.xlu1 %621 }
 0x2b2   : > { %v627_v25 = vsel %vm573_vm2, %v622_v24, 0  ;;  %1183 = vrot.lane.b32.xlu1 %v556_v2, %s2126_s23  ;;  %1324 = vrot.lane.b32.xlu0 %v564_v15, %s2126_s23 }
 0x2b3   : > { %1891 = vmatmul.mubr.msk.bf16.vlgmr.msra.gmra.mrb[4].mxu0 %vm573_vm2, %v557_v13  ;;  %1883 = vmatpush3.bf16.xpose.msra.mxu1 %v627_v25 }
 0x2b4   : > { %1894 = vmatprep.subr.bf16.mxu1 %v2122_v49  ;;  %1902 = vmatprep.mubr.msk.bf16.mxu0 %vm2123_vm1, %v2122_v49 }
 0x2b5   : > { %v720_v26 = vpop.permute.xlu1 %719 }
 0x2b6   : > { %1230 = vrot.lane.b32.xlu1 %v557_v13, %s2126_s23  ;;  %v725_v27 = vsel %vm573_vm2, %v720_v26, 0 }
 0x2ba   : > { %1277 = vrot.lane.b32.xlu1 %v558_v12, %s2126_s23  ;;  %1885 = vmatmul.mubr.msk.bf16.vlgmr.msra.gmra.mrb[8].mxu1 %vm573_vm2, %v556_v2 }
 0x2bb   : > { %1895 = vmatpush3.bf16.xpose.msra.mxu1 %v725_v27  ;;  %1896 = vmatprep.mubr.msk.bf16.mxu1 %vm2123_vm1, %v2122_v49 }
 0x2bc   : > { %1906 = vmatprep.subr.bf16.mxu1 %v2122_v49 }
 0x2be   : > { %1371 = vrot.lane.b32.xlu1 %v566_v14, %s2126_s23 }
 0x2c2   : > { %1897 = vmatmul.mubr.msk.bf16.vlgmr.msra.gmra.mrb[12].mxu1 %vm573_vm2, %v558_v12 }
 0x2c3   : > { %1908 = vmatprep.mubr.msk.bf16.mxu1 %vm2123_vm1, %v2122_v49 }
 0x313   : > { %v818_v20 = vpop.permute.xlu1 %817 }
 0x314   : > { %v823_v30 = vsel %vm573_vm2, %v818_v20, 0  ;;  %v769_v31 = vpop.permute.xlu0 %768 }
 0x315   : > { %v774_v32 = vsel %vm573_vm2, %v769_v31, 0  ;;  %1907 = vmatpush3.bf16.xpose.msra.mxu1 %v823_v30 }
 0x316   : > { %1901 = vmatpush3.bf16.xpose.msra.mxu0 %v774_v32  ;;  %1918 = vmatprep.subr.bf16.mxu1 %v2122_v49 }
 0x317   : > { %1912 = vmatprep.subr.bf16.mxu0 %v2122_v49 }
 0x31c   : > { %1909 = vmatmul.mubr.msk.bf16.vlgmr.msra.gmra.mrb[16].mxu1 %vm573_vm2, %v566_v14  ;;  %v867_v33 = vpop.permute.xlu0 %866 }
 0x31d   : > { %v872_v34 = vsel %vm573_vm2, %v867_v33, 0  ;;  %1903 = vmatmul.mubr.msk.bf16.vlgmr.msra.gmra.mrb[8].mxu0 %vm573_vm2, %v564_v15  ;;  %1920 = vmatprep.mubr.msk.bf16.mxu1 %vm2123_vm1, %v2122_v49 }
 0x31e   : > { %1913 = vmatpush3.bf16.xpose.msra.mxu0 %v872_v34  ;;  %1914 = vmatprep.mubr.msk.bf16.mxu0 %vm2123_vm1, %v2122_v49 }
 0x31f   : > { %1924 = vmatprep.subr.bf16.mxu0 %v2122_v49 }
 0x320   : > { %v916_v35 = vpop.permute.xlu1 %915  ;;  %v1137_v37 = vpop.permute.xlu0 %1136 }
 0x321   : > { %v921_v36 = vsel %vm573_vm2, %v916_v35, 0 }
 0x322   : > { %1919 = vmatpush3.bf16.xpose.msra.mxu1 %v921_v36 }
 0x323   : > { %1930 = vmatprep.subr.bf16.mxu1 %v2122_v49 }
 0x324   : > { %v1184_v40 = vpop.permute.xlu1 %1183 }
 0x325   : > { %1915 = vmatmul.mubr.msk.bf16.vlgmr.msra.gmra.mrb[12].mxu0 %vm573_vm2, %v2282_v18 }
 0x326   : > { %1925 = vmatpush3.bf16.msra.mxu0 %v1137_v37  ;;  %1926 = vmatprep.mubr.msk.bf16.mxu0 %vm2123_vm1, %v2122_v49 }
 0x327   : > { %1936 = vmatprep.subr.bf16.mxu0 %v2122_v49 }
 0x329   : > { %1921 = vmatmul.mubr.msk.bf16.vlgmr.msra.gmra.mrb[20].mxu1 %vm573_vm2, %v2287_v23 }
 0x32a   : > { %1931 = vmatpush3.bf16.msra.mxu1 %v1184_v40  ;;  %1932 = vmatprep.mubr.msk.bf16.mxu1 %vm2123_vm1, %v2122_v49 }
 0x32b   : > { %1942 = vmatprep.subr.bf16.mxu1 %v2122_v49 }
 0x382   : > { %v614_v41 = vpop.f32.mrb[4].mxu1 }
 0x383   : > { %v2342_v21 = vadd.f32 %v964_v28, %v614_v41  ;;  %v1880_v43 = vpop.f32.mrb[5].mxu1 }
 0x384   : > { %v617_v44 = vpop.f32.mrb[6].mxu1 }
 0x385   : > { %v2344_v45 = vadd.f32 %v965_v42, %v617_v44  ;;  %v1881_v46 = vpop.f32.mrb[7].mxu1  ;;  %v984_v47 = vsel %vm573_vm2, %v2342_v21, -inf }
 0x386   : > { %985 = vmax.xlane.f32.xlu0 %v984_v47  ;;  %v712_v29 = vpop.f32.mrb[4].mxu0  ;;  %v1231_v47 = vpop.permute.xlu1 %1230 }
 0x387   : > { %v2348_v50 = vadd.f32 %v964_v28, %v712_v29  ;;  %v1892_v51 = vpop.f32.mrb[5].mxu0  ;;  %v987_v38 = vsel %vm573_vm2, %v2344_v45, -inf }
 0x388   : > { %988 = vmax.xlane.f32.xlu1 %v987_v38  ;;  %v715_v52 = vpop.f32.mrb[6].mxu0  ;;  %v1325_v38 = vpop.permute.xlu0 %1324 }
 0x389   : > { %v2352_v53 = vadd.f32 %v965_v42, %v715_v52  ;;  %v1893_v54 = vpop.f32.mrb[7].mxu0  ;;  %v996_v55 = vsel %vm573_vm2, %v2348_v50, -inf }
 0x38a   : > { %997 = vmax.xlane.f32.xlu0 %v996_v55  ;;  %v1278_v51 = vpop.permute.xlu1 %1277 }
 0x38b   : > { %v999_v56 = vsel %vm573_vm2, %v2352_v53, -inf }
 0x38c   : > { %1000 = vmax.xlane.f32.xlu1 %v999_v56 }
 0x38d   : > { %v663_v57 = vpop.f32.mrb[8].mxu1 }
 0x38e   : > { %v2358_v39 = vadd.f32 %v964_v28, %v663_v57  ;;  %v1886_v48 = vpop.f32.mrb[9].mxu1  ;;  %v1372_v52 = vpop.permute.xlu1 %1371 }
 0x38f   : > { %v666_v58 = vpop.f32.mrb[10].mxu1 }
 0x390   : > { %v2360_v59 = vadd.f32 %v965_v42, %v666_v58  ;;  %v1887_v60 = vpop.f32.mrb[11].mxu1  ;;  %v990_v61 = vsel %vm573_vm2, %v2358_v39, -inf }
 0x391   : > { %991 = vmax.xlane.f32.xlu0 %v990_v61 }
 0x392   : > { %v993_v62 = vsel %vm573_vm2, %v2360_v59, -inf }
 0x395   : > { %v761_v63 = vpop.f32.mrb[12].mxu1  ;;  %994 = vmax.xlane.f32.xlu0 %v993_v62 }
 0x396   : > { %v2366_v0 = vadd.f32 %v964_v28, %v761_v63  ;;  %v1898_v1 = vpop.f32.mrb[13].mxu1 }
 0x397   : > { %v764_v2 = vpop.f32.mrb[14].mxu1 }
 0x398   : > { %v2368_v3 = vadd.f32 %v965_v42, %v764_v2  ;;  %v1899_v4 = vpop.f32.mrb[15].mxu1  ;;  %v1002_v5 = vsel %vm573_vm2, %v2366_v0, -inf }
 0x399   : > { %1003 = vmax.xlane.f32.xlu0 %v1002_v5 }
 0x39a   : > { %v1005_v6 = vsel %vm573_vm2, %v2368_v3, -inf }
 0x39b   : > { %1006 = vmax.xlane.f32.xlu1 %v1005_v6 }
 0x3ef   : > { %v859_v8 = vpop.f32.mrb[16].mxu1 }
 0x3f0   : > { %v2380_v10 = vadd.f32 %v966_v7, %v859_v8  ;;  %v810_v11 = vpop.f32.mrb[8].mxu0  ;;  %v1910_v12 = vpop.f32.mrb[17].mxu1 }
 0x3f1   : > { %v1904_v13 = vpop.f32.mrb[9].mxu0  ;;  %v862_v14 = vpop.f32.mrb[18].mxu1  ;;  %v2382_v15 = vadd.f32 %v966_v7, %v810_v11 }
 0x3f2   : > { %v2384_v16 = vadd.f32 %v967_v9, %v862_v14  ;;  %v813_v17 = vpop.f32.mrb[10].mxu0  ;;  %v1911_v19 = vpop.f32.mrb[19].mxu1  ;;  %v1014_v22 = vsel %vm573_vm2, %v2380_v10, -inf }
 0x3f3   : > { %1015 = vmax.xlane.f32.xlu0 %v1014_v22  ;;  %v1905_v24 = vpop.f32.mrb[11].mxu0  ;;  %v2388_v25 = vadd.f32 %v967_v9, %v813_v17  ;;  %v1008_v27 = vsel %vm573_vm2, %v2382_v15, -inf }
 0x3f4   : > { %v1017_v26 = vsel %vm573_vm2, %v2384_v16, -inf }
 0x3f5   : > { %1018 = vmax.xlane.f32.xlu1 %v1017_v26  ;;  %v1011_v30 = vsel %vm573_vm2, %v2388_v25, -inf }
 0x3f7   : > { %1009 = vmax.xlane.f32.xlu0 %v1008_v27 }
 0x3f8   : > { %v908_v20 = vpop.f32.mrb[12].mxu0 }
 0x3f9   : > { %1012 = vmax.xlane.f32.xlu1 %v1011_v30  ;;  %v1916_v31 = vpop.f32.mrb[13].mxu0  ;;  %v2398_v40 = vadd.f32 %v966_v7, %v908_v20 }
 0x3fa   : > { %v911_v32 = vpop.f32.mrb[14].mxu0 }
 0x3fb   : > { %v1917_v33 = vpop.f32.mrb[15].mxu0  ;;  %v2404_v43 = vadd.f32 %v967_v9, %v911_v32  ;;  %v1020_v46 = vsel %vm573_vm2, %v2398_v40, -inf }
 0x3fc   : > { %v957_v34 = vpop.f32.mrb[20].mxu1 }
 0x3fd   : > { %v2396_v35 = vadd.f32 %v966_v7, %v957_v34  ;;  %v1922_v36 = vpop.f32.mrb[21].mxu1  ;;  %v1023_v29 = vsel %vm573_vm2, %v2404_v43, -inf }
 0x3fe   : > { %v960_v37 = vpop.f32.mrb[22].mxu1 }
 0x3ff   : > { %v2400_v28 = vadd.f32 %v967_v9, %v960_v37  ;;  %v1923_v41 = vpop.f32.mrb[23].mxu1  ;;  %v1026_v42 = vsel %vm573_vm2, %v2396_v35, -inf }
 0x400   : > { %1027 = vmax.xlane.f32.xlu0 %v1026_v42 }
 0x401   : > { %v1029_v44 = vsel %vm573_vm2, %v2400_v28, -inf }
 0x402   : > { %1030 = vmax.xlane.f32.xlu1 %v1029_v44 }
 0x404   : > { %1021 = vmax.xlane.f32.xlu0 %v1020_v46 }
 0x406   : > { %1024 = vmax.xlane.f32.xlu1 %v1023_v29 }
 0x413   : > { %v986_v54 = vpop.xlane.xlu0 %985 }
 0x414   : > { %v1032_v55 = vsub.f32 %v2342_v21, %v986_v54 }
 0x415   : > { %v989_v56 = vpop.xlane.xlu1 %988 }
 0x416   : > { %v1048_v57 = vmul.f32 1.442695, %v1032_v55  ;;  %v1033_v48 = vsub.f32 %v2344_v45, %v989_v56 }
 0x417   : > { %v998_v58 = vpop.xlane.xlu0 %997  ;;  %1465 = vrot.lane.b32.xlu1 %v2287_v23, %s2126_s23 }
 0x418   : > { %v1050_v60 = vmul.f32 1.442695, %v1033_v48  ;;  %2042 = vpow2.f32 %v1048_v57  ;;  %v1036_v62 = vsub.f32 %v2348_v50, %v998_v58 }
 0x419   : > { %v1001_v61 = vpop.xlane.xlu1 %1000 }
 0x41a   : > { %2044 = vpow2.f32 %v1050_v60  ;;  %v1037_v63 = vsub.f32 %v2352_v53, %v1001_v61  ;;  %1418 = vrot.lane.b32.xlu0 %v2282_v18, %s2126_s23  ;;  %v1056_v1 = vmul.f32 1.442695, %v1036_v62  ;;  %s2554_s23 = scalar_lea.vmem %s2591_s8, %s1818_s29 }
 0x41c   : > { %v1058_v21 = vmul.f32 1.442695, %v1037_v63 }
 0x41e   : > { %v992_v2 = vpop.xlane.xlu0 %991  ;;  %2046 = vpow2.f32 %v1058_v21 }
 0x41f   : > { %v1034_v45 = vsub.f32 %v2358_v39, %v992_v2  ;;  %2048 = vpow2.f32 %v1056_v1 }
 0x421   : > { %v1052_v4 = vmul.f32 1.442695, %v1034_v45 }
 0x422   : > { %v995_v23 = vpop.xlane.xlu0 %994  ;;  %v2421_v5 = vpop.eup %2042 }
 0x423   : > { %v1035_v6 = vsub.f32 %v2360_v59, %v995_v23  ;;  %2050 = vpow2.f32 %v1052_v4 }
 0x424   : > { %v2424_v7 = vpop.eup %2044 }
 0x425   : > { %v1054_v50 = vmul.f32 1.442695, %v1035_v6  ;;  %v1128_v53 = vpack.c.bf16 %v2424_v7, %v2421_v5 }
 0x426   : > { %v1004_v18 = vpop.xlane.xlu0 %1003 }
 0x427   : > { %2052 = vpow2.f32 %v1054_v50  ;;  %1927 = vmatmul.mubr.msk.bf16.vlgmr.msra.gmra.mrb[16].mxu0 %vm573_vm2, %v1128_v53  ;;  %v1038_v39 = vsub.f32 %v2366_v0, %v1004_v18  ;;  %v1080_v53 = vsel %vm573_vm2, %v2421_v5, 0.0  ;;  %v1083_v18 = vsel %vm573_vm2, %v2424_v7, 0.0 }
 0x428   : > { %1937 = vmatpush3.bf16.msra.mxu0 %v1231_v47  ;;  %v1007_v8 = vpop.xlane.xlu1 %1006  ;;  %1938 = vmatprep.mubr.msk.bf16.mxu0 %vm2123_vm1, %v2122_v49  ;;  %v2434_v9 = vpop.eup %2046 }
 0x429   : > { %v1039_v59 = vsub.f32 %v2368_v3, %v1007_v8  ;;  %1948 = vmatprep.subr.bf16.mxu0 %v2122_v49  ;;  %v1060_v11 = vmul.f32 1.442695, %v1038_v39  ;;  %v2436_v13 = vpop.eup %2048  ;;  %v1095_v5 = vsel %vm573_vm2, %v2434_v9, 0.0 }
 0x42a   : > { %v1130_v14 = vpack.c.bf16 %v2434_v9, %v2436_v13 }
 0x42b   : > { %v1062_v12 = vmul.f32 1.442695, %v1039_v59  ;;  %v1092_v59 = vsel %vm573_vm2, %v2436_v13, 0.0 }
 0x42d   : > { %2054 = vpow2.f32 %v1062_v12  ;;  %v2441_v0 = vpop.eup %2050 }
 0x42e   : > { %2056 = vpow2.f32 %v1060_v11  ;;  %v1086_v39 = vsel %vm573_vm2, %v2441_v0, 0.0 }
 0x42f   : > { %1939 = vmatmul.mubr.msk.bf16.vlgmr.msra.gmra.mrb[20].mxu0 %vm573_vm2, %v1130_v14 }
 0x430   : > { %1949 = vmatpush3.bf16.msra.mxu0 %v1325_v38  ;;  %1950 = vmatprep.mubr.msk.bf16.mxu0 %vm2123_vm1, %v2122_v49 }
 0x431   : > { %v2445_v3 = vpop.eup %2052  ;;  %1960 = vmatprep.subr.bf16.mxu0 %v2122_v49 }
 0x432   : > { %v1129_v17 = vpack.c.bf16 %v2445_v3, %v2441_v0  ;;  %v1089_v8 = vsel %vm573_vm2, %v2445_v3, 0.0 }
 0x434   : > { %1933 = vmatmul.mubr.msk.bf16.vlgmr.msra.gmra.mrb[24].mxu1 %vm573_vm2, %v1129_v17 }
 0x435   : > { %1943 = vmatpush3.bf16.msra.mxu1 %v1278_v51  ;;  %1944 = vmatprep.mubr.msk.bf16.mxu1 %vm2123_vm1, %v2122_v49 }
 0x436   : > { %1954 = vmatprep.subr.bf16.mxu1 %v2122_v49 }
 0x437   : > { %v2454_v19 = vpop.eup %2054 }
 0x438   : > { %v2456_v22 = vpop.eup %2056  ;;  %v1101_v11 = vsel %vm573_vm2, %v2454_v19, 0.0 }
 0x439   : > { %v1131_v24 = vpack.c.bf16 %v2454_v19, %v2456_v22  ;;  %v1098_v7 = vsel %vm573_vm2, %v2456_v22, 0.0 }
 0x43c   : > { %1945 = vmatmul.mubr.msk.bf16.vlgmr.msra.gmra.mrb[28].mxu1 %vm573_vm2, %v1131_v24 }
 0x43d   : > { %1955 = vmatpush3.bf16.msra.mxu1 %v1372_v52  ;;  %1956 = vmatprep.mubr.msk.bf16.mxu1 %vm2123_vm1, %v2122_v49 }
 0x43e   : > { %1966 = vmatprep.subr.bf16.mxu1 %v2122_v49 }
 0x480   : > { %v1016_v26 = vpop.xlane.xlu0 %1015 }
 0x481   : > { %v1042_v27 = vsub.f32 %v2380_v10, %v1016_v26 }
 0x482   : > { %v1019_v20 = vpop.xlane.xlu1 %1018 }
 0x483   : > { %v1068_v30 = vmul.f32 1.442695, %v1042_v27  ;;  %v1043_v31 = vsub.f32 %v2384_v16, %v1019_v20 }
 0x484   : > { %v1010_v32 = vpop.xlane.xlu0 %1009 }
 0x485   : > { %v1070_v33 = vmul.f32 1.442695, %v1043_v31  ;;  %v1040_v34 = vsub.f32 %v2382_v15, %v1010_v32  ;;  %2058 = vpow2.f32 %v1068_v30 }
 0x486   : > { %v1013_v36 = vpop.xlane.xlu1 %1012 }
 0x487   : > { %2060 = vpow2.f32 %v1070_v33  ;;  %v1064_v37 = vmul.f32 1.442695, %v1040_v34  ;;  %v1041_v41 = vsub.f32 %v2388_v25, %v1013_v36 }
 0x489   : > { %2062 = vpow2.f32 %v1064_v37  ;;  %v1066_v42 = vmul.f32 1.442695, %v1041_v41 }
 0x48b   : > { %2064 = vpow2.f32 %v1066_v42 }
 0x48d   : > { %v1028_v44 = vpop.xlane.xlu0 %1027 }
 0x48e   : > { %v1046_v10 = vsub.f32 %v2396_v35, %v1028_v44  ;;  %v2024_v44 = vld [vmem:[%s2589_s6] sm:$0xff]  }
 0x48f   : > { %v1031_v46 = vpop.xlane.xlu1 %1030  ;;  %v2059_v47 = vpop.eup %2058 }
 0x490   : > { %v1076_v29 = vmul.f32 1.442695, %v1046_v10  ;;  %v1047_v16 = vsub.f32 %v2400_v28, %v1031_v46  ;;  %v2025_v46 = vld [vmem:[%s2589_s6 + $0x8] sm:$0xff]  }
 0x491   : > { %v2061_v51 = vpop.eup %2060  ;;  %v1022_v38 = vpop.xlane.xlu0 %1021 }
 0x492   : > { %v1078_v15 = vmul.f32 1.442695, %v1047_v16  ;;  %v1044_v52 = vsub.f32 %v2398_v40, %v1022_v38  ;;  %v1133_v54 = vpack.c.bf16 %v2061_v51, %v2059_v47  ;;  %2066 = vpow2.f32 %v1076_v29 }
 0x493   : > { %v2063_v55 = vpop.eup %2062  ;;  %v1025_v25 = vpop.xlane.xlu1 %1024  ;;  %v1113_v62 = vsel %vm573_vm2, %v2061_v51, 0.0 }
 0x494   : > { %2068 = vpow2.f32 %v1078_v15  ;;  %v1072_v56 = vmul.f32 1.442695, %v1044_v52  ;;  %v1045_v57 = vsub.f32 %v2404_v43, %v1025_v25  ;;  %1957 = vmatmul.mubr.msk.bf16.vlgmr.msra.gmra.mrb[32].mxu1 %vm573_vm2, %v1133_v54  ;;  %v1104_v35 = vsel %vm573_vm2, %v2063_v55, 0.0 }
 0x495   : > { %v2065_v48 = vpop.eup %2064  ;;  %1105 = vadd.xlane.f32.xlu0 %v1104_v35  ;;  %1968 = vmatprep.mubr.msk.bf16.mxu1 %vm2123_vm1, %v2122_v49  ;;  %v1419_v61 = vpop.permute.xlu0 %1418  ;;  %v1110_v43 = vsel %vm573_vm2, %v2059_v47, 0.0 }
 0x496   : > { %2070 = vpow2.f32 %v1072_v56  ;;  %v1074_v28 = vmul.f32 1.442695, %v1045_v57  ;;  %v1107_v40 = vsel %vm573_vm2, %v2065_v48, 0.0  ;;  %v1132_v58 = vpack.c.bf16 %v2065_v48, %v2063_v55 }
 0x497   : > { %1108 = vadd.xlane.f32.xlu1 %v1107_v40  ;;  %v1466_v60 = vpop.permute.xlu1 %1465 }
 0x498   : > { %2072 = vpow2.f32 %v1074_v28  ;;  %1951 = vmatmul.mubr.msk.bf16.vlgmr.msra.gmra.mrb[24].mxu0 %vm573_vm2, %v1132_v58  ;;  %1967 = vmatpush3.bf16.msra.mxu1 %v1466_v60 }
 0x499   : > { %1961 = vmatpush3.bf16.msra.mxu0 %v1419_v61  ;;  %1111 = vadd.xlane.f32.xlu0 %v1110_v43 }
 0x49a   : > { %1962 = vmatprep.mubr.msk.bf16.mxu0 %vm2123_vm1, %v2122_v49  ;;  %1972 = vmatprep.subr.bf16.mxu0 %v2024_v44 }
 0x49c   : > { %v2067_v63 = vpop.eup %2066 }
 0x49d   : > { %1114 = vadd.xlane.f32.xlu0 %v1113_v62  ;;  %v1122_v49 = vsel %vm573_vm2, %v2067_v63, 0.0 }
 0x49e   : > { %v2069_v21 = vpop.eup %2068 }
 0x49f   : > { %v1135_v1 = vpack.c.bf16 %v2069_v21, %v2067_v63  ;;  %v1125_v50 = vsel %vm573_vm2, %v2069_v21, 0.0 }
 0x4a0   : > { %v2071_v2 = vpop.eup %2070 }
 0x4a1   : > { %1969 = vmatmul.mubr.msk.bf16.vlgmr.msra.gmra.mrb[36].mxu1 %vm573_vm2, %v1135_v1  ;;  %v1116_v45 = vsel %vm573_vm2, %v2071_v2, 0.0 }
 0x4a2   : > { %v2073_v4 = vpop.eup %2072  ;;  %1117 = vadd.xlane.f32.xlu0 %v1116_v45 }
 0x4a3   : > { %v1119_v23 = vsel %vm573_vm2, %v2073_v4, 0.0  ;;  %v1134_v6 = vpack.c.bf16 %v2073_v4, %v2071_v2 }
 0x4a4   : > { %1120 = vadd.xlane.f32.xlu1 %v1119_v23 }
 0x4a5   : > { %1963 = vmatmul.mubr.msk.bf16.vlgmr.msra.gmra.mrb[28].mxu0 %vm573_vm2, %v1134_v6 }
 0x4a6   : > { %1123 = vadd.xlane.f32.xlu0 %v1122_v49  ;;  %1973 = vmatpush3.bf16.msra.mxu0 %v2024_v44 }
 0x4a7   : > { %1974 = vmatprep.subr.bf16.mxu0 %v2025_v46 }
 0x4a8   : > { %1126 = vadd.xlane.f32.xlu1 %v1125_v50 }
 0x4aa   : > { %1081 = vadd.xlane.f32.xlu0 %v1080_v53  ;;  %1975 = vmatpush3.bf16.msra.mxu0 %v2025_v46 }
 0x4ac   : > { %1084 = vadd.xlane.f32.xlu1 %v1083_v18 }
 0x4ae   : > { %1087 = vadd.xlane.f32.xlu0 %v1086_v39 }
 0x4b0   : > { %1090 = vadd.xlane.f32.xlu1 %v1089_v8 }
 0x4b2   : > { %1093 = vadd.xlane.f32.xlu0 %v1092_v59 }
 0x4b4   : > { %1096 = vadd.xlane.f32.xlu1 %v1095_v5 }
 0x4b6   : > { %1099 = vadd.xlane.f32.xlu0 %v1098_v7 }
 0x4b8   : > { %1102 = vadd.xlane.f32.xlu1 %v1101_v11 }
 0x4fa   : > { %v2504_v12 = vpop.f32.mrb[16].mxu0 }
 0x4fb   : > { %v1928_v14 = vpop.f32.mrb[17].mxu0 }
 0x4fc   : > { %v2506_v0 = vpop.f32.mrb[18].mxu0 }
 0x4fd   : > { %v1929_v3 = vpop.f32.mrb[19].mxu0 }
 0x502   : > { %v2508_v13 = vpop.f32.mrb[20].mxu0 }
 0x503   : > { %v1940_v17 = vpop.f32.mrb[21].mxu0 }
 0x504   : > { %v2510_v24 = vpop.f32.mrb[22].mxu0 }
 0x505   : > { %v1941_v9 = vpop.f32.mrb[23].mxu0 }
 0x507   : > { %v2512_v26 = vpop.f32.mrb[24].mxu1 }
 0x508   : > { %v1934_v22 = vpop.f32.mrb[25].mxu1 }
 0x509   : > { %v2514_v27 = vpop.f32.mrb[26].mxu1 }
 0x50a   : > { %v1935_v20 = vpop.f32.mrb[27].mxu1 }
 0x50f   : > { %v2516_v19 = vpop.f32.mrb[28].mxu1 }
 0x510   : > { %v1946_v30 = vpop.f32.mrb[29].mxu1 }
 0x511   : > { %v2518_v31 = vpop.f32.mrb[30].mxu1 }
 0x512   : > { %v1947_v32 = vpop.f32.mrb[31].mxu1 }
 0x522   : > { %v1106_v33 = vpop.xlane.xlu0 %1105 }
 0x524   : > { %v1109_v37 = vpop.xlane.xlu1 %1108 }
 0x526   : > { %v1112_v34 = vpop.xlane.xlu0 %1111 }
 0x527   : > { %2074 = vrcp.f32 %v1112_v34 }
 0x52a   : > { %v1115_v36 = vpop.xlane.xlu0 %1114 }
 0x52b   : > { %2076 = vrcp.f32 %v1115_v36 }
 0x52c   : > { %2078 = vrcp.f32 %v1106_v33 }
 0x52d   : > { %2080 = vrcp.f32 %v1109_v37 }
 0x52f   : > { %v1118_v41 = vpop.xlane.xlu0 %1117 }
 0x531   : > { %v1121_v42 = vpop.xlane.xlu1 %1120  ;;  %v2075_v47 = vpop.eup %2074 }
 0x533   : > { %v1124_v29 = vpop.xlane.xlu0 %1123 }
 0x534   : > { %2082 = vrcp.f32 %v1124_v29 }
 0x535   : > { %v2077_v51 = vpop.eup %2076  ;;  %v1127_v38 = vpop.xlane.xlu1 %1126 }
 0x536   : > { %v2079_v56 = vpop.eup %2078  ;;  %2084 = vrcp.f32 %v1127_v38 }
 0x537   : > { %v2081_v48 = vpop.eup %2080  ;;  %2086 = vrcp.f32 %v1118_v41  ;;  %v1082_v7 = vpop.xlane.xlu0 %1081 }
 0x538   : > { %2088 = vrcp.f32 %v1121_v42 }
 0x539   : > { %v1085_v11 = vpop.xlane.xlu1 %1084 }
 0x53b   : > { %v1088_v14 = vpop.xlane.xlu0 %1087 }
 0x53c   : > { %2090 = vrcp.f32 %v1088_v14 }
 0x53d   : > { %v1091_v3 = vpop.xlane.xlu1 %1090 }
 0x53e   : > { %v2083_v62 = vpop.eup %2082  ;;  %2092 = vrcp.f32 %v1091_v3 }
 0x53f   : > { %2094 = vrcp.f32 %v1082_v7  ;;  %v1094_v9 = vpop.xlane.xlu0 %1093 }
 0x540   : > { %v2085_v21 = vpop.eup %2084  ;;  %2096 = vrcp.f32 %v1085_v11 }
 0x541   : > { %v2087_v6 = vpop.eup %2086  ;;  %v1097_v17 = vpop.xlane.xlu1 %1096  ;;  %2098 = vrcp.f32 %v1094_v9 }
 0x542   : > { %v2089_v53 = vpop.eup %2088  ;;  %2100 = vrcp.f32 %v1097_v17 }
 0x543   : > { %v1100_v32 = vpop.xlane.xlu0 %1099 }
 0x544   : > { %2102 = vrcp.f32 %v1100_v32 }
 0x545   : > { %v1103_v22 = vpop.xlane.xlu1 %1102 }
 0x546   : > { %v2091_v20 = vpop.eup %2090  ;;  %2104 = vrcp.f32 %v1103_v22  ;;  %v2110_v22 = vld [vmem:[%s2189_s10 + $0x30] sm:$0xff] }
 0x547   : > { %v1546_v42 = vmul.f32 %v2091_v20, %v2512_v26 }
 0x548   : > { %v2093_v30 = vpop.eup %2092 }
 0x549   : > { %v2095_v34 = vpop.eup %2094  ;;  %v1547_v36 = vmul.f32 %v2093_v30, %v2514_v27 }
 0x54a   : > { %v2097_v44 = vpop.eup %2096 }
 0x567   : > { %v1411_v10 = vpop.f32.mrb[32].mxu1 }
 0x568   : > { %v1958_v16 = vpop.f32.mrb[33].mxu1  ;;  %v1554_v52 = vmul.f32 %v2075_v47, %v1411_v10 }
 0x569   : > { %v1414_v15 = vpop.f32.mrb[34].mxu1  ;;  %v1544_v16 = vmul.f32 %v2095_v34, %v2504_v12 }
 0x56a   : > { %v1555_v54 = vmul.f32 %v2077_v51, %v1414_v15  ;;  %v1959_v55 = vpop.f32.mrb[35].mxu1  ;;  %v1545_v51 = vmul.f32 %v2097_v44, %v2506_v0 }
 0x56b   : > { %v1364_v25 = vpop.f32.mrb[24].mxu0 }
 0x56c   : > { %v2007_v57 = vpack.i.bf16 %v1555_v54, %v1554_v52  ;;  %v1952_v35 = vpop.f32.mrb[25].mxu0  ;;  %v1552_v40 = vmul.f32 %v2079_v56, %v1364_v25  ;;  %v2099_v54 = vpop.eup %2098 }
 0x56d   : > { %v1367_v28 = vpop.f32.mrb[26].mxu0  ;;  %v2101_v55 = vpop.eup %2100  ;;  %v1548_v35 = vmul.f32 %v2099_v54, %v2508_v13 }
 0x56e   : > { %v1553_v58 = vmul.f32 %v2081_v48, %v1367_v28  ;;  %v1953_v60 = vpop.f32.mrb[27].mxu0  ;;  %2008 = vrot.lane.b32.xlu1 %v2007_v57, %s2127_s18  ;;  %v2103_v56 = vpop.eup %2102  ;;  %v1549_v12 = vmul.f32 %v2101_v55, %v2510_v24 }
 0x56f   : > { %v2105_v48 = vpop.eup %2104 }
 0x570   : > { %v2002_v61 = vpack.i.bf16 %v1553_v58, %v1552_v40 }
 0x572   : > { %2003 = vrot.lane.b32.xlu0 %v2002_v61, %s2127_s18  ;;  %v1551_v61 = vmul.f32 %v2105_v48, %v2518_v31  ;;  %v1809_v31 = vld [vmem:[%s2590_s7] ss:$0 sm:$0xff] }
 0x574   : > { %v1505_v43 = vpop.f32.mrb[36].mxu1 }
 0x575   : > { %v1970_v63 = vpop.f32.mrb[37].mxu1  ;;  %v1558_v2 = vmul.f32 %v2083_v62, %v1505_v43 }
 0x576   : > { %v1508_v1 = vpop.f32.mrb[38].mxu1  ;;  %v1550_v63 = vmul.f32 %v2103_v56, %v2516_v19 }
 0x577   : > { %v1559_v45 = vmul.f32 %v2085_v21, %v1508_v1  ;;  %v1971_v4 = vpop.f32.mrb[39].mxu1 }
 0x578   : > { %v1458_v23 = vpop.f32.mrb[28].mxu0 }
 0x579   : > { %v2017_v49 = vpack.i.bf16 %v1559_v45, %v1558_v2  ;;  %v1964_v50 = vpop.f32.mrb[29].mxu0  ;;  %v1556_v39 = vmul.f32 %v2087_v6, %v1458_v23  ;;  %v2106_v23 = vld [vmem:[%s2189_s10 + $0x10] sm:$0xff] }
 0x57a   : > { %v1461_v18 = vpop.f32.mrb[30].mxu0 }
 0x57b   : > { %v1557_v8 = vmul.f32 %v2089_v53, %v1461_v18  ;;  %v1965_v59 = vpop.f32.mrb[31].mxu0  ;;  %v2107_v53 = vld [vmem:[%s2189_s10] sm:$0xff] }
 0x57d   : > { %v2012_v5 = vpack.i.bf16 %v1557_v8, %v1556_v39  ;;  %v2108_v8 = vld [vmem:[%s2189_s10 + $0x18] sm:$0xff] }
 0x57f   : > { %2013 = vrot.lane.b32.xlu1 %v2012_v5, %s2127_s18  ;;  %v2109_v5 = vld [vmem:[%s2189_s10 + $0x8] sm:$0xff] }
 0x583   : > { %2018 = vrot.lane.b32.xlu1 %v2017_v49, %s2127_s18 }
 0x5e0   : > { %v2009_v33 = vpop.permute.xlu1 %2008 }
 0x5e1   : > { %v2011_v37 = vunpack.i.h.bf16 %v2009_v33  ;;  %v2010_v41 = vunpack.i.l.bf16 %v2009_v33  ;;  %v2111_v33 = vld [vmem:[%s2189_s10 + $0x20] sm:$0xff] }
 0x5e3   : > { %v1595_v10 = vsel %vm573_vm2, %v1547_v36, %v2011_v37  ;;  %v1594_v46 = vsel %vm573_vm2, %v1546_v42, %v2010_v41  ;;  %v2112_v37 = vld [vmem:[%s2189_s10 + $0x38] sm:$0xff]  ;;  %v2113_v42 = vld [vmem:[%s2189_s10 + $0x28] sm:$0xff] }
 0x5e4   : > { %v1601_v47 = vpack.c.bf16 %v1595_v10, %v1594_v46  ;;  %v2004_v29 = vpop.permute.xlu0 %2003 }
 0x5e5   : > { %v2006_v38 = vunpack.i.h.bf16 %v2004_v29  ;;  %v2005_v15 = vunpack.i.l.bf16 %v2004_v29 }
 0x5e7   : > { %v1593_v27 = vsel %vm573_vm2, %v1545_v51, %v2006_v38  ;;  %v1592_v52 = vsel %vm573_vm2, %v1544_v16, %v2005_v15 }
 0x5e8   : > { %v1600_v26 = vpack.c.bf16 %v1593_v27, %v1592_v52 }
 0x5ea   : > { %1976 = vmatprep.mubr.msk.bf16.mxu0 %vm317_vm0, %v1600_v26 }
 0x5eb   : > { %1977 = vmatmul.mubr.msk.bf16.vlgmr.msra.gmra.mrb[32].mxu0 %vm317_vm0, %v1601_v47 }
 0x5f1   : > { %v2014_v25 = vpop.permute.xlu1 %2013 }
 0x5f2   : > { %v2016_v0 = vunpack.i.h.bf16 %v2014_v25  ;;  %v2015_v57 = vunpack.i.l.bf16 %v2014_v25 }
 0x5f4   : > { %v1597_v28 = vsel %vm573_vm2, %v1549_v12, %v2016_v0  ;;  %v1596_v40 = vsel %vm573_vm2, %v1548_v35, %v2015_v57 }
 0x5f5   : > { %v1602_v58 = vpack.c.bf16 %v1597_v28, %v1596_v40  ;;  %v2019_v60 = vpop.permute.xlu1 %2018 }
 0x5f6   : > { %v2021_v43 = vunpack.i.h.bf16 %v2019_v60  ;;  %v2020_v62 = vunpack.i.l.bf16 %v2019_v60 }
 0x5f7   : > { %1980 = vmatprep.mubr.msk.bf16.mxu0 %vm317_vm0, %v1602_v58 }
 0x5f8   : > { %v1599_v13 = vsel %vm573_vm2, %v1551_v61, %v2021_v43  ;;  %v1598_v24 = vsel %vm573_vm2, %v1550_v63, %v2020_v62 }
 0x5f9   : > { %v1603_v21 = vpack.c.bf16 %v1599_v13, %v1598_v24 }
 0x5fb   : > { %1981 = vmatmul.mubr.msk.bf16.gmra.mrb[36].mxu0 %vm317_vm0, %v1603_v21 }
 0x6be   : > { %v1978_v1 = vpop.f32.mrb[32].mxu0 }
 0x6bf   : > { %v1682_v2 = vadd.f32 %v1978_v1, %v1809_v31  ;;  %v1673_v45 = vpop.f32.mrb[33].mxu0 }
 0x6c0   : > { %v1674_v19 = vadd.f32 %v1809_v31, %v1673_v45  ;;  %v1979_v4 = vpop.f32.mrb[34].mxu0 }
 0x6c1   : > { %v1706_v6 = vadd.f32 %v2106_v23, %v1682_v2  ;;  %v1685_v49 = vadd.f32 %v1979_v4, %v1809_v31  ;;  %v1676_v50 = vpop.f32.mrb[35].mxu0 }
 0x6c2   : > { %v1704_v18 = vadd.f32 %v2107_v53, %v1674_v19  ;;  %v1677_v39 = vadd.f32 %v1809_v31, %v1676_v50 }
 0x6c3   : > { %1714 = vst.msk [vmem:[%s2554_s23 + $0x10] sm:$0xff] %vm317_vm0, %v1706_v6  ;;  %v1707_v59 = vadd.f32 %v2108_v8, %v1685_v49 }
 0x6c4   : > { %1712 = vst.msk [vmem:[%s2554_s23] sm:$0xff] %vm317_vm0, %v1704_v18  ;;  %v1705_v7 = vadd.f32 %v2109_v5, %v1677_v39 }
 0x6c5   : > { %1715 = vst.msk [vmem:[%s2554_s23 + $0x18] sm:$0xff] %vm317_vm0, %v1707_v59 }
 0x6c6   : > { %1713 = vst.msk [vmem:[%s2554_s23 + $0x8] sm:$0xff] %vm317_vm0, %v1705_v7 }
 0x6ce   : > { %v1982_v11 = vpop.f32.mrb[36].mxu0 }
 0x6cf   : > { %v1698_v14 = vadd.f32 %v1982_v11, %v1809_v31  ;;  %v1689_v3 = vpop.f32.mrb[37].mxu0 }
 0x6d0   : > { %v1690_v17 = vadd.f32 %v1809_v31, %v1689_v3  ;;  %v1983_v9 = vpop.f32.mrb[38].mxu0 }
 0x6d1   : > { %v1710_v20 = vadd.f32 %v2110_v22, %v1698_v14  ;;  %v1701_v30 = vadd.f32 %v1983_v9, %v1809_v31  ;;  %v1692_v32 = vpop.f32.mrb[39].mxu0 }
 0x6d2   : > { %v1708_v34 = vadd.f32 %v2111_v33, %v1690_v17  ;;  %v1693_v36 = vadd.f32 %v1809_v31, %v1692_v32 }
 0x6d3   : > { %1718 = vst.msk [vmem:[%s2554_s23 + $0x30] sm:$0xff] %vm317_vm0, %v1710_v20  ;;  %v1711_v41 = vadd.f32 %v2112_v37, %v1701_v30 }
 0x6d4   : > { %1716 = vst.msk [vmem:[%s2554_s23 + $0x20] sm:$0xff] %vm317_vm0, %v1708_v34  ;;  %v1709_v44 = vadd.f32 %v2113_v42, %v1693_v36 }
 0x6d5   : > { %1719 = vst.msk [vmem:[%s2554_s23 + $0x38] sm:$0xff] %vm317_vm0, %v1711_v41 }
 0x6d6   : > { %1717 = vst.msk [vmem:[%s2554_s23 + $0x28] sm:$0xff] %vm317_vm0, %v1709_v44 }
 0x6d7 PF: > { %s18_s27 = sadd.s32 1, %s2120_s27  }
 0x6d8   : > { %p15_p4 = scmp.ge.s32.totalorder %s18_s27, 4  }
 0x6da   :  { %17 = sbr.rel (!%p15_p4) target bundleno = 1 (0x1), region = 82 }

// kernel: video_processor_forward.14
= control target key start
LH: loop header
LB: loop body
LE: loop exit
PB: predicated region body
PF: predicated region fallthrough
CT: control target
= control target key end

     0   :  { %s2185_s27 = smov 0   ;;  %s2631_s0 = inlined_call_operand.vmem [shape: f32[2,64,32], index: 0, kind: input, shape index: {}]   ;;  %s2632_s1 = inlined_call_operand.vmem [shape: f32[1,32], index: 1, kind: input, shape index: {}]   ;;  %s2633_s2 = inlined_call_operand.vmem [shape: f32[1,32], index: 2, kind: input, shape index: {}]   ;;  %s2634_s3 = inlined_call_operand.vmem [shape: bf16[32,96], index: 3, kind: input, shape index: {}]   ;;  %s2635_s4 = inlined_call_operand.vmem [shape: f32[1,96], index: 4, kind: input, shape index: {}]   ;;  %s2636_s5 = inlined_call_operand.vmem [shape: f32[2,4,16,16], index: 5, kind: input, shape index: {}]   ;;  %s2637_s6 = inlined_call_operand.vmem [shape: bf16[32,32], index: 6, kind: input, shape index: {}]   ;;  %s2638_s7 = inlined_call_operand.vmem [shape: f32[1,32], index: 7, kind: input, shape index: {}]   ;;  %s2639_s8 = inlined_call_operand.vmem [shape: f32[2,64,32], index: 8, kind: output, shape index: {}]  }
   0x1 LB: > { %s1787_s28 = sadd.s32 4294967295, %s2132_s27   ;;  %p1791_p0 = scmp.ge.s32.totalorder %s2132_s27, 1  ;;  %s2132_s27 = sphi %s2185_s27, %s18_s27  }
   0x2   : > { %p262_p1 = scmp.lt.s32.totalorder %s2132_s27, 3 }
   0x4   : > { %p263_p2 = pnand %p1791_p0, %p262_p1 }
   0x5   : > { %p296_p3 = scmp.lt.s32.totalorder (!%p263_p2), %s1787_s28, 1  ;;  %vm317_vm0 = vcmask (!%p263_p2), 261120   ;;  %v2034_v56 = vld [vmem:[%s2634_s3] sm:$0xff] (!%p263_p2)   ;;  %v2035_v57 = vld [vmem:[%s2634_s3 + $0x8] sm:$0xff] (!%p263_p2)   ;;  %vm2135_vm1 = vmmov (!%p263_p2), 0   ;;  %s2136_s21 = smov (!%p263_p2), 112  }
   0x6   : > { %266 = sbr.rel (%p263_p2) target bundleno = 1751 (0x6d7), region = 52  ;;  %1876 = vmatprep.subr.bf16.mxu0 (!%p263_p2), %v2034_v56  ;;  %1996 = vmatprep.subr.bf16.mxu1 (!%p263_p2), %v2034_v56  ;;  %s2137_s22 = smov (!%p263_p2), 96   ;;  %vm573_vm2 = vcmask (!%p263_p2), 130048  }
   0x7   : > { %1877 = vmatpush3.bf16.msra.mxu0 (!%p263_p2), %v2034_v56  ;;  %1998 = vmatpush3.bf16.msra.mxu1 (!%p263_p2), %v2034_v56  ;;  %s2138_s23 = smov (!%p263_p2), 64   ;;  %s2139_s25 = smov (!%p263_p2), 16  }
   0x8   : > { %1878 = vmatprep.subr.bf16.mxu0 (!%p263_p2), %v2035_v57  ;;  %1997 = vmatprep.subr.bf16.mxu1 (!%p263_p2), %v2035_v57 }
   0xb   : > { %1879 = vmatpush3.bf16.msra.mxu0 (!%p263_p2), %v2035_v57  ;;  %1999 = vmatpush3.bf16.msra.mxu1 (!%p263_p2), %v2035_v57 }
   0xd   : > { %s2641_s28 = smov (!%p296_p3, %s1787_s28), 1 }
   0xe   : > { %s1830_s29 = sshll.u32 %s2641_s28, 6 }
   0xf   : > { %s2201_s10 = scalar_lea.vmem %s2631_s0, %s1830_s29  ;;  %s2602_s12 = scalar_lea.vmem %s2639_s8, %s1830_s29 }
  0x10   : > { %v307_v0 = vld [vmem:[%s2201_s10] sm:$0xff]  ;;  %v309_v1 = vld [vmem:[%s2201_s10 + $0x10] sm:$0xff]  ;;  %v308_v2 = vld [vmem:[%s2201_s10 + $0x8] sm:$0xff] }
  0x11   : > { %v318_v3 = vsel %vm317_vm0, %v307_v0, 0.0  ;;  %v324_v4 = vsel %vm317_vm0, %v309_v1, 0.0  ;;  %v310_v5 = vld [vmem:[%s2201_s10 + $0x18] sm:$0xff]  ;;  %v321_v6 = vsel %vm317_vm0, %v308_v2, 0.0  ;;  %v311_v8 = vld [vmem:[%s2201_s10 + $0x20] sm:$0xff]  ;;  %v312_v9 = vld [vmem:[%s2201_s10 + $0x28] sm:$0xff] }
  0x12   : > { %319 = vadd.xlane.f32.xlu0 %v318_v3  ;;  %325 = vadd.xlane.f32.xlu1 %v324_v4  ;;  %v327_v7 = vsel %vm317_vm0, %v310_v5, 0.0  ;;  %v330_v10 = vsel %vm317_vm0, %v311_v8, 0.0  ;;  %v333_v11 = vsel %vm317_vm0, %v312_v9, 0.0  ;;  %v313_v12 = vld [vmem:[%s2201_s10 + $0x30] sm:$0xff]  ;;  %v314_v13 = vld [vmem:[%s2201_s10 + $0x38] sm:$0xff] }
  0x13   : > { %v336_v14 = vsel %vm317_vm0, %v313_v12, 0.0  ;;  %v339_v15 = vsel %vm317_vm0, %v314_v13, 0.0 }
  0x16   : > { %322 = vadd.xlane.f32.xlu0 %v321_v6  ;;  %328 = vadd.xlane.f32.xlu1 %v327_v7 }
  0x1a   : > { %331 = vadd.xlane.f32.xlu0 %v330_v10  ;;  %334 = vadd.xlane.f32.xlu1 %v333_v11 }
  0x1e   : > { %337 = vadd.xlane.f32.xlu0 %v336_v14  ;;  %340 = vadd.xlane.f32.xlu1 %v339_v15 }
  0x9f   : > { %v320_v16 = vpop.xlane.xlu0 %319  ;;  %v326_v17 = vpop.xlane.xlu1 %325 }
  0xa0   : > { %v343_v18 = vmul.f32 0.03125, %v320_v16  ;;  %v345_v19 = vmul.f32 0.03125, %v326_v17 }
  0xa2   : > { %v2219_v20 = vsub.f32 %v307_v0, %v343_v18  ;;  %v2221_v21 = vsub.f32 %v309_v1, %v345_v19  ;;  %v1796_v19 = vld [vmem:[%s2632_s1] ss:$0 sm:$0xff] }
  0xa3   : > { %v323_v22 = vpop.xlane.xlu0 %322  ;;  %v329_v23 = vpop.xlane.xlu1 %328 }
  0xa4   : > { %v344_v24 = vmul.f32 0.03125, %v323_v22  ;;  %v346_v25 = vmul.f32 0.03125, %v329_v23  ;;  %v359_v26 = vmul.f32 %v2219_v20, %v2219_v20  ;;  %v361_v27 = vmul.f32 %v2221_v21, %v2221_v21 }
  0xa6   : > { %v2227_v28 = vsub.f32 %v308_v2, %v344_v24  ;;  %v2229_v29 = vsub.f32 %v310_v5, %v346_v25  ;;  %v367_v30 = vsel %vm317_vm0, %v359_v26, 0.0  ;;  %v373_v33 = vsel %vm317_vm0, %v361_v27, 0.0 }
  0xa7   : > { %368 = vadd.xlane.f32.xlu0 %v367_v30  ;;  %v332_v31 = vpop.xlane.xlu0 %331  ;;  %v335_v32 = vpop.xlane.xlu1 %334 }
  0xa8   : > { %v347_v34 = vmul.f32 0.03125, %v332_v31  ;;  %v348_v35 = vmul.f32 0.03125, %v335_v32  ;;  %v360_v36 = vmul.f32 %v2227_v28, %v2227_v28  ;;  %v362_v37 = vmul.f32 %v2229_v29, %v2229_v29 }
  0xaa   : > { %v2237_v38 = vsub.f32 %v311_v8, %v347_v34  ;;  %v2239_v39 = vsub.f32 %v312_v9, %v348_v35  ;;  %v370_v40 = vsel %vm317_vm0, %v360_v36, 0.0  ;;  %v376_v43 = vsel %vm317_vm0, %v362_v37, 0.0 }
  0xab   : > { %374 = vadd.xlane.f32.xlu0 %v373_v33  ;;  %371 = vadd.xlane.f32.xlu1 %v370_v40  ;;  %v338_v41 = vpop.xlane.xlu0 %337  ;;  %v341_v42 = vpop.xlane.xlu1 %340 }
  0xac   : > { %v349_v44 = vmul.f32 0.03125, %v338_v41  ;;  %v350_v45 = vmul.f32 0.03125, %v341_v42  ;;  %v363_v46 = vmul.f32 %v2237_v38, %v2237_v38  ;;  %v364_v47 = vmul.f32 %v2239_v39, %v2239_v39 }
  0xae   : > { %v2247_v48 = vsub.f32 %v313_v12, %v349_v44  ;;  %v2249_v49 = vsub.f32 %v314_v13, %v350_v45  ;;  %v379_v50 = vsel %vm317_vm0, %v363_v46, 0.0  ;;  %v382_v51 = vsel %vm317_vm0, %v364_v47, 0.0 }
  0xaf   : > { %377 = vadd.xlane.f32.xlu1 %v376_v43  ;;  %380 = vadd.xlane.f32.xlu0 %v379_v50 }
  0xb0   : > { %v365_v52 = vmul.f32 %v2247_v48, %v2247_v48  ;;  %v366_v53 = vmul.f32 %v2249_v49, %v2249_v49 }
  0xb2   : > { %v385_v54 = vsel %vm317_vm0, %v365_v52, 0.0  ;;  %v388_v55 = vsel %vm317_vm0, %v366_v53, 0.0 }
  0xb3   : > { %383 = vadd.xlane.f32.xlu1 %v382_v51  ;;  %386 = vadd.xlane.f32.xlu0 %v385_v54 }
  0xb7   : > { %389 = vadd.xlane.f32.xlu1 %v388_v55 }
 0x134   : > { %v369_v58 = vpop.xlane.xlu0 %368 }
 0x135   : > { %v391_v59 = vmul.f32 0.03125, %v369_v58  ;;  %v1798_v58 = vld [vmem:[%s2635_s4] ss:$0 sm:$0xff] }
 0x137   : > { %v399_v60 = vadd.f32 1e-05, %v391_v59 }
 0x138   : > { %v372_v61 = vpop.xlane.xlu1 %371  ;;  %v375_v62 = vpop.xlane.xlu0 %374 }
 0x139   : > { %2038 = vrsqrt.f32 %v399_v60  ;;  %v392_v63 = vmul.f32 0.03125, %v372_v61  ;;  %v393_v0 = vmul.f32 0.03125, %v375_v62 }
 0x13b   : > { %v400_v1 = vadd.f32 1e-05, %v392_v63  ;;  %v401_v2 = vadd.f32 1e-05, %v393_v0 }
 0x13c   : > { %v378_v3 = vpop.xlane.xlu1 %377  ;;  %v381_v4 = vpop.xlane.xlu0 %380 }
 0x13d   : > { %2040 = vrsqrt.f32 %v400_v1  ;;  %v394_v5 = vmul.f32 0.03125, %v378_v3  ;;  %v395_v6 = vmul.f32 0.03125, %v381_v4 }
 0x13e   : > { %2042 = vrsqrt.f32 %v401_v2 }
 0x13f   : > { %v402_v7 = vadd.f32 1e-05, %v394_v5  ;;  %v403_v8 = vadd.f32 1e-05, %v395_v6 }
 0x140   : > { %v384_v9 = vpop.xlane.xlu1 %383  ;;  %v387_v10 = vpop.xlane.xlu0 %386 }
 0x141   : > { %2044 = vrsqrt.f32 %v402_v7  ;;  %v396_v11 = vmul.f32 0.03125, %v384_v9  ;;  %v397_v12 = vmul.f32 0.03125, %v387_v10 }
 0x142   : > { %2046 = vrsqrt.f32 %v403_v8 }
 0x143   : > { %v2039_v13 = vpop.eup %2038  ;;  %v404_v14 = vadd.f32 1e-05, %v396_v11  ;;  %v405_v15 = vadd.f32 1e-05, %v397_v12 }
 0x144   : > { %v390_v16 = vpop.xlane.xlu1 %389  ;;  %v415_v17 = vmul.f32 %v2039_v13, %v2219_v20  ;;  %v1797_v20 = vld [vmem:[%s2633_s2] ss:$0 sm:$0xff] }
 0x145   : > { %2048 = vrsqrt.f32 %v404_v14  ;;  %v398_v18 = vmul.f32 0.03125, %v390_v16 }
 0x146   : > { %2050 = vrsqrt.f32 %v405_v15  ;;  %v429_v26 = vmul.f32 %v1796_v19, %v415_v17 }
 0x147   : > { %v2041_v22 = vpop.eup %2040  ;;  %v406_v23 = vadd.f32 1e-05, %v398_v18 }
 0x148   : > { %v2043_v24 = vpop.eup %2042  ;;  %v416_v25 = vmul.f32 %v2041_v22, %v2227_v28  ;;  %v443_v34 = vadd.f32 %v1797_v20, %v429_v26 }
 0x149   : > { %v417_v27 = vmul.f32 %v2043_v24, %v2221_v21  ;;  %2052 = vrsqrt.f32 %v406_v23 }
 0x14a   : > { %v430_v30 = vmul.f32 %v1796_v19, %v416_v25 }
 0x14b   : > { %v2045_v31 = vpop.eup %2044  ;;  %v431_v36 = vmul.f32 %v1796_v19, %v417_v27 }
 0x14c   : > { %v2047_v32 = vpop.eup %2046  ;;  %v418_v33 = vmul.f32 %v2045_v31, %v2229_v29  ;;  %v444_v35 = vadd.f32 %v1797_v20, %v430_v30 }
 0x14d   : > { %v419_v37 = vmul.f32 %v2047_v32, %v2237_v38  ;;  %v445_v21 = vadd.f32 %v1797_v20, %v431_v36 }
 0x14e   : > { %v451_v40 = vpack.c.bf16 %v444_v35, %v443_v34  ;;  %v432_v28 = vmul.f32 %v1796_v19, %v418_v33 }
 0x14f   : > { %v2049_v41 = vpop.eup %2048  ;;  %v433_v45 = vmul.f32 %v1796_v19, %v419_v37 }
 0x150   : > { %v2051_v42 = vpop.eup %2050  ;;  %1880 = vmatprep.mubr.msk.bf16.mxu0 %vm317_vm0, %v451_v40  ;;  %v446_v43 = vadd.f32 %v1797_v20, %v432_v28  ;;  %v420_v44 = vmul.f32 %v2049_v41, %v2239_v39  ;;  %v964_v28 = vld [vmem:[%s2636_s5] sm:$0xff] }
 0x151   : > { %v421_v46 = vmul.f32 %v2051_v42, %v2247_v48  ;;  %v447_v38 = vadd.f32 %v1797_v20, %v433_v45  ;;  %v965_v42 = vld [vmem:[%s2636_s5 + $0x8] sm:$0xff]  ;;  %v968_v45 = vld [vmem:[%s2636_s5 + $0x20] sm:$0xff] }
 0x152   : > { %v452_v47 = vpack.c.bf16 %v446_v43, %v445_v21  ;;  %v434_v29 = vmul.f32 %v1796_v19, %v420_v44 }
 0x153   : > { %v2053_v50 = vpop.eup %2052  ;;  %v435_v53 = vmul.f32 %v1796_v19, %v421_v46 }
 0x154   : > { %v422_v51 = vmul.f32 %v2053_v50, %v2249_v49  ;;  %1881 = vmatmul.mubr.msk.bf16.vlgmr.msra.gmra.mrb[0].mxu0 %vm317_vm0, %v452_v47  ;;  %v448_v52 = vadd.f32 %v1797_v20, %v434_v29  ;;  %v2134_v49 = vmov 0.0  }
 0x155   : > { %v449_v56 = vadd.f32 %v1797_v20, %v435_v53  ;;  %1888 = vmatprep.subr.bf16.mxu1 %v2134_v49  ;;  %1900 = vmatprep.subr.bf16.mxu0 %v2134_v49 }
 0x156   : > { %v453_v54 = vpack.c.bf16 %v448_v52, %v447_v38  ;;  %v436_v55 = vmul.f32 %v1796_v19, %v422_v51  ;;  %1902 = vmatprep.mubr.msk.bf16.mxu0 %vm2135_vm1, %v2134_v49  ;;  %v969_v51 = vld [vmem:[%s2636_s5 + $0x28] sm:$0xff] }
 0x158   : > { %1884 = vmatprep.mubr.msk.bf16.mxu1 %vm317_vm0, %v453_v54  ;;  %v450_v57 = vadd.f32 %v1797_v20, %v436_v55 }
 0x15a   : > { %v454_v39 = vpack.c.bf16 %v450_v57, %v449_v56 }
 0x15c   : > { %1885 = vmatmul.mubr.msk.bf16.vlgmr.msra.gmra.mrb[0].mxu1 %vm317_vm0, %v454_v39 }
 0x15d   : > { %1890 = vmatprep.mubr.msk.bf16.mxu1 %vm2135_vm1, %v2134_v49 }
 0x227   : > { %v1882_v48 = vpop.f32.mrb[0].mxu0 }
 0x228   : > { %v524_v59 = vpop.f32.mrb[1].mxu0  ;;  %v533_v61 = vadd.f32 %v1882_v48, %v1798_v58  ;;  %v966_v48 = vld [vmem:[%s2636_s5 + $0x10] sm:$0xff] }
 0x229   : > { %v1883_v60 = vpop.f32.mrb[2].mxu0  ;;  %v525_v0 = vadd.f32 %v1798_v58, %v524_v59  ;;  %v967_v59 = vld [vmem:[%s2636_s5 + $0x18] sm:$0xff] }
 0x22a   : > { %v536_v62 = vadd.f32 %v1883_v60, %v1798_v58  ;;  %v527_v63 = vpop.f32.mrb[3].mxu0 }
 0x22b   : > { %v528_v1 = vadd.f32 %v1798_v58, %v527_v63 }
 0x22c   : > { %v556_v2 = vpack.c.bf16 %v536_v62, %v533_v61 }
 0x22d   : > { %v555_v3 = vpack.c.bf16 %v528_v1, %v525_v0 }
 0x22e   : > { %565 = vrot.lane.b32.xlu1 %v556_v2, %s2136_s21 }
 0x22f   : > { %563 = vrot.lane.b32.xlu0 %v555_v3, %s2136_s21  ;;  %v1886_v4 = vpop.f32.mrb[0].mxu1 }
 0x230   : > { %v540_v5 = vpop.f32.mrb[1].mxu1  ;;  %v549_v7 = vadd.f32 %v1886_v4, %v1798_v58 }
 0x231   : > { %v1887_v6 = vpop.f32.mrb[2].mxu1  ;;  %v541_v10 = vadd.f32 %v1798_v58, %v540_v5  ;;  %v971_v5 = vld [vmem:[%s2636_s5 + $0x38] sm:$0xff] }
 0x232   : > { %v552_v8 = vadd.f32 %v1887_v6, %v1798_v58  ;;  %v543_v9 = vpop.f32.mrb[3].mxu1 }
 0x233   : > { %v544_v11 = vadd.f32 %v1798_v58, %v543_v9  ;;  %571 = vrot.lane.b32.xlu0 %v555_v3, %s2137_s22 }
 0x234   : > { %v558_v12 = vpack.c.bf16 %v552_v8, %v549_v7 }
 0x235   : > { %v557_v13 = vpack.c.bf16 %v544_v11, %v541_v10 }
 0x237   : > { %670 = vrot.lane.b32.xlu0 %v557_v13, %s2137_s22  ;;  %567 = vrot.lane.b32.xlu1 %v557_v13, %s2136_s21 }
 0x23b   : > { %569 = vrot.lane.b32.xlu1 %v558_v12, %s2136_s21 }
 0x23f   : > { %621 = vrot.lane.b32.xlu1 %v556_v2, %s2137_s22 }
 0x243   : > { %719 = vrot.lane.b32.xlu1 %v558_v12, %s2137_s22 }
 0x2a0   : > { %v566_v14 = vpop.permute.xlu1 %565 }
 0x2a1   : > { %817 = vrot.lane.b32.xlu1 %v566_v14, %s2137_s22  ;;  %v564_v15 = vpop.permute.xlu0 %563 }
 0x2a2   : > { %768 = vrot.lane.b32.xlu0 %v564_v15, %s2137_s22 }
 0x2a5   : > { %v572_v16 = vpop.permute.xlu0 %571 }
 0x2a6   : > { %v578_v17 = vsel %vm573_vm2, %v572_v16, 0  ;;  %v975_v16 = vld [vmem:[%s2636_s5 + $0x58] sm:$0xff] }
 0x2a7   : > { %1889 = vmatpush3.bf16.xpose.msra.mxu1 %v578_v17 }
 0x2a8   : > { %1894 = vmatprep.subr.bf16.mxu1 %v2134_v49 }
 0x2a9   : > { %v2294_v18 = vpop.permute.xlu1 %567  ;;  %v671_v19 = vpop.permute.xlu0 %670 }
 0x2aa   : > { %v676_v22 = vsel %vm573_vm2, %v671_v19, 0  ;;  %866 = vrot.lane.b32.xlu0 %v2294_v18, %s2137_s22 }
 0x2ab   : > { %1901 = vmatpush3.bf16.xpose.msra.mxu0 %v676_v22 }
 0x2ac   : > { %1912 = vmatprep.subr.bf16.mxu0 %v2134_v49 }
 0x2ad   : > { %v2299_v23 = vpop.permute.xlu1 %569 }
 0x2ae   : > { %915 = vrot.lane.b32.xlu1 %v2299_v23, %s2137_s22  ;;  %1148 = vrot.lane.b32.xlu0 %v555_v3, %s2138_s23 }
 0x2af   : > { %1891 = vmatmul.mubr.msk.bf16.vlgmr.msra.gmra.mrb[4].mxu1 %vm573_vm2, %v555_v3 }
 0x2b0   : > { %1896 = vmatprep.mubr.msk.bf16.mxu1 %vm2135_vm1, %v2134_v49 }
 0x2b1   : > { %v622_v24 = vpop.permute.xlu1 %621 }
 0x2b2   : > { %v627_v25 = vsel %vm573_vm2, %v622_v24, 0  ;;  %1195 = vrot.lane.b32.xlu1 %v556_v2, %s2138_s23  ;;  %1336 = vrot.lane.b32.xlu0 %v564_v15, %s2138_s23 }
 0x2b3   : > { %1903 = vmatmul.mubr.msk.bf16.vlgmr.msra.gmra.mrb[4].mxu0 %vm573_vm2, %v557_v13  ;;  %1895 = vmatpush3.bf16.xpose.msra.mxu1 %v627_v25 }
 0x2b4   : > { %1906 = vmatprep.subr.bf16.mxu1 %v2134_v49  ;;  %1914 = vmatprep.mubr.msk.bf16.mxu0 %vm2135_vm1, %v2134_v49 }
 0x2b5   : > { %v720_v26 = vpop.permute.xlu1 %719 }
 0x2b6   : > { %1242 = vrot.lane.b32.xlu1 %v557_v13, %s2138_s23  ;;  %v725_v27 = vsel %vm573_vm2, %v720_v26, 0  ;;  %v974_v13 = vld [vmem:[%s2636_s5 + $0x50] sm:$0xff]  ;;  %v973_v26 = vld [vmem:[%s2636_s5 + $0x48] sm:$0xff] }
 0x2ba   : > { %1289 = vrot.lane.b32.xlu1 %v558_v12, %s2138_s23  ;;  %1897 = vmatmul.mubr.msk.bf16.vlgmr.msra.gmra.mrb[8].mxu1 %vm573_vm2, %v556_v2  ;;  %v970_v2 = vld [vmem:[%s2636_s5 + $0x30] sm:$0xff] }
 0x2bb   : > { %1907 = vmatpush3.bf16.xpose.msra.mxu1 %v725_v27  ;;  %1908 = vmatprep.mubr.msk.bf16.mxu1 %vm2135_vm1, %v2134_v49 }
 0x2bc   : > { %1918 = vmatprep.subr.bf16.mxu1 %v2134_v49 }
 0x2be   : > { %1383 = vrot.lane.b32.xlu1 %v566_v14, %s2138_s23 }
 0x2c2   : > { %1909 = vmatmul.mubr.msk.bf16.vlgmr.msra.gmra.mrb[12].mxu1 %vm573_vm2, %v558_v12 }
 0x2c3   : > { %1920 = vmatprep.mubr.msk.bf16.mxu1 %vm2135_vm1, %v2134_v49 }
 0x313   : > { %v818_v20 = vpop.permute.xlu1 %817 }
 0x314   : > { %v823_v30 = vsel %vm573_vm2, %v818_v20, 0  ;;  %v769_v31 = vpop.permute.xlu0 %768 }
 0x315   : > { %v774_v32 = vsel %vm573_vm2, %v769_v31, 0  ;;  %1919 = vmatpush3.bf16.xpose.msra.mxu1 %v823_v30 }
 0x316   : > { %1913 = vmatpush3.bf16.xpose.msra.mxu0 %v774_v32  ;;  %1930 = vmatprep.subr.bf16.mxu1 %v2134_v49 }
 0x317   : > { %1924 = vmatprep.subr.bf16.mxu0 %v2134_v49 }
 0x31c   : > { %1921 = vmatmul.mubr.msk.bf16.vlgmr.msra.gmra.mrb[16].mxu1 %vm573_vm2, %v566_v14  ;;  %v867_v33 = vpop.permute.xlu0 %866 }
 0x31d   : > { %v872_v34 = vsel %vm573_vm2, %v867_v33, 0  ;;  %1915 = vmatmul.mubr.msk.bf16.vlgmr.msra.gmra.mrb[8].mxu0 %vm573_vm2, %v564_v15  ;;  %1932 = vmatprep.mubr.msk.bf16.mxu1 %vm2135_vm1, %v2134_v49  ;;  %v972_v15 = vld [vmem:[%s2636_s5 + $0x40] sm:$0xff] }
 0x31e   : > { %1925 = vmatpush3.bf16.xpose.msra.mxu0 %v872_v34  ;;  %1926 = vmatprep.mubr.msk.bf16.mxu0 %vm2135_vm1, %v2134_v49 }
 0x31f   : > { %1936 = vmatprep.subr.bf16.mxu0 %v2134_v49 }
 0x320   : > { %v916_v35 = vpop.permute.xlu1 %915  ;;  %v1149_v37 = vpop.permute.xlu0 %1148 }
 0x321   : > { %v921_v36 = vsel %vm573_vm2, %v916_v35, 0 }
 0x322   : > { %1931 = vmatpush3.bf16.xpose.msra.mxu1 %v921_v36 }
 0x323   : > { %1942 = vmatprep.subr.bf16.mxu1 %v2134_v49 }
 0x324   : > { %v1196_v40 = vpop.permute.xlu1 %1195 }
 0x325   : > { %1927 = vmatmul.mubr.msk.bf16.vlgmr.msra.gmra.mrb[12].mxu0 %vm573_vm2, %v2294_v18 }
 0x326   : > { %1937 = vmatpush3.bf16.msra.mxu0 %v1149_v37  ;;  %1938 = vmatprep.mubr.msk.bf16.mxu0 %vm2135_vm1, %v2134_v49 }
 0x327   : > { %1948 = vmatprep.subr.bf16.mxu0 %v2134_v49 }
 0x329   : > { %1933 = vmatmul.mubr.msk.bf16.vlgmr.msra.gmra.mrb[20].mxu1 %vm573_vm2, %v2299_v23 }
 0x32a   : > { %1943 = vmatpush3.bf16.msra.mxu1 %v1196_v40  ;;  %1944 = vmatprep.mubr.msk.bf16.mxu1 %vm2135_vm1, %v2134_v49 }
 0x32b   : > { %1954 = vmatprep.subr.bf16.mxu1 %v2134_v49 }
 0x382   : > { %v614_v41 = vpop.f32.mrb[4].mxu1 }
 0x383   : > { %v2354_v21 = vadd.f32 %v964_v28, %v614_v41  ;;  %v1892_v43 = vpop.f32.mrb[5].mxu1 }
 0x384   : > { %v617_v44 = vpop.f32.mrb[6].mxu1 }
 0x385   : > { %v2359_v46 = vadd.f32 %v965_v42, %v617_v44  ;;  %v1893_v47 = vpop.f32.mrb[7].mxu1  ;;  %v996_v29 = vsel %vm573_vm2, %v2354_v21, -inf  ;;  %v978_v42 = vld [vmem:[%s2636_s5 + $0x70] sm:$0xff]  ;;  %v976_v44 = vld [vmem:[%s2636_s5 + $0x60] sm:$0xff] }
 0x386   : > { %997 = vmax.xlane.f32.xlu0 %v996_v29  ;;  %v712_v50 = vpop.f32.mrb[4].mxu0  ;;  %v979_v47 = vld [vmem:[%s2636_s5 + $0x78] sm:$0xff] }
 0x387   : > { %v2366_v38 = vadd.f32 %v968_v45, %v712_v50  ;;  %v1904_v52 = vpop.f32.mrb[5].mxu0  ;;  %v999_v53 = vsel %vm573_vm2, %v2359_v46, -inf }
 0x388   : > { %1000 = vmax.xlane.f32.xlu1 %v999_v53  ;;  %v715_v54 = vpop.f32.mrb[6].mxu0 }
 0x389   : > { %v2370_v55 = vadd.f32 %v969_v51, %v715_v54  ;;  %v1905_v56 = vpop.f32.mrb[7].mxu0  ;;  %v1008_v57 = vsel %vm573_vm2, %v2366_v38, -inf  ;;  %v977_v51 = vld [vmem:[%s2636_s5 + $0x68] sm:$0xff] }
 0x38a   : > { %1009 = vmax.xlane.f32.xlu0 %v1008_v57 }
 0x38b   : > { %v1011_v39 = vsel %vm573_vm2, %v2370_v55, -inf }
 0x38c   : > { %1012 = vmax.xlane.f32.xlu1 %v1011_v39 }
 0x38d   : > { %v663_v58 = vpop.f32.mrb[8].mxu1 }
 0x38e   : > { %v2382_v60 = vadd.f32 %v966_v48, %v663_v58  ;;  %v1898_v61 = vpop.f32.mrb[9].mxu1 }
 0x38f   : > { %v666_v62 = vpop.f32.mrb[10].mxu1 }
 0x390   : > { %v2384_v63 = vadd.f32 %v967_v59, %v666_v62  ;;  %v1899_v0 = vpop.f32.mrb[11].mxu1  ;;  %v1002_v1 = vsel %vm573_vm2, %v2382_v60, -inf  ;;  %v1243_v59 = vpop.permute.xlu1 %1242 }
 0x391   : > { %1003 = vmax.xlane.f32.xlu0 %v1002_v1  ;;  %v1337_v0 = vpop.permute.xlu0 %1336 }
 0x392   : > { %v1005_v3 = vsel %vm573_vm2, %v2384_v63, -inf }
 0x394   : > { %v1290_v62 = vpop.permute.xlu1 %1289 }
 0x395   : > { %v761_v4 = vpop.f32.mrb[12].mxu1  ;;  %1006 = vmax.xlane.f32.xlu0 %v1005_v3 }
 0x396   : > { %v2396_v6 = vadd.f32 %v970_v2, %v761_v4  ;;  %v1910_v7 = vpop.f32.mrb[13].mxu1 }
 0x397   : > { %v764_v8 = vpop.f32.mrb[14].mxu1 }
 0x398   : > { %v2398_v9 = vadd.f32 %v971_v5, %v764_v8  ;;  %v1911_v10 = vpop.f32.mrb[15].mxu1  ;;  %v1014_v11 = vsel %vm573_vm2, %v2396_v6, -inf  ;;  %v1384_v1 = vpop.permute.xlu1 %1383 }
 0x399   : > { %1015 = vmax.xlane.f32.xlu0 %v1014_v11 }
 0x39a   : > { %v1017_v12 = vsel %vm573_vm2, %v2398_v9, -inf }
 0x39b   : > { %1018 = vmax.xlane.f32.xlu1 %v1017_v12 }
 0x3ef   : > { %v859_v14 = vpop.f32.mrb[16].mxu1 }
 0x3f0   : > { %v2413_v17 = vadd.f32 %v974_v13, %v859_v14  ;;  %v810_v19 = vpop.f32.mrb[8].mxu0  ;;  %v1922_v22 = vpop.f32.mrb[17].mxu1 }
 0x3f1   : > { %v1916_v24 = vpop.f32.mrb[9].mxu0  ;;  %v862_v25 = vpop.f32.mrb[18].mxu1  ;;  %v2418_v27 = vadd.f32 %v972_v15, %v810_v19 }
 0x3f2   : > { %v2420_v20 = vadd.f32 %v975_v16, %v862_v25  ;;  %v813_v30 = vpop.f32.mrb[10].mxu0  ;;  %v1923_v31 = vpop.f32.mrb[19].mxu1  ;;  %v1026_v32 = vsel %vm573_vm2, %v2413_v17, -inf }
 0x3f3   : > { %1027 = vmax.xlane.f32.xlu0 %v1026_v32  ;;  %v1917_v33 = vpop.f32.mrb[11].mxu0  ;;  %v2424_v34 = vadd.f32 %v973_v26, %v813_v30  ;;  %v1020_v36 = vsel %vm573_vm2, %v2418_v27, -inf }
 0x3f4   : > { %v1029_v35 = vsel %vm573_vm2, %v2420_v20, -inf }
 0x3f5   : > { %1030 = vmax.xlane.f32.xlu1 %v1029_v35  ;;  %v1023_v40 = vsel %vm573_vm2, %v2424_v34, -inf }
 0x3f7   : > { %1021 = vmax.xlane.f32.xlu0 %v1020_v36 }
 0x3f8   : > { %v908_v37 = vpop.f32.mrb[12].mxu0 }
 0x3f9   : > { %1024 = vmax.xlane.f32.xlu1 %v1023_v40  ;;  %v1928_v28 = vpop.f32.mrb[13].mxu0  ;;  %v2446_v53 = vadd.f32 %v976_v44, %v908_v37 }
 0x3fa   : > { %v911_v41 = vpop.f32.mrb[14].mxu0 }
 0x3fb   : > { %v1929_v43 = vpop.f32.mrb[15].mxu0  ;;  %v2452_v39 = vadd.f32 %v977_v51, %v911_v41  ;;  %v1032_v58 = vsel %vm573_vm2, %v2446_v53, -inf }
 0x3fc   : > { %v957_v45 = vpop.f32.mrb[20].mxu1 }
 0x3fd   : > { %v2441_v29 = vadd.f32 %v978_v42, %v957_v45  ;;  %v1934_v50 = vpop.f32.mrb[21].mxu1  ;;  %v1035_v61 = vsel %vm573_vm2, %v2452_v39, -inf }
 0x3fe   : > { %v960_v52 = vpop.f32.mrb[22].mxu1 }
 0x3ff   : > { %v2448_v54 = vadd.f32 %v979_v47, %v960_v52  ;;  %v1935_v56 = vpop.f32.mrb[23].mxu1  ;;  %v1038_v57 = vsel %vm573_vm2, %v2441_v29, -inf }
 0x400   : > { %1039 = vmax.xlane.f32.xlu0 %v1038_v57 }
 0x401   : > { %v1041_v48 = vsel %vm573_vm2, %v2448_v54, -inf }
 0x402   : > { %1042 = vmax.xlane.f32.xlu1 %v1041_v48 }
 0x404   : > { %1033 = vmax.xlane.f32.xlu0 %v1032_v58 }
 0x406   : > { %1036 = vmax.xlane.f32.xlu1 %v1035_v61 }
 0x413   : > { %v998_v2 = vpop.xlane.xlu0 %997 }
 0x414   : > { %v1044_v3 = vsub.f32 %v2354_v21, %v998_v2 }
 0x415   : > { %v1001_v4 = vpop.xlane.xlu1 %1000 }
 0x416   : > { %v1060_v5 = vmul.f32 1.442695, %v1044_v3  ;;  %v1045_v7 = vsub.f32 %v2359_v46, %v1001_v4 }
 0x417   : > { %v1010_v8 = vpop.xlane.xlu0 %1009  ;;  %1477 = vrot.lane.b32.xlu1 %v2299_v23, %s2138_s23 }
 0x418   : > { %v1062_v10 = vmul.f32 1.442695, %v1045_v7  ;;  %2054 = vpow2.f32 %v1060_v5  ;;  %v1048_v12 = vsub.f32 %v2366_v38, %v1010_v8 }
 0x419   : > { %v1013_v11 = vpop.xlane.xlu1 %1012 }
 0x41a   : > { %2056 = vpow2.f32 %v1062_v10  ;;  %v1049_v13 = vsub.f32 %v2370_v55, %v1013_v11  ;;  %1430 = vrot.lane.b32.xlu0 %v2294_v18, %s2138_s23  ;;  %v1068_v14 = vmul.f32 1.442695, %v1048_v12 }
 0x41c   : > { %v1070_v21 = vmul.f32 1.442695, %v1049_v13 }
 0x41e   : > { %v1004_v15 = vpop.xlane.xlu0 %1003  ;;  %2058 = vpow2.f32 %v1070_v21 }
 0x41f   : > { %v1046_v46 = vsub.f32 %v2382_v60, %v1004_v15  ;;  %2060 = vpow2.f32 %v1068_v14 }
 0x421   : > { %v1064_v16 = vmul.f32 1.442695, %v1046_v46 }
 0x422   : > { %v1007_v23 = vpop.xlane.xlu0 %1006  ;;  %v2469_v19 = vpop.eup %2054 }
 0x423   : > { %v1047_v22 = vsub.f32 %v2384_v63, %v1007_v23  ;;  %2062 = vpow2.f32 %v1064_v16 }
 0x424   : > { %v2472_v24 = vpop.eup %2056 }
 0x425   : > { %v1066_v38 = vmul.f32 1.442695, %v1047_v22  ;;  %v1140_v55 = vpack.c.bf16 %v2472_v24, %v2469_v19 }
 0x426   : > { %v1016_v18 = vpop.xlane.xlu0 %1015 }
 0x427   : > { %2064 = vpow2.f32 %v1066_v38  ;;  %1939 = vmatmul.mubr.msk.bf16.vlgmr.msra.gmra.mrb[16].mxu0 %vm573_vm2, %v1140_v55  ;;  %v1050_v60 = vsub.f32 %v2396_v6, %v1016_v18  ;;  %v1092_v55 = vsel %vm573_vm2, %v2469_v19, 0.0  ;;  %v1095_v18 = vsel %vm573_vm2, %v2472_v24, 0.0 }
 0x428   : > { %1949 = vmatpush3.bf16.msra.mxu0 %v1243_v59  ;;  %v1019_v25 = vpop.xlane.xlu1 %1018  ;;  %1950 = vmatprep.mubr.msk.bf16.mxu0 %vm2135_vm1, %v2134_v49  ;;  %v2482_v26 = vpop.eup %2058 }
 0x429   : > { %v1051_v63 = vsub.f32 %v2398_v9, %v1019_v25  ;;  %1960 = vmatprep.subr.bf16.mxu0 %v2134_v49  ;;  %v1072_v30 = vmul.f32 1.442695, %v1050_v60  ;;  %v2484_v32 = vpop.eup %2060  ;;  %v1107_v19 = vsel %vm573_vm2, %v2482_v26, 0.0 }
 0x42a   : > { %v1142_v33 = vpack.c.bf16 %v2482_v26, %v2484_v32 }
 0x42b   : > { %v1074_v31 = vmul.f32 1.442695, %v1051_v63  ;;  %v1104_v63 = vsel %vm573_vm2, %v2484_v32, 0.0 }
 0x42d   : > { %2066 = vpow2.f32 %v1074_v31  ;;  %v2489_v6 = vpop.eup %2062 }
 0x42e   : > { %2068 = vpow2.f32 %v1072_v30  ;;  %v1098_v60 = vsel %vm573_vm2, %v2489_v6, 0.0 }
 0x42f   : > { %1951 = vmatmul.mubr.msk.bf16.vlgmr.msra.gmra.mrb[20].mxu0 %vm573_vm2, %v1142_v33 }
 0x430   : > { %1961 = vmatpush3.bf16.msra.mxu0 %v1337_v0  ;;  %1962 = vmatprep.mubr.msk.bf16.mxu0 %vm2135_vm1, %v2134_v49 }
 0x431   : > { %v2493_v9 = vpop.eup %2064  ;;  %1972 = vmatprep.subr.bf16.mxu0 %v2134_v49 }
 0x432   : > { %v1141_v35 = vpack.c.bf16 %v2493_v9, %v2489_v6  ;;  %v1101_v25 = vsel %vm573_vm2, %v2493_v9, 0.0 }
 0x434   : > { %1945 = vmatmul.mubr.msk.bf16.vlgmr.msra.gmra.mrb[24].mxu1 %vm573_vm2, %v1141_v35 }
 0x435   : > { %1955 = vmatpush3.bf16.msra.mxu1 %v1290_v62  ;;  %1956 = vmatprep.mubr.msk.bf16.mxu1 %vm2135_vm1, %v2134_v49 }
 0x436   : > { %1966 = vmatprep.subr.bf16.mxu1 %v2134_v49 }
 0x437   : > { %v2502_v36 = vpop.eup %2066 }
 0x438   : > { %v2504_v37 = vpop.eup %2068  ;;  %v1113_v30 = vsel %vm573_vm2, %v2502_v36, 0.0 }
 0x439   : > { %v1143_v40 = vpack.c.bf16 %v2502_v36, %v2504_v37  ;;  %v1110_v24 = vsel %vm573_vm2, %v2504_v37, 0.0 }
 0x43c   : > { %1957 = vmatmul.mubr.msk.bf16.vlgmr.msra.gmra.mrb[28].mxu1 %vm573_vm2, %v1143_v40 }
 0x43d   : > { %1967 = vmatpush3.bf16.msra.mxu1 %v1384_v1  ;;  %1968 = vmatprep.mubr.msk.bf16.mxu1 %vm2135_vm1, %v2134_v49 }
 0x43e   : > { %1978 = vmatprep.subr.bf16.mxu1 %v2134_v49 }
 0x480   : > { %v1028_v28 = vpop.xlane.xlu0 %1027 }
 0x481   : > { %v1054_v41 = vsub.f32 %v2413_v17, %v1028_v28 }
 0x482   : > { %v1031_v42 = vpop.xlane.xlu1 %1030 }
 0x483   : > { %v1080_v43 = vmul.f32 1.442695, %v1054_v41  ;;  %v1055_v44 = vsub.f32 %v2420_v20, %v1031_v42 }
 0x484   : > { %v1022_v45 = vpop.xlane.xlu0 %1021 }
 0x485   : > { %v1082_v47 = vmul.f32 1.442695, %v1055_v44  ;;  %v1052_v50 = vsub.f32 %v2418_v27, %v1022_v45  ;;  %2070 = vpow2.f32 %v1080_v43 }
 0x486   : > { %v1025_v51 = vpop.xlane.xlu1 %1024 }
 0x487   : > { %2072 = vpow2.f32 %v1082_v47  ;;  %v1076_v52 = vmul.f32 1.442695, %v1052_v50  ;;  %v1053_v56 = vsub.f32 %v2424_v34, %v1025_v51 }
 0x489   : > { %2074 = vpow2.f32 %v1076_v52  ;;  %v1078_v57 = vmul.f32 1.442695, %v1053_v56 }
 0x48b   : > { %2076 = vpow2.f32 %v1078_v57 }
 0x48d   : > { %v1040_v48 = vpop.xlane.xlu0 %1039 }
 0x48e   : > { %v1058_v17 = vsub.f32 %v2441_v29, %v1040_v48  ;;  %v2036_v48 = vld [vmem:[%s2637_s6] sm:$0xff]  }
 0x48f   : > { %v1043_v58 = vpop.xlane.xlu1 %1042  ;;  %v2071_v59 = vpop.eup %2070 }
 0x490   : > { %v1088_v61 = vmul.f32 1.442695, %v1058_v17  ;;  %v1059_v20 = vsub.f32 %v2448_v54, %v1043_v58  ;;  %v2037_v58 = vld [vmem:[%s2637_s6 + $0x8] sm:$0xff]  }
 0x491   : > { %v2073_v62 = vpop.eup %2072  ;;  %v1034_v0 = vpop.xlane.xlu0 %1033 }
 0x492   : > { %v1090_v27 = vmul.f32 1.442695, %v1059_v20  ;;  %v1056_v1 = vsub.f32 %v2446_v53, %v1034_v0  ;;  %v1145_v2 = vpack.c.bf16 %v2073_v62, %v2071_v59  ;;  %2078 = vpow2.f32 %v1088_v61 }
 0x493   : > { %v2075_v3 = vpop.eup %2074  ;;  %v1037_v34 = vpop.xlane.xlu1 %1036  ;;  %v1125_v12 = vsel %vm573_vm2, %v2073_v62, 0.0 }
 0x494   : > { %2080 = vpow2.f32 %v1090_v27  ;;  %v1084_v4 = vmul.f32 1.442695, %v1056_v1  ;;  %v1057_v5 = vsub.f32 %v2452_v39, %v1037_v34  ;;  %1969 = vmatmul.mubr.msk.bf16.vlgmr.msra.gmra.mrb[32].mxu1 %vm573_vm2, %v1145_v2  ;;  %v1116_v29 = vsel %vm573_vm2, %v2075_v3, 0.0 }
 0x495   : > { %v2077_v7 = vpop.eup %2076  ;;  %1117 = vadd.xlane.f32.xlu0 %v1116_v29  ;;  %1980 = vmatprep.mubr.msk.bf16.mxu1 %vm2135_vm1, %v2134_v49  ;;  %v1431_v11 = vpop.permute.xlu0 %1430  ;;  %v1122_v39 = vsel %vm573_vm2, %v2071_v59, 0.0 }
 0x496   : > { %2082 = vpow2.f32 %v1084_v4  ;;  %v1086_v54 = vmul.f32 1.442695, %v1057_v5  ;;  %v1119_v53 = vsel %vm573_vm2, %v2077_v7, 0.0  ;;  %v1144_v8 = vpack.c.bf16 %v2077_v7, %v2075_v3 }
 0x497   : > { %1120 = vadd.xlane.f32.xlu1 %v1119_v53  ;;  %v1478_v10 = vpop.permute.xlu1 %1477 }
 0x498   : > { %2084 = vpow2.f32 %v1086_v54  ;;  %1963 = vmatmul.mubr.msk.bf16.vlgmr.msra.gmra.mrb[24].mxu0 %vm573_vm2, %v1144_v8  ;;  %1979 = vmatpush3.bf16.msra.mxu1 %v1478_v10 }
 0x499   : > { %1973 = vmatpush3.bf16.msra.mxu0 %v1431_v11  ;;  %1123 = vadd.xlane.f32.xlu0 %v1122_v39 }
 0x49a   : > { %1974 = vmatprep.mubr.msk.bf16.mxu0 %vm2135_vm1, %v2134_v49  ;;  %1984 = vmatprep.subr.bf16.mxu0 %v2036_v48 }
 0x49c   : > { %v2079_v13 = vpop.eup %2078 }
 0x49d   : > { %1126 = vadd.xlane.f32.xlu0 %v1125_v12  ;;  %v1134_v49 = vsel %vm573_vm2, %v2079_v13, 0.0 }
 0x49e   : > { %v2081_v21 = vpop.eup %2080 }
 0x49f   : > { %v1147_v14 = vpack.c.bf16 %v2081_v21, %v2079_v13  ;;  %v1137_v38 = vsel %vm573_vm2, %v2081_v21, 0.0 }
 0x4a0   : > { %v2083_v15 = vpop.eup %2082 }
 0x4a1   : > { %1981 = vmatmul.mubr.msk.bf16.vlgmr.msra.gmra.mrb[36].mxu1 %vm573_vm2, %v1147_v14  ;;  %v1128_v46 = vsel %vm573_vm2, %v2083_v15, 0.0 }
 0x4a2   : > { %v2085_v16 = vpop.eup %2084  ;;  %1129 = vadd.xlane.f32.xlu0 %v1128_v46 }
 0x4a3   : > { %v1131_v23 = vsel %vm573_vm2, %v2085_v16, 0.0  ;;  %v1146_v22 = vpack.c.bf16 %v2085_v16, %v2083_v15 }
 0x4a4   : > { %1132 = vadd.xlane.f32.xlu1 %v1131_v23 }
 0x4a5   : > { %1975 = vmatmul.mubr.msk.bf16.vlgmr.msra.gmra.mrb[28].mxu0 %vm573_vm2, %v1146_v22 }
 0x4a6   : > { %1135 = vadd.xlane.f32.xlu0 %v1134_v49  ;;  %1985 = vmatpush3.bf16.msra.mxu0 %v2036_v48 }
 0x4a7   : > { %1986 = vmatprep.subr.bf16.mxu0 %v2037_v58 }
 0x4a8   : > { %1138 = vadd.xlane.f32.xlu1 %v1137_v38 }
 0x4aa   : > { %1093 = vadd.xlane.f32.xlu0 %v1092_v55  ;;  %1987 = vmatpush3.bf16.msra.mxu0 %v2037_v58 }
 0x4ac   : > { %1096 = vadd.xlane.f32.xlu1 %v1095_v18 }
 0x4ae   : > { %1099 = vadd.xlane.f32.xlu0 %v1098_v60 }
 0x4b0   : > { %1102 = vadd.xlane.f32.xlu1 %v1101_v25 }
 0x4b2   : > { %1105 = vadd.xlane.f32.xlu0 %v1104_v63 }
 0x4b4   : > { %1108 = vadd.xlane.f32.xlu1 %v1107_v19 }
 0x4b6   : > { %1111 = vadd.xlane.f32.xlu0 %v1110_v24 }
 0x4b8   : > { %1114 = vadd.xlane.f32.xlu1 %v1113_v30 }
 0x4fa   : > { %v2552_v31 = vpop.f32.mrb[16].mxu0 }
 0x4fb   : > { %v1940_v33 = vpop.f32.mrb[17].mxu0 }
 0x4fc   : > { %v2554_v6 = vpop.f32.mrb[18].mxu0 }
 0x4fd   : > { %v1941_v9 = vpop.f32.mrb[19].mxu0 }
 0x502   : > { %v2556_v32 = vpop.f32.mrb[20].mxu0 }
 0x503   : > { %v1952_v35 = vpop.f32.mrb[21].mxu0 }
 0x504   : > { %v2558_v40 = vpop.f32.mrb[22].mxu0 }
 0x505   : > { %v1953_v26 = vpop.f32.mrb[23].mxu0 }
 0x507   : > { %v2560_v28 = vpop.f32.mrb[24].mxu1 }
 0x508   : > { %v1946_v37 = vpop.f32.mrb[25].mxu1 }
 0x509   : > { %v2562_v41 = vpop.f32.mrb[26].mxu1 }
 0x50a   : > { %v1947_v42 = vpop.f32.mrb[27].mxu1 }
 0x50f   : > { %v2564_v36 = vpop.f32.mrb[28].mxu1 }
 0x510   : > { %v1958_v43 = vpop.f32.mrb[29].mxu1 }
 0x511   : > { %v2566_v44 = vpop.f32.mrb[30].mxu1 }
 0x512   : > { %v1959_v45 = vpop.f32.mrb[31].mxu1 }
 0x522   : > { %v1118_v47 = vpop.xlane.xlu0 %1117 }
 0x524   : > { %v1121_v52 = vpop.xlane.xlu1 %1120 }
 0x526   : > { %v1124_v50 = vpop.xlane.xlu0 %1123 }
 0x527   : > { %2086 = vrcp.f32 %v1124_v50 }
 0x52a   : > { %v1127_v51 = vpop.xlane.xlu0 %1126 }
 0x52b   : > { %2088 = vrcp.f32 %v1127_v51 }
 0x52c   : > { %2090 = vrcp.f32 %v1118_v47 }
 0x52d   : > { %2092 = vrcp.f32 %v1121_v52 }
 0x52f   : > { %v1130_v56 = vpop.xlane.xlu0 %1129 }
 0x531   : > { %v1133_v57 = vpop.xlane.xlu1 %1132  ;;  %v2087_v59 = vpop.eup %2086 }
 0x533   : > { %v1136_v61 = vpop.xlane.xlu0 %1135 }
 0x534   : > { %2094 = vrcp.f32 %v1136_v61 }
 0x535   : > { %v2089_v62 = vpop.eup %2088  ;;  %v1139_v0 = vpop.xlane.xlu1 %1138 }
 0x536   : > { %v2091_v4 = vpop.eup %2090  ;;  %2096 = vrcp.f32 %v1139_v0 }
 0x537   : > { %v2093_v7 = vpop.eup %2092  ;;  %2098 = vrcp.f32 %v1130_v56  ;;  %v1094_v24 = vpop.xlane.xlu0 %1093 }
 0x538   : > { %2100 = vrcp.f32 %v1133_v57 }
 0x539   : > { %v1097_v30 = vpop.xlane.xlu1 %1096 }
 0x53b   : > { %v1100_v33 = vpop.xlane.xlu0 %1099 }
 0x53c   : > { %2102 = vrcp.f32 %v1100_v33 }
 0x53d   : > { %v1103_v9 = vpop.xlane.xlu1 %1102 }
 0x53e   : > { %v2095_v12 = vpop.eup %2094  ;;  %2104 = vrcp.f32 %v1103_v9 }
 0x53f   : > { %2106 = vrcp.f32 %v1094_v24  ;;  %v1106_v26 = vpop.xlane.xlu0 %1105 }
 0x540   : > { %v2097_v21 = vpop.eup %2096  ;;  %2108 = vrcp.f32 %v1097_v30 }
 0x541   : > { %v2099_v22 = vpop.eup %2098  ;;  %v1109_v35 = vpop.xlane.xlu1 %1108  ;;  %2110 = vrcp.f32 %v1106_v26 }
 0x542   : > { %v2101_v55 = vpop.eup %2100  ;;  %2112 = vrcp.f32 %v1109_v35 }
 0x543   : > { %v1112_v45 = vpop.xlane.xlu0 %1111 }
 0x544   : > { %2114 = vrcp.f32 %v1112_v45 }
 0x545   : > { %v1115_v37 = vpop.xlane.xlu1 %1114 }
 0x546   : > { %v2103_v42 = vpop.eup %2102  ;;  %2116 = vrcp.f32 %v1115_v37  ;;  %v2122_v37 = vld [vmem:[%s2201_s10 + $0x30] sm:$0xff] }
 0x547   : > { %v1558_v57 = vmul.f32 %v2103_v42, %v2560_v28 }
 0x548   : > { %v2105_v43 = vpop.eup %2104 }
 0x549   : > { %v2107_v50 = vpop.eup %2106  ;;  %v1559_v51 = vmul.f32 %v2105_v43, %v2562_v41 }
 0x54a   : > { %v2109_v48 = vpop.eup %2108 }
 0x567   : > { %v1423_v17 = vpop.f32.mrb[32].mxu1 }
 0x568   : > { %v1970_v20 = vpop.f32.mrb[33].mxu1  ;;  %v1566_v1 = vmul.f32 %v2087_v59, %v1423_v17 }
 0x569   : > { %v1426_v27 = vpop.f32.mrb[34].mxu1  ;;  %v1556_v20 = vmul.f32 %v2107_v50, %v2552_v31 }
 0x56a   : > { %v1567_v2 = vmul.f32 %v2089_v62, %v1426_v27  ;;  %v1971_v3 = vpop.f32.mrb[35].mxu1  ;;  %v1557_v62 = vmul.f32 %v2109_v48, %v2554_v6 }
 0x56b   : > { %v1376_v34 = vpop.f32.mrb[24].mxu0 }
 0x56c   : > { %v2019_v5 = vpack.i.bf16 %v1567_v2, %v1566_v1  ;;  %v1964_v29 = vpop.f32.mrb[25].mxu0  ;;  %v1564_v53 = vmul.f32 %v2091_v4, %v1376_v34  ;;  %v2111_v2 = vpop.eup %2110 }
 0x56d   : > { %v1379_v54 = vpop.f32.mrb[26].mxu0  ;;  %v2113_v3 = vpop.eup %2112  ;;  %v1560_v29 = vmul.f32 %v2111_v2, %v2556_v32 }
 0x56e   : > { %v1565_v8 = vmul.f32 %v2093_v7, %v1379_v54  ;;  %v1965_v10 = vpop.f32.mrb[27].mxu0  ;;  %2020 = vrot.lane.b32.xlu1 %v2019_v5, %s2139_s25  ;;  %v2115_v4 = vpop.eup %2114  ;;  %v1561_v31 = vmul.f32 %v2113_v3, %v2558_v40 }
 0x56f   : > { %v2117_v7 = vpop.eup %2116 }
 0x570   : > { %v2014_v11 = vpack.i.bf16 %v1565_v8, %v1564_v53 }
 0x572   : > { %2015 = vrot.lane.b32.xlu0 %v2014_v11, %s2139_s25  ;;  %v1563_v11 = vmul.f32 %v2117_v7, %v2566_v44  ;;  %v1821_v44 = vld [vmem:[%s2638_s7] ss:$0 sm:$0xff] }
 0x574   : > { %v1517_v39 = vpop.f32.mrb[36].mxu1 }
 0x575   : > { %v1982_v13 = vpop.f32.mrb[37].mxu1  ;;  %v1570_v15 = vmul.f32 %v2095_v12, %v1517_v39 }
 0x576   : > { %v1520_v14 = vpop.f32.mrb[38].mxu1  ;;  %v1562_v13 = vmul.f32 %v2115_v4, %v2564_v36 }
 0x577   : > { %v1571_v46 = vmul.f32 %v2097_v21, %v1520_v14  ;;  %v1983_v16 = vpop.f32.mrb[39].mxu1 }
 0x578   : > { %v1470_v23 = vpop.f32.mrb[28].mxu0 }
 0x579   : > { %v2029_v49 = vpack.i.bf16 %v1571_v46, %v1570_v15  ;;  %v1976_v38 = vpop.f32.mrb[29].mxu0  ;;  %v1568_v60 = vmul.f32 %v2099_v22, %v1470_v23  ;;  %v2118_v23 = vld [vmem:[%s2201_s10 + $0x10] sm:$0xff] }
 0x57a   : > { %v1473_v18 = vpop.f32.mrb[30].mxu0 }
 0x57b   : > { %v1569_v25 = vmul.f32 %v2101_v55, %v1473_v18  ;;  %v1977_v63 = vpop.f32.mrb[31].mxu0  ;;  %v2119_v55 = vld [vmem:[%s2201_s10] sm:$0xff] }
 0x57d   : > { %v2024_v19 = vpack.i.bf16 %v1569_v25, %v1568_v60  ;;  %v2120_v25 = vld [vmem:[%s2201_s10 + $0x18] sm:$0xff] }
 0x57f   : > { %2025 = vrot.lane.b32.xlu1 %v2024_v19, %s2139_s25  ;;  %v2121_v19 = vld [vmem:[%s2201_s10 + $0x8] sm:$0xff] }
 0x583   : > { %2030 = vrot.lane.b32.xlu1 %v2029_v49, %s2139_s25 }
 0x5e0   : > { %v2021_v47 = vpop.permute.xlu1 %2020 }
 0x5e1   : > { %v2023_v52 = vunpack.i.h.bf16 %v2021_v47  ;;  %v2022_v56 = vunpack.i.l.bf16 %v2021_v47  ;;  %v2123_v47 = vld [vmem:[%s2201_s10 + $0x20] sm:$0xff] }
 0x5e3   : > { %v1607_v17 = vsel %vm573_vm2, %v1559_v51, %v2023_v52  ;;  %v1606_v58 = vsel %vm573_vm2, %v1558_v57, %v2022_v56  ;;  %v2124_v52 = vld [vmem:[%s2201_s10 + $0x38] sm:$0xff]  ;;  %v2125_v57 = vld [vmem:[%s2201_s10 + $0x28] sm:$0xff] }
 0x5e4   : > { %v1613_v59 = vpack.c.bf16 %v1607_v17, %v1606_v58  ;;  %v2016_v61 = vpop.permute.xlu0 %2015 }
 0x5e5   : > { %v2018_v0 = vunpack.i.h.bf16 %v2016_v61  ;;  %v2017_v27 = vunpack.i.l.bf16 %v2016_v61 }
 0x5e7   : > { %v1605_v41 = vsel %vm573_vm2, %v1557_v62, %v2018_v0  ;;  %v1604_v1 = vsel %vm573_vm2, %v1556_v20, %v2017_v27 }
 0x5e8   : > { %v1612_v28 = vpack.c.bf16 %v1605_v41, %v1604_v1 }
 0x5ea   : > { %1988 = vmatprep.mubr.msk.bf16.mxu0 %vm317_vm0, %v1612_v28 }
 0x5eb   : > { %1989 = vmatmul.mubr.msk.bf16.vlgmr.msra.gmra.mrb[32].mxu0 %vm317_vm0, %v1613_v59 }
 0x5f1   : > { %v2026_v34 = vpop.permute.xlu1 %2025 }
 0x5f2   : > { %v2028_v6 = vunpack.i.h.bf16 %v2026_v34  ;;  %v2027_v5 = vunpack.i.l.bf16 %v2026_v34 }
 0x5f4   : > { %v1609_v54 = vsel %vm573_vm2, %v1561_v31, %v2028_v6  ;;  %v1608_v53 = vsel %vm573_vm2, %v1560_v29, %v2027_v5 }
 0x5f5   : > { %v1614_v8 = vpack.c.bf16 %v1609_v54, %v1608_v53  ;;  %v2031_v10 = vpop.permute.xlu1 %2030 }
 0x5f6   : > { %v2033_v39 = vunpack.i.h.bf16 %v2031_v10  ;;  %v2032_v12 = vunpack.i.l.bf16 %v2031_v10 }
 0x5f7   : > { %1992 = vmatprep.mubr.msk.bf16.mxu0 %vm317_vm0, %v1614_v8 }
 0x5f8   : > { %v1611_v32 = vsel %vm573_vm2, %v1563_v11, %v2033_v39  ;;  %v1610_v40 = vsel %vm573_vm2, %v1562_v13, %v2032_v12 }
 0x5f9   : > { %v1615_v21 = vpack.c.bf16 %v1611_v32, %v1610_v40 }
 0x5fb   : > { %1993 = vmatmul.mubr.msk.bf16.gmra.mrb[36].mxu0 %vm317_vm0, %v1615_v21 }
 0x6be   : > { %v1990_v14 = vpop.f32.mrb[32].mxu0 }
 0x6bf   : > { %v1694_v15 = vadd.f32 %v1990_v14, %v1821_v44  ;;  %v1685_v46 = vpop.f32.mrb[33].mxu0 }
 0x6c0   : > { %v1686_v36 = vadd.f32 %v1821_v44, %v1685_v46  ;;  %v1991_v16 = vpop.f32.mrb[34].mxu0 }
 0x6c1   : > { %v1718_v22 = vadd.f32 %v2118_v23, %v1694_v15  ;;  %v1697_v49 = vadd.f32 %v1991_v16, %v1821_v44  ;;  %v1688_v38 = vpop.f32.mrb[35].mxu0 }
 0x6c2   : > { %v1716_v18 = vadd.f32 %v2119_v55, %v1686_v36  ;;  %v1689_v60 = vadd.f32 %v1821_v44, %v1688_v38 }
 0x6c3   : > { %1726 = vst.msk [vmem:[%s2602_s12 + $0x10] sm:$0xff] %vm317_vm0, %v1718_v22  ;;  %v1719_v63 = vadd.f32 %v2120_v25, %v1697_v49 }
 0x6c4   : > { %1724 = vst.msk [vmem:[%s2602_s12] sm:$0xff] %vm317_vm0, %v1716_v18  ;;  %v1717_v24 = vadd.f32 %v2121_v19, %v1689_v60 }
 0x6c5   : > { %1727 = vst.msk [vmem:[%s2602_s12 + $0x18] sm:$0xff] %vm317_vm0, %v1719_v63 }
 0x6c6   : > { %1725 = vst.msk [vmem:[%s2602_s12 + $0x8] sm:$0xff] %vm317_vm0, %v1717_v24 }
 0x6ce   : > { %v1994_v30 = vpop.f32.mrb[36].mxu0 }
 0x6cf   : > { %v1710_v33 = vadd.f32 %v1994_v30, %v1821_v44  ;;  %v1701_v9 = vpop.f32.mrb[37].mxu0 }
 0x6d0   : > { %v1702_v35 = vadd.f32 %v1821_v44, %v1701_v9  ;;  %v1995_v26 = vpop.f32.mrb[38].mxu0 }
 0x6d1   : > { %v1722_v42 = vadd.f32 %v2122_v37, %v1710_v33  ;;  %v1713_v43 = vadd.f32 %v1995_v26, %v1821_v44  ;;  %v1704_v45 = vpop.f32.mrb[39].mxu0 }
 0x6d2   : > { %v1720_v50 = vadd.f32 %v2123_v47, %v1702_v35  ;;  %v1705_v51 = vadd.f32 %v1821_v44, %v1704_v45 }
 0x6d3   : > { %1730 = vst.msk [vmem:[%s2602_s12 + $0x30] sm:$0xff] %vm317_vm0, %v1722_v42  ;;  %v1723_v56 = vadd.f32 %v2124_v52, %v1713_v43 }
 0x6d4   : > { %1728 = vst.msk [vmem:[%s2602_s12 + $0x20] sm:$0xff] %vm317_vm0, %v1720_v50  ;;  %v1721_v48 = vadd.f32 %v2125_v57, %v1705_v51 }
 0x6d5   : > { %1731 = vst.msk [vmem:[%s2602_s12 + $0x38] sm:$0xff] %vm317_vm0, %v1723_v56 }
 0x6d6   : > { %1729 = vst.msk [vmem:[%s2602_s12 + $0x28] sm:$0xff] %vm317_vm0, %v1721_v48 }
 0x6d7 PF: > { %s18_s27 = sadd.s32 1, %s2132_s27  }
 0x6d8   : > { %p15_p4 = scmp.ge.s32.totalorder %s18_s27, 4  }
 0x6da   :  { %17 = sbr.rel (!%p15_p4) target bundleno = 1 (0x1), region = 82 }

// kernel: video_processor_forward.16
= control target key start
LH: loop header
LB: loop body
LE: loop exit
PB: predicated region body
PF: predicated region fallthrough
CT: control target
= control target key end

     0   :  { %s557_s18 = smov 0   ;;  %s614_s0 = inlined_call_operand.vmem [shape: f32[32,128], index: 0, kind: input, shape index: {}]   ;;  %s615_s1 = inlined_call_operand.vmem [shape: f32[1,128], index: 1, kind: input, shape index: {}]   ;;  %s616_s2 = inlined_call_operand.vmem [shape: f32[1,128], index: 2, kind: input, shape index: {}]   ;;  %s617_s3 = inlined_call_operand.vmem [shape: bf16[128,64], index: 3, kind: input, shape index: {}]   ;;  %s618_s4 = inlined_call_operand.vmem [shape: f32[1,64], index: 4, kind: input, shape index: {}]   ;;  %s619_s5 = inlined_call_operand.vmem [shape: f32[32,64], index: 5, kind: output, shape index: {}]  }
   0x1 LB: > { %s444_s19 = sadd.s32 4294967295, %s523_s18   ;;  %p448_p0 = scmp.ge.s32.totalorder %s523_s18, 1  ;;  %s523_s18 = sphi %s557_s18, %s15_s18  }
   0x2   : > { %p188_p1 = scmp.lt.s32.totalorder %s523_s18, 3 }
   0x4   : > { %p189_p2 = pnand %p448_p0, %p188_p1 }
   0x5   : > { %s449_s20 = sshll.u32 (!%p189_p2), %s444_s19, 1  ;;  %v505_v2 = vld [vmem:[%s617_s3] sm:$0xff] (!%p189_p2)   ;;  %v525_v3 = vmov (!%p189_p2), 0.0   ;;  %v506_v12 = vld [vmem:[%s617_s3 + $0x8] sm:$0xff] (!%p189_p2)   ;;  %v507_v13 = vld [vmem:[%s617_s3 + $0x10] sm:$0xff] (!%p189_p2)   ;;  %vm526_vm0 = vmmov (!%p189_p2), 0  }
   0x6   : > { %192 = sbr.rel (%p189_p2) target bundleno = 551 (0x227), region = 40  ;;  %p217_p3 = scmp.lt.s32.totalorder (!%p189_p2), %s449_s20, 3  ;;  %475 = vmatprep.subr.bf16.mxu0 (!%p189_p2), %v525_v3  ;;  %v508_v14 = vld [vmem:[%s617_s3 + $0x18] sm:$0xff] (!%p189_p2)   ;;  %v509_v15 = vld [vmem:[%s617_s3 + $0x20] sm:$0xff] (!%p189_p2)   ;;  %491 = vmatprep.mubr.msk.bf16.mxu0 (!%p189_p2), %vm526_vm0, %v525_v3  ;;  %v510_v16 = vld [vmem:[%s617_s3 + $0x28] sm:$0xff] (!%p189_p2)   ;;  %vm385_vm1 = vcmask (!%p189_p2), 523264  }
   0x7   : > { %476 = vmatpush3.bf16.msra.mxu0 (!%p189_p2), %v505_v2  ;;  %v511_v17 = vld [vmem:[%s617_s3 + $0x30] sm:$0xff] (!%p189_p2)   ;;  %v512_v18 = vld [vmem:[%s617_s3 + $0x38] sm:$0xff] (!%p189_p2)   ;;  %v453_v27 = vld [vmem:[%s615_s1] ss:$0 sm:$0xff] (!%p189_p2) }
   0x8   : > { %477 = vmatprep.subr.bf16.mxu0 (!%p189_p2), %v525_v3  ;;  %v454_v31 = vld [vmem:[%s616_s2] ss:$0 sm:$0xff] (!%p189_p2) }
   0x9   : > { %v455_v36 = vld [vmem:[%s618_s4] ss:$0 sm:$0xff] (!%p189_p2) }
   0xb   : > { %478 = vmatpush3.bf16.msra.mxu0 (!%p189_p2), %v506_v12 }
   0xc   : > { %479 = vmatprep.subr.bf16.mxu0 (!%p189_p2), %v525_v3 }
   0xd   : > { %s621_s20 = smov (!%p217_p3, %s449_s20), 3 }
   0xe   : > { %s450_s21 = sshll.u32 %s621_s20, 3 }
   0xf   : > { %s220_s24 = scalar_lea.vmem %s614_s0, %s450_s21  ;;  %480 = vmatpush3.bf16.msra.mxu0 %v507_v13  ;;  %s226_s27 = scalar_lea.vmem %s619_s5, %s450_s21 }
  0x10   : > { %v229_v0 = vld [vmem:[%s220_s24] sm:$0xff]  ;;  %v230_v1 = vld [vmem:[%s220_s24 + $0x8] sm:$0xff]  ;;  %481 = vmatprep.subr.bf16.mxu0 %v525_v3 }
  0x11   : > { %233 = vadd.xlane.f32.xlu0 %v229_v0 }
  0x13   : > { %482 = vmatpush3.bf16.msra.mxu0 %v508_v14 }
  0x14   : > { %483 = vmatprep.subr.bf16.mxu0 %v525_v3 }
  0x15   : > { %235 = vadd.xlane.f32.xlu0 %v230_v1 }
  0x17   : > { %484 = vmatpush3.bf16.msra.mxu0 %v509_v15 }
  0x18   : > { %485 = vmatprep.subr.bf16.mxu0 %v525_v3 }
  0x1b   : > { %486 = vmatpush3.bf16.msra.mxu0 %v510_v16 }
  0x1c   : > { %487 = vmatprep.subr.bf16.mxu0 %v525_v3 }
  0x1f   : > { %488 = vmatpush3.bf16.msra.mxu0 %v511_v17 }
  0x20   : > { %489 = vmatprep.subr.bf16.mxu0 %v525_v3 }
  0x23   : > { %490 = vmatpush3.bf16.msra.mxu0 %v512_v18 }
  0x9e   : > { %v234_v4 = vpop.xlane.xlu0 %233 }
  0x9f   : > { %v238_v5 = vmul.f32 0.0078125, %v234_v4 }
  0xa1   : > { %v240_v6 = vsub.f32 %v229_v0, %v238_v5 }
  0xa2   : > { %v236_v7 = vpop.xlane.xlu0 %235 }
  0xa3   : > { %v239_v8 = vmul.f32 0.0078125, %v236_v7  ;;  %v242_v9 = vmul.f32 %v240_v6, %v240_v6 }
  0xa5   : > { %v241_v10 = vsub.f32 %v230_v1, %v239_v8  ;;  %244 = vadd.xlane.f32.xlu1 %v242_v9 }
  0xa7   : > { %v243_v11 = vmul.f32 %v241_v10, %v241_v10 }
  0xa9   : > { %246 = vadd.xlane.f32.xlu1 %v243_v11 }
 0x132   : > { %v245_v19 = vpop.xlane.xlu1 %244 }
 0x133   : > { %v248_v20 = vmul.f32 0.0078125, %v245_v19 }
 0x135   : > { %v250_v21 = vadd.f32 1e-05, %v248_v20 }
 0x136   : > { %v247_v22 = vpop.xlane.xlu1 %246 }
 0x137   : > { %513 = vrsqrt.f32 %v250_v21  ;;  %v249_v23 = vmul.f32 0.0078125, %v247_v22 }
 0x139   : > { %v251_v24 = vadd.f32 1e-05, %v249_v23 }
 0x13b   : > { %515 = vrsqrt.f32 %v251_v24 }
 0x141   : > { %v514_v25 = vpop.eup %513 }
 0x142   : > { %v254_v26 = vmul.f32 %v514_v25, %v240_v6 }
 0x144   : > { %v262_v30 = vmul.f32 %v453_v27, %v254_v26 }
 0x145   : > { %v516_v28 = vpop.eup %515 }
 0x146   : > { %v255_v29 = vmul.f32 %v516_v28, %v241_v10  ;;  %v270_v33 = vadd.f32 %v454_v31, %v262_v30 }
 0x148   : > { %v263_v32 = vmul.f32 %v453_v27, %v255_v29 }
 0x14a   : > { %v271_v34 = vadd.f32 %v454_v31, %v263_v32 }
 0x14c   : > { %v272_v35 = vpack.c.bf16 %v271_v34, %v270_v33 }
 0x14e   : > { %492 = vmatmul.mubr.bf16.vlgmr.msra.gmra.mrb[0].mxu0 %v272_v35 }
 0x221   : > { %v378_v37 = vpop.f32.mrb[0].mxu0 }
 0x222   : > { %v379_v38 = vadd.f32 %v455_v36, %v378_v37  ;;  %v493_v39 = vpop.f32.mrb[1].mxu0 }
 0x223   : > { %v381_v40 = vpop.f32.mrb[2].mxu0 }
 0x224   : > { %386 = vst.msk [vmem:[%s226_s27] sm:$0xff] %vm385_vm1, %v379_v38  ;;  %v382_v41 = vadd.f32 %v455_v36, %v381_v40  ;;  %v494_v42 = vpop.f32.mrb[3].mxu0 }
 0x226   : > { %387 = vst.msk [vmem:[%s226_s27 + $0x8] sm:$0xff] %vm385_vm1, %v382_v41 }
 0x227 PF: > { %s15_s18 = sadd.s32 1, %s523_s18  }
 0x228   : > { %p12_p4 = scmp.ge.s32.totalorder %s15_s18, 4  }
 0x22a   :  { %14 = sbr.rel (!%p12_p4) target bundleno = 1 (0x1), region = 70 }

// kernel: video_processor_forward.21
= control target key start
LH: loop header
LB: loop body
LE: loop exit
PB: predicated region body
PF: predicated region fallthrough
CT: control target
= control target key end

     0   :  { %vm21_vm0 = vcmask 523264   ;;  %s235_s0 = inlined_call_operand.vmem [shape: f32[2,16,64], index: 0, kind: input, shape index: {}]   ;;  %s236_s1 = inlined_call_operand.vmem [shape: f32[1,1,64], index: 1, kind: input, shape index: {}]   ;;  %s237_s2 = inlined_call_operand.vmem [shape: f32[1,1,64], index: 2, kind: input, shape index: {}]   ;;  %s238_s3 = inlined_call_operand.hbm [shape: f32[2,64], index: 3, kind: output, shape index: {}]  }
   0x1   :  { %v15_v0 = vld [vmem:[%s235_s0] sm:$0xff]  ;;  %v17_v1 = vld [vmem:[%s235_s0 + $0x10] sm:$0xff]  ;;  %v16_v2 = vld [vmem:[%s235_s0 + $0x8] sm:$0xff] }
   0x2   :  { %v22_v3 = vsel %vm21_vm0, %v15_v0, 0.0  ;;  %v28_v4 = vsel %vm21_vm0, %v17_v1, 0.0  ;;  %v18_v5 = vld [vmem:[%s235_s0 + $0x18] sm:$0xff] }
   0x3   :  { %8 = vsyncpa [#allocation3], 0  ;;  %23 = vadd.xlane.f32.xlu0 %v22_v3  ;;  %29 = vadd.xlane.f32.xlu1 %v28_v4  ;;  %v25_v6 = vsel %vm21_vm0, %v16_v2, 0.0  ;;  %v31_v7 = vsel %vm21_vm0, %v18_v5, 0.0  ;;  %v137_v41 = vld [vmem:[%s236_s1] ss:$0 sm:$0xff] }
   0x4   :  { %v138_v45 = vld [vmem:[%s237_s2] ss:$0 sm:$0xff]  ;;  %s172_s1 = smov [#allocation2]   ;;  %vm118_vm1 = vcmask 1041409   ;;  %vm121_vm2 = vcmask 517120  }
   0x5   :  { %s129_s2 = sshll.u32 %s172_s1, 4  ;;  %s130_s2 = int_to_ptr.vmem [resolvable:$true] %s129_s2 }
   0x6   :  { %s148_s23 = scalar_lea.vmem %s130_s2, 32  ;;  %p153_p1 = scmp.lt.s32.totalorder %s130_s2, %s130_s2 }
   0x7   :  { %26 = vadd.xlane.f32.xlu0 %v25_v6  ;;  %32 = vadd.xlane.f32.xlu1 %v31_v7  ;;  %p149_p0 = scmp.ne.s32.totalorder %s130_s2, %s148_s23  ;;  %p154_p2 = scmp.lt.s32.totalorder %s148_s23, %s148_s23 }
   0x9   :  { %p155_p3 = por %p154_p2, %p153_p1 }
   0xb   :  { %p156_p4 = pnand %p155_p3, %p149_p0 }
  0x90   :  { %v24_v8 = vpop.xlane.xlu0 %23  ;;  %v30_v9 = vpop.xlane.xlu1 %29 }
  0x91   :  { %v35_v10 = vmul.f32 0.015625, %v24_v8  ;;  %v37_v11 = vmul.f32 0.015625, %v30_v9 }
  0x93   :  { %v39_v12 = vsub.f32 %v15_v0, %v35_v10  ;;  %v41_v13 = vsub.f32 %v17_v1, %v37_v11 }
  0x94   :  { %v27_v14 = vpop.xlane.xlu0 %26  ;;  %v33_v15 = vpop.xlane.xlu1 %32 }
  0x95   :  { %v36_v16 = vmul.f32 0.015625, %v27_v14  ;;  %v38_v17 = vmul.f32 0.015625, %v33_v15  ;;  %v43_v18 = vmul.f32 %v39_v12, %v39_v12  ;;  %v45_v19 = vmul.f32 %v41_v13, %v41_v13 }
  0x97   :  { %v40_v20 = vsub.f32 %v16_v2, %v36_v16  ;;  %v42_v21 = vsub.f32 %v18_v5, %v38_v17  ;;  %v47_v22 = vsel %vm21_vm0, %v43_v18, 0.0  ;;  %v53_v23 = vsel %vm21_vm0, %v45_v19, 0.0 }
  0x98   :  { %48 = vadd.xlane.f32.xlu0 %v47_v22 }
  0x99   :  { %v44_v24 = vmul.f32 %v40_v20, %v40_v20  ;;  %v46_v25 = vmul.f32 %v42_v21, %v42_v21 }
  0x9b   :  { %v50_v26 = vsel %vm21_vm0, %v44_v24, 0.0  ;;  %v56_v27 = vsel %vm21_vm0, %v46_v25, 0.0 }
  0x9c   :  { %54 = vadd.xlane.f32.xlu0 %v53_v23  ;;  %51 = vadd.xlane.f32.xlu1 %v50_v26 }
  0xa0   :  { %57 = vadd.xlane.f32.xlu1 %v56_v27 }
 0x125   :  { %v49_v28 = vpop.xlane.xlu0 %48 }
 0x126   :  { %v59_v29 = vmul.f32 0.015625, %v49_v28 }
 0x128   :  { %v63_v30 = vadd.f32 1e-05, %v59_v29 }
 0x129   :  { %v52_v31 = vpop.xlane.xlu1 %51  ;;  %v55_v32 = vpop.xlane.xlu0 %54 }
 0x12a   :  { %140 = vrsqrt.f32 %v63_v30  ;;  %v60_v33 = vmul.f32 0.015625, %v52_v31  ;;  %v61_v34 = vmul.f32 0.015625, %v55_v32 }
 0x12c   :  { %v64_v35 = vadd.f32 1e-05, %v60_v33  ;;  %v65_v36 = vadd.f32 1e-05, %v61_v34 }
 0x12d   :  { %v58_v37 = vpop.xlane.xlu1 %57 }
 0x12e   :  { %142 = vrsqrt.f32 %v64_v35  ;;  %v62_v38 = vmul.f32 0.015625, %v58_v37 }
 0x12f   :  { %144 = vrsqrt.f32 %v65_v36 }
 0x130   :  { %v66_v39 = vadd.f32 1e-05, %v62_v38 }
 0x132   :  { %146 = vrsqrt.f32 %v66_v39 }
 0x134   :  { %v141_v40 = vpop.eup %140 }
 0x135   :  { %v71_v42 = vmul.f32 %v141_v40, %v39_v12 }
 0x137   :  { %v81_v43 = vmul.f32 %v137_v41, %v71_v42 }
 0x138   :  { %v143_v44 = vpop.eup %142 }
 0x139   :  { %v145_v46 = vpop.eup %144  ;;  %v72_v47 = vmul.f32 %v143_v44, %v40_v20  ;;  %v91_v49 = vadd.f32 %v138_v45, %v81_v43 }
 0x13a   :  { %v73_v48 = vmul.f32 %v145_v46, %v41_v13 }
 0x13b   :  { %v82_v50 = vmul.f32 %v137_v41, %v72_v47  ;;  %v95_v57 = vsel %vm21_vm0, %v91_v49, 0.0 }
 0x13c   :  { %v147_v51 = vpop.eup %146  ;;  %v83_v52 = vmul.f32 %v137_v41, %v73_v48 }
 0x13d   :  { %v92_v53 = vadd.f32 %v138_v45, %v82_v50  ;;  %v74_v54 = vmul.f32 %v147_v51, %v42_v21 }
 0x13e   :  { %v93_v55 = vadd.f32 %v138_v45, %v83_v52 }
 0x13f   :  { %v84_v56 = vmul.f32 %v137_v41, %v74_v54  ;;  %v96_v58 = vsel %vm21_vm0, %v92_v53, 0.0 }
 0x140   :  { %v97_v59 = vadd.f32 %v96_v58, %v95_v57  ;;  %v104_v62 = vsel %vm21_vm0, %v93_v55, 0.0 }
 0x141   :  { %v94_v60 = vadd.f32 %v138_v45, %v84_v56 }
 0x142   :  { %v98_v61 = vrot.slane %v97_v59, 4 }
 0x143   :  { %v105_v63 = vsel %vm21_vm0, %v94_v60, 0.0 }
 0x144   :  { %v99_v0 = vadd.f32 %v98_v61, %v97_v59  ;;  %v106_v1 = vadd.f32 %v105_v63, %v104_v62 }
 0x146   :  { %v100_v2 = vrot.slane %v99_v0, 2  ;;  %v107_v3 = vrot.slane %v106_v1, 4 }
 0x148   :  { %v101_v4 = vadd.f32 %v100_v2, %v99_v0  ;;  %v108_v5 = vadd.f32 %v107_v3, %v106_v1 }
 0x14a   :  { %v102_v6 = vrot.slane %v101_v4, 1  ;;  %v109_v7 = vrot.slane %v108_v5, 2 }
 0x14c   :  { %v110_v8 = vadd.f32 %v109_v7, %v108_v5  ;;  %v103_v9 = vadd.f32 %v102_v6, %v101_v4 }
 0x14e   :  { %v111_v10 = vrot.slane %v110_v8, 1  ;;  %v114_v12 = vmul.f32 0.0625, %v103_v9 }
 0x150   :  { %v112_v11 = vadd.f32 %v111_v10, %v110_v8 }
 0x152   :  { %v115_v13 = vmul.f32 0.0625, %v112_v11 }
 0x154   :  { %v119_v14 = vsel %vm118_vm1, %v115_v13, %v114_v12 }
 0x155   :  { %122 = vst.msk [vmem:[#allocation2] sm:$0x3] %vm121_vm2, %v119_v14 }
 0x156   :  { %159 = shalt.err (!%p156_p4)
}
 0x157   :  { %s160_s26 = scalar_lea.hbm %s238_s3, 32 }
 0x158   :  { %p161_p5 = scmp.ne.s32.totalorder %s238_s3, %s160_s26  ;;  %p164_p6 = scmp.lt.u32.totalorder %s160_s26, %s238_s3 }
 0x15a   :  { %p166_p7 = pnand %p164_p6, %p161_p5 }
 0x15c   :  { %169 = shalt.err (!%p166_p7)
}
 0x15d   :  { %132 = dma.vmem_to_hbm [thread:$0]  %s130_s2, 32, %s238_s3, [#allocation3]  }
 0x15e   :  { %170 = dma.done.wait [#allocation3], 32  }
 0x15f   :  { %171 = vsyncadd [#allocation3], 4294967264 }
 0x160   :  { %136 = vsyncpa [#allocation3], 1 }

// kernel: video_processor_forward.17
= control target key start
LH: loop header
LB: loop body
LE: loop exit
PB: predicated region body
PF: predicated region fallthrough
CT: control target
= control target key end

     0   :  { %s1412_s27 = smov 0   ;;  %s1602_s0 = inlined_call_operand.vmem [shape: f32[2,16,64], index: 0, kind: input, shape index: {}]   ;;  %s1603_s1 = inlined_call_operand.vmem [shape: f32[1,64], index: 1, kind: input, shape index: {}]   ;;  %s1604_s2 = inlined_call_operand.vmem [shape: f32[1,64], index: 2, kind: input, shape index: {}]   ;;  %s1605_s3 = inlined_call_operand.vmem [shape: bf16[64,192], index: 3, kind: input, shape index: {}]   ;;  %s1606_s4 = inlined_call_operand.vmem [shape: f32[1,192], index: 4, kind: input, shape index: {}]   ;;  %s1607_s5 = inlined_call_operand.vmem [shape: f32[4,1,16,16], index: 5, kind: input, shape index: {}]   ;;  %s1608_s6 = inlined_call_operand.vmem [shape: bf16[64,64], index: 6, kind: input, shape index: {}]   ;;  %s1609_s7 = inlined_call_operand.vmem [shape: f32[1,64], index: 7, kind: input, shape index: {}]   ;;  %s1610_s8 = inlined_call_operand.vmem [shape: f32[2,16,64], index: 8, kind: output, shape index: {}]  }
   0x1 LB: > { %s1145_s28 = sadd.s32 4294967295, %s1355_s27   ;;  %p1149_p0 = scmp.ge.s32.totalorder %s1355_s27, 1  ;;  %s1355_s27 = sphi %s1412_s27, %s18_s27  }
   0x2   : > { %p262_p1 = scmp.lt.s32.totalorder %s1355_s27, 3 }
   0x4   : > { %p263_p2 = pnand %p1149_p0, %p262_p1 }
   0x5   : > { %p296_p3 = scmp.lt.s32.totalorder (!%p263_p2), %s1145_s28, 1  ;;  %vm311_vm0 = vcmask (!%p263_p2), 523264   ;;  %v1297_v14 = vld [vmem:[%s1605_s3 + $0x4] ss:$8 sps:$4 sm:$0xff] (!%p263_p2)   ;;  %v1299_v15 = vld [vmem:[%s1605_s3] ss:$8 sps:$4 sm:$0xff] (!%p263_p2)   ;;  %v366_v41 = vlaneseq (!%p263_p2) }
   0x6   : > { %266 = sbr.rel (%p263_p2) target bundleno = 1741 (0x6cd), region = 52  ;;  %419 = vmatprep.subr.bf16.mxu0 (!%p263_p2), %v1297_v14  ;;  %v1300_v16 = vld [vmem:[%s1605_s3 + $0x14] ss:$8 sps:$4 sm:$0xff] (!%p263_p2)   ;;  %v1302_v17 = vld [vmem:[%s1605_s3 + $0x10] ss:$8 sps:$4 sm:$0xff] (!%p263_p2)   ;;  %v1357_v22 = vmov (!%p263_p2), 0  }
   0x7   : > { %420 = vmatpush1.bf16.msra.mxu0 (!%p263_p2), %v1299_v15  ;;  %v1303_v18 = vld [vmem:[%s1605_s3 + $0x24] ss:$8 sps:$4 sm:$0xff] (!%p263_p2)   ;;  %v1305_v19 = vld [vmem:[%s1605_s3 + $0x20] ss:$8 sps:$4 sm:$0xff] (!%p263_p2)   ;;  %v1306_v20 = vld [vmem:[%s1605_s3 + $0x34] ss:$8 sps:$4 sm:$0xff] (!%p263_p2)   ;;  %451 = vmatprep.mubr.bf16.mxu0 (!%p263_p2), %v1357_v22 }
   0x8   : > { %421 = vmatprep.subr.bf16.mxu0 (!%p263_p2), %v1300_v16  ;;  %v1308_v21 = vld [vmem:[%s1605_s3 + $0x30] ss:$8 sps:$4 sm:$0xff] (!%p263_p2)   ;;  %v1154_v31 = vld [vmem:[%s1603_s1] ss:$0 sm:$0xff] (!%p263_p2)  ;;  %v1358_v40 = vmov (!%p263_p2), 0.0   ;;  %v367_v42 = vshrl.u32 (!%p263_p2), %v366_v41, 7 }
   0x9   : > { %v1155_v35 = vld [vmem:[%s1604_s2] ss:$0 sm:$0xff] (!%p263_p2)  ;;  %1204 = vmatprep.subr.bf16.mxu1 (!%p263_p2), %v1358_v40  ;;  %vm1359_vm1 = vmmov (!%p263_p2), 0   ;;  %s1360_s14 = smov (!%p263_p2), 96   ;;  %s1361_s15 = smov (!%p263_p2), 112   ;;  %vm483_vm2 = vcmask (!%p263_p2), 130048  }
   0xa   : > { %v368_v43 = vsub.s32 (!%p263_p2), 0, %v367_v42  ;;  %v364_v44 = vld [vmem:[%s1606_s4] sm:$0x3] (!%p263_p2)  ;;  %v372_v45 = vsub.s32 (!%p263_p2), 1, %v367_v42  ;;  %1206 = vmatprep.mubr.msk.bf16.mxu1 (!%p263_p2), %vm1359_vm1, %v1358_v40  ;;  %s1362_s16 = smov (!%p263_p2), 80   ;;  %s1363_s17 = smov (!%p263_p2), 64  }
   0xb   : > { %422 = vmatpush1.bf16.msra.mxu0 (!%p263_p2), %v1302_v17  ;;  %v685_v41 = vld [vmem:[%s1607_s5 + $0x38] sm:$0xff] (!%p263_p2)  ;;  %s1364_s21 = smov (!%p263_p2), 16   ;;  %s1365_s24 = smov (!%p263_p2), 32   ;;  %vm996_vm3 = vcmask (!%p263_p2), 261120   ;;  %vm999_vm4 = vcmask (!%p263_p2), 392192  }
   0xc   : > { %423 = vmatprep.subr.bf16.mxu0 (!%p263_p2), %v1303_v18  ;;  %v369_v46 = vrot.slane (!%p263_p2), %v364_v44, %v368_v43  ;;  %v373_v48 = vrot.slane (!%p263_p2), %v364_v44, %v372_v45  ;;  %v680_v18 = vld [vmem:[%s1607_s5 + $0x10] sm:$0xff] (!%p263_p2)  ;;  %s1366_s25 = smov (!%p263_p2), 48  }
   0xd   : > { %s1612_s28 = smov (!%p296_p3, %s1145_s28), 1 }
   0xe   : > { %s1181_s29 = sshll.u32 %s1612_s28, 4 }
   0xf   : > { %s300_s10 = scalar_lea.vmem %s1602_s0, %s1181_s29  ;;  %424 = vmatpush1.bf16.msra.mxu0 %v1305_v19  ;;  %s305_s11 = scalar_lea.vmem %s1610_s8, %s1181_s29 }
  0x10   : > { %v1428_v0 = vld [vmem:[%s300_s10] sm:$0xff]  ;;  %v1430_v1 = vld [vmem:[%s300_s10 + $0x8] sm:$0xff]  ;;  %425 = vmatprep.subr.bf16.mxu0 %v1306_v20  ;;  %v681_v20 = vld [vmem:[%s1607_s5 + $0x18] sm:$0xff] }
  0x11   : > { %v312_v2 = vsel %vm311_vm0, %v1428_v0, 0.0  ;;  %v315_v3 = vsel %vm311_vm0, %v1430_v1, 0.0 }
  0x12   : > { %313 = vadd.xlane.f32.xlu0 %v312_v2 }
  0x13   : > { %426 = vmatpush1.bf16.msra.mxu0 %v1308_v21 }
  0x14   : > { %1228 = vmatprep.subr.bf16.mxu0 %v1358_v40 }
  0x16   : > { %316 = vadd.xlane.f32.xlu0 %v315_v3 }
  0x9f   : > { %v314_v4 = vpop.xlane.xlu0 %313 }
  0xa0   : > { %v319_v5 = vmul.f32 0.015625, %v314_v4 }
  0xa2   : > { %v321_v6 = vsub.f32 %v1428_v0, %v319_v5 }
  0xa3   : > { %v317_v7 = vpop.xlane.xlu0 %316 }
  0xa4   : > { %v320_v8 = vmul.f32 0.015625, %v317_v7  ;;  %v323_v9 = vmul.f32 %v321_v6, %v321_v6 }
  0xa6   : > { %v322_v10 = vsub.f32 %v1430_v1, %v320_v8  ;;  %v325_v11 = vsel %vm311_vm0, %v323_v9, 0.0  ;;  %v678_v8 = vld [vmem:[%s1607_s5] sm:$0xff] }
  0xa7   : > { %326 = vadd.xlane.f32.xlu1 %v325_v11 }
  0xa8   : > { %v324_v12 = vmul.f32 %v322_v10, %v322_v10 }
  0xaa   : > { %v328_v13 = vsel %vm311_vm0, %v324_v12, 0.0 }
  0xab   : > { %329 = vadd.xlane.f32.xlu1 %v328_v13 }
 0x134   : > { %v327_v23 = vpop.xlane.xlu1 %326 }
 0x135   : > { %v331_v24 = vmul.f32 0.015625, %v327_v23 }
 0x137   : > { %v333_v25 = vadd.f32 1e-05, %v331_v24 }
 0x138   : > { %v330_v26 = vpop.xlane.xlu1 %329 }
 0x139   : > { %1313 = vrsqrt.f32 %v333_v25  ;;  %v332_v27 = vmul.f32 0.015625, %v330_v26 }
 0x13b   : > { %v334_v28 = vadd.f32 1e-05, %v332_v27  ;;  %v682_v27 = vld [vmem:[%s1607_s5 + $0x20] sm:$0xff] }
 0x13d   : > { %1315 = vrsqrt.f32 %v334_v28 }
 0x143   : > { %v1314_v29 = vpop.eup %1313 }
 0x144   : > { %v337_v30 = vmul.f32 %v1314_v29, %v321_v6 }
 0x146   : > { %v345_v34 = vmul.f32 %v1154_v31, %v337_v30  ;;  %v683_v30 = vld [vmem:[%s1607_s5 + $0x28] sm:$0xff] }
 0x147   : > { %v1316_v32 = vpop.eup %1315 }
 0x148   : > { %v338_v33 = vmul.f32 %v1316_v32, %v322_v10  ;;  %v353_v37 = vadd.f32 %v1155_v35, %v345_v34  ;;  %v679_v10 = vld [vmem:[%s1607_s5 + $0x8] sm:$0xff] }
 0x14a   : > { %v346_v36 = vmul.f32 %v1154_v31, %v338_v33 }
 0x14c   : > { %v354_v38 = vadd.f32 %v1155_v35, %v346_v36 }
 0x14e   : > { %v355_v39 = vpack.c.bf16 %v354_v38, %v353_v37  ;;  %v684_v38 = vld [vmem:[%s1607_s5 + $0x30] sm:$0xff] }
 0x150   : > { %1164 = vmatmul.mubr.msk.bf16.vlgmr.msra.gmra.mrb[0].mxu0 %vm311_vm0, %v355_v39 }
 0x151   : > { %1230 = vmatprep.mubr.msk.bf16.mxu0 %vm1359_vm1, %v1358_v40 }
 0x223   : > { %v453_v47 = vpop.f32.mrb[0].mxu0 }
 0x224   : > { %v455_v49 = vpop.f32.mrb[1].mxu0  ;;  %v454_v51 = vadd.f32 %v453_v47, %v369_v46 }
 0x225   : > { %v457_v50 = vpop.f32.mrb[2].mxu0  ;;  %v456_v54 = vadd.f32 %v455_v49, %v373_v48 }
 0x226   : > { %v458_v52 = vadd.f32 %v457_v50, %v369_v46  ;;  %v459_v53 = vpop.f32.mrb[3].mxu0 }
 0x227   : > { %v460_v55 = vadd.f32 %v459_v53, %v373_v48 }
 0x228   : > { %v462_v56 = vpack.c.bf16 %v458_v52, %v454_v51 }
 0x229   : > { %v1480_v57 = vpack.c.bf16 %v460_v55, %v456_v54 }
 0x22a   : > { %467 = vrot.lane.b32.xlu1 %v462_v56, %s1360_s14  ;;  %465 = vrot.lane.b32.xlu0 %v462_v56, %s1361_s15 }
 0x22b   : > { %1229 = vmatpush3.bf16.msra.mxu0 %v1480_v57 }
 0x22c   : > { %1240 = vmatprep.subr.bf16.mxu0 %v1358_v40 }
 0x22e   : > { %469 = vrot.lane.b32.xlu1 %v462_v56, %s1362_s16 }
 0x232   : > { %481 = vrot.lane.b32.xlu1 %v462_v56, %s1363_s17 }
 0x29c   : > { %v468_v58 = vpop.permute.xlu1 %467  ;;  %v466_v59 = vpop.permute.xlu0 %465 }
 0x29d   : > { %580 = vrot.lane.b32.xlu1 %v468_v58, %s1363_s17  ;;  %531 = vrot.lane.b32.xlu0 %v466_v59, %s1363_s17 }
 0x2a0   : > { %v470_v60 = vpop.permute.xlu1 %469 }
 0x2a1   : > { %472 = vrot.lane.b32.xlu1 %v1480_v57, %s1361_s15  ;;  %629 = vrot.lane.b32.xlu0 %v470_v60, %s1363_s17 }
 0x2a4   : > { %v482_v61 = vpop.permute.xlu1 %481 }
 0x2a5   : > { %v488_v62 = vsel %vm483_vm2, %v482_v61, 0 }
 0x2a6   : > { %1205 = vmatpush3.bf16.xpose.msra.mxu1 %v488_v62 }
 0x2a7   : > { %1210 = vmatprep.subr.bf16.mxu1 %v1358_v40 }
 0x2ad   : > { %1207 = vmatmul.mubr.msk.bf16.vlgmr.msra.gmra.mrb[0].mxu1 %vm483_vm2, %v462_v56 }
 0x2ae   : > { %1212 = vmatprep.mubr.msk.bf16.mxu1 %vm1359_vm1, %v1358_v40 }
 0x30f   : > { %v532_v63 = vpop.permute.xlu0 %531  ;;  %v581_v3 = vpop.permute.xlu1 %580 }
 0x310   : > { %v537_v2 = vsel %vm483_vm2, %v532_v63, 0  ;;  %v586_v4 = vsel %vm483_vm2, %v581_v3, 0 }
 0x311   : > { %1211 = vmatpush3.bf16.xpose.msra.mxu1 %v537_v2 }
 0x312   : > { %1216 = vmatprep.subr.bf16.mxu1 %v1358_v40 }
 0x313   : > { %v630_v5 = vpop.permute.xlu0 %629  ;;  %v473_v7 = vpop.permute.xlu1 %472 }
 0x314   : > { %v635_v6 = vsel %vm483_vm2, %v630_v5, 0 }
 0x318   : > { %1213 = vmatmul.mubr.msk.bf16.vlgmr.msra.gmra.mrb[4].mxu1 %vm483_vm2, %v466_v59 }
 0x319   : > { %1217 = vmatpush3.bf16.xpose.msra.mxu1 %v586_v4  ;;  %1218 = vmatprep.mubr.msk.bf16.mxu1 %vm1359_vm1, %v1358_v40 }
 0x31a   : > { %1222 = vmatprep.subr.bf16.mxu1 %v1358_v40 }
 0x320   : > { %1219 = vmatmul.mubr.msk.bf16.vlgmr.msra.gmra.mrb[8].mxu1 %vm483_vm2, %v468_v58 }
 0x321   : > { %1223 = vmatpush3.bf16.xpose.msra.mxu1 %v635_v6  ;;  %1224 = vmatprep.mubr.msk.bf16.mxu1 %vm1359_vm1, %v1358_v40 }
 0x322   : > { %1234 = vmatprep.subr.bf16.mxu1 %v1358_v40 }
 0x328   : > { %1225 = vmatmul.mubr.msk.bf16.vlgmr.msra.gmra.mrb[12].mxu1 %vm483_vm2, %v470_v60 }
 0x329   : > { %1235 = vmatpush3.bf16.msra.mxu1 %v473_v7  ;;  %1236 = vmatprep.mubr.msk.bf16.mxu1 %vm1359_vm1, %v1358_v40 }
 0x32a   : > { %1246 = vmatprep.subr.bf16.mxu1 %v1358_v40 }
 0x380   : > { %v524_v9 = vpop.f32.mrb[0].mxu1 }
 0x381   : > { %v686_v11 = vadd.f32 %v678_v8, %v524_v9  ;;  %v1208_v12 = vpop.f32.mrb[1].mxu1 }
 0x382   : > { %v527_v13 = vpop.f32.mrb[2].mxu1 }
 0x383   : > { %v687_v14 = vadd.f32 %v679_v10, %v527_v13  ;;  %v1209_v15 = vpop.f32.mrb[3].mxu1  ;;  %v694_v16 = vsel %vm483_vm2, %v686_v11, -inf }
 0x384   : > { %695 = vmax.xlane.f32.xlu1 %v694_v16 }
 0x385   : > { %v697_v17 = vsel %vm483_vm2, %v687_v14, -inf }
 0x386   : > { %698 = vmax.xlane.f32.xlu0 %v697_v17 }
 0x3eb   : > { %v573_v19 = vpop.f32.mrb[4].mxu1 }
 0x3ec   : > { %v688_v21 = vadd.f32 %v680_v18, %v573_v19  ;;  %v1214_v22 = vpop.f32.mrb[5].mxu1 }
 0x3ed   : > { %v576_v23 = vpop.f32.mrb[6].mxu1 }
 0x3ee   : > { %v689_v24 = vadd.f32 %v681_v20, %v576_v23  ;;  %v1215_v25 = vpop.f32.mrb[7].mxu1  ;;  %v700_v26 = vsel %vm483_vm2, %v688_v21, -inf }
 0x3ef   : > { %701 = vmax.xlane.f32.xlu0 %v700_v26 }
 0x3f0   : > { %v703_v28 = vsel %vm483_vm2, %v689_v24, -inf }
 0x3f3   : > { %704 = vmax.xlane.f32.xlu0 %v703_v28  ;;  %v622_v29 = vpop.f32.mrb[8].mxu1 }
 0x3f4   : > { %v690_v31 = vadd.f32 %v682_v27, %v622_v29  ;;  %v1220_v32 = vpop.f32.mrb[9].mxu1 }
 0x3f5   : > { %v625_v33 = vpop.f32.mrb[10].mxu1 }
 0x3f6   : > { %v691_v34 = vadd.f32 %v683_v30, %v625_v33  ;;  %v1221_v35 = vpop.f32.mrb[11].mxu1  ;;  %v706_v36 = vsel %vm483_vm2, %v690_v31, -inf }
 0x3f7   : > { %707 = vmax.xlane.f32.xlu1 %v706_v36 }
 0x3f8   : > { %v709_v37 = vsel %vm483_vm2, %v691_v34, -inf }
 0x3f9   : > { %710 = vmax.xlane.f32.xlu0 %v709_v37 }
 0x3fb   : > { %v671_v39 = vpop.f32.mrb[12].mxu1 }
 0x3fc   : > { %v692_v42 = vadd.f32 %v684_v38, %v671_v39  ;;  %v1226_v43 = vpop.f32.mrb[13].mxu1 }
 0x3fd   : > { %v674_v44 = vpop.f32.mrb[14].mxu1 }
 0x3fe   : > { %v693_v45 = vadd.f32 %v685_v41, %v674_v44  ;;  %v1227_v46 = vpop.f32.mrb[15].mxu1  ;;  %v712_v47 = vsel %vm483_vm2, %v692_v42, -inf }
 0x3ff   : > { %713 = vmax.xlane.f32.xlu1 %v712_v47  ;;  %v1310_v46 = vld [vmem:[%s1608_s6 + $0x8] sm:$0xff]  }
 0x400   : > { %v715_v48 = vsel %vm483_vm2, %v693_v45, -inf }
 0x401   : > { %716 = vmax.xlane.f32.xlu0 %v715_v48 }
 0x410   : > { %478 = vrot.lane.b32.xlu1 %v1480_v57, %s1362_s16 }
 0x411   : > { %v696_v49 = vpop.xlane.xlu1 %695 }
 0x412   : > { %v718_v50 = vsub.f32 %v686_v11, %v696_v49 }
 0x413   : > { %v699_v51 = vpop.xlane.xlu0 %698 }
 0x414   : > { %v726_v52 = vmul.f32 1.442695, %v718_v50  ;;  %v719_v53 = vsub.f32 %v687_v14, %v699_v51 }
 0x416   : > { %v728_v54 = vmul.f32 1.442695, %v719_v53  ;;  %1317 = vpow2.f32 %v726_v52 }
 0x417   : > { %475 = vrot.lane.b32.xlu0 %v1480_v57, %s1360_s14 }
 0x418   : > { %1319 = vpow2.f32 %v728_v54  ;;  %v1311_v54 = vld [vmem:[%s1608_s6 + $0x10] sm:$0xff]  }
 0x420   : > { %v1318_v55 = vpop.eup %1317 }
 0x422   : > { %v1320_v56 = vpop.eup %1319 }
 0x423   : > { %v766_v58 = vpack.c.bf16 %v1320_v56, %v1318_v55  ;;  %v745_v32 = vsel %vm483_vm2, %v1320_v56, 0.0 }
 0x425   : > { %1231 = vmatmul.mubr.msk.bf16.vlgmr.msra.gmra.mrb[4].mxu0 %vm483_vm2, %v766_v58 }
 0x426   : > { %1242 = vmatprep.mubr.msk.bf16.mxu0 %vm1359_vm1, %v1358_v40 }
 0x47c   : > { %v702_v59 = vpop.xlane.xlu0 %701 }
 0x47d   : > { %v720_v60 = vsub.f32 %v688_v21, %v702_v59 }
 0x47f   : > { %v730_v61 = vmul.f32 1.442695, %v720_v60 }
 0x480   : > { %v705_v62 = vpop.xlane.xlu0 %704 }
 0x481   : > { %1321 = vpow2.f32 %v730_v61  ;;  %v721_v63 = vsub.f32 %v689_v24, %v705_v62 }
 0x483   : > { %v732_v2 = vmul.f32 1.442695, %v721_v63 }
 0x484   : > { %v708_v3 = vpop.xlane.xlu1 %707 }
 0x485   : > { %1323 = vpow2.f32 %v732_v2  ;;  %v722_v4 = vsub.f32 %v690_v31, %v708_v3  ;;  %v742_v31 = vsel %vm483_vm2, %v1318_v55, 0.0  ;;  %v1312_v3 = vld [vmem:[%s1608_s6 + $0x18] sm:$0xff]  }
 0x486   : > { %v711_v57 = vpop.xlane.xlu0 %710 }
 0x487   : > { %v734_v5 = vmul.f32 1.442695, %v722_v4  ;;  %v723_v6 = vsub.f32 %v691_v34, %v711_v57 }
 0x489   : > { %1325 = vpow2.f32 %v734_v5  ;;  %v736_v7 = vmul.f32 1.442695, %v723_v6 }
 0x48b   : > { %v1322_v8 = vpop.eup %1321  ;;  %1327 = vpow2.f32 %v736_v7 }
 0x48c   : > { %v714_v9 = vpop.xlane.xlu1 %713  ;;  %v748_v10 = vsel %vm483_vm2, %v1322_v8, 0.0 }
 0x48d   : > { %v724_v11 = vsub.f32 %v692_v42, %v714_v9  ;;  %749 = vadd.xlane.f32.xlu1 %v748_v10  ;;  %v1309_v42 = vld [vmem:[%s1608_s6] sm:$0xff]  }
 0x48e   : > { %v717_v12 = vpop.xlane.xlu0 %716 }
 0x48f   : > { %v1324_v13 = vpop.eup %1323  ;;  %v738_v14 = vmul.f32 1.442695, %v724_v11  ;;  %v725_v15 = vsub.f32 %v693_v45, %v717_v12 }
 0x490   : > { %v479_v16 = vpop.permute.xlu1 %478  ;;  %v751_v17 = vsel %vm483_vm2, %v1324_v13, 0.0  ;;  %v767_v18 = vpack.c.bf16 %v1324_v13, %v1322_v8 }
 0x491   : > { %1329 = vpow2.f32 %v738_v14  ;;  %v740_v19 = vmul.f32 1.442695, %v725_v15  ;;  %752 = vadd.xlane.f32.xlu0 %v751_v17 }
 0x492   : > { %1237 = vmatmul.mubr.msk.bf16.vlgmr.msra.gmra.mrb[16].mxu1 %vm483_vm2, %v767_v18  ;;  %v476_v20 = vpop.permute.xlu0 %475 }
 0x493   : > { %v1326_v21 = vpop.eup %1325  ;;  %1331 = vpow2.f32 %v740_v19  ;;  %1247 = vmatpush3.bf16.msra.mxu1 %v479_v16  ;;  %1241 = vmatpush3.bf16.msra.mxu0 %v476_v20 }
 0x494   : > { %v754_v22 = vsel %vm483_vm2, %v1326_v21, 0.0  ;;  %1248 = vmatprep.mubr.msk.bf16.mxu1 %vm1359_vm1, %v1358_v40  ;;  %1252 = vmatprep.subr.bf16.mxu0 %v1358_v40 }
 0x495   : > { %v1328_v23 = vpop.eup %1327  ;;  %755 = vadd.xlane.f32.xlu0 %v754_v22 }
 0x496   : > { %v757_v24 = vsel %vm483_vm2, %v1328_v23, 0.0  ;;  %v768_v25 = vpack.c.bf16 %v1328_v23, %v1326_v21 }
 0x497   : > { %758 = vadd.xlane.f32.xlu1 %v757_v24 }
 0x498   : > { %1243 = vmatmul.mubr.msk.bf16.vlgmr.msra.gmra.mrb[8].mxu0 %vm483_vm2, %v768_v25 }
 0x499   : > { %1260 = vmatprep.mubr.msk.bf16.mxu0 %vm1359_vm1, %v1358_v40  ;;  %1253 = vmatpush3.bf16.msra.mxu0 %v1309_v42 }
 0x49a   : > { %1254 = vmatprep.subr.bf16.mxu0 %v1358_v40 }
 0x49b   : > { %v1330_v26 = vpop.eup %1329 }
 0x49c   : > { %v760_v27 = vsel %vm483_vm2, %v1330_v26, 0.0 }
 0x49d   : > { %v1332_v28 = vpop.eup %1331  ;;  %761 = vadd.xlane.f32.xlu0 %v760_v27  ;;  %1255 = vmatpush3.bf16.msra.mxu0 %v1310_v46 }
 0x49e   : > { %v763_v29 = vsel %vm483_vm2, %v1332_v28, 0.0  ;;  %v769_v30 = vpack.c.bf16 %v1332_v28, %v1330_v26  ;;  %1256 = vmatprep.subr.bf16.mxu0 %v1358_v40 }
 0x49f   : > { %764 = vadd.xlane.f32.xlu1 %v763_v29 }
 0x4a0   : > { %1249 = vmatmul.mubr.msk.bf16.vlgmr.msra.gmra.mrb[20].mxu1 %vm483_vm2, %v769_v30 }
 0x4a1   : > { %743 = vadd.xlane.f32.xlu0 %v742_v31  ;;  %1257 = vmatpush3.bf16.msra.mxu0 %v1311_v54 }
 0x4a2   : > { %1258 = vmatprep.subr.bf16.mxu0 %v1358_v40 }
 0x4a3   : > { %746 = vadd.xlane.f32.xlu1 %v745_v32 }
 0x4a5   : > { %1259 = vmatpush3.bf16.msra.mxu0 %v1312_v3 }
 0x4f8   : > { %v1563_v33 = vpop.f32.mrb[4].mxu0 }
 0x4f9   : > { %v1232_v34 = vpop.f32.mrb[5].mxu0 }
 0x4fa   : > { %v1565_v35 = vpop.f32.mrb[6].mxu0 }
 0x4fb   : > { %v1233_v36 = vpop.f32.mrb[7].mxu0 }
 0x51a   : > { %v750_v37 = vpop.xlane.xlu1 %749 }
 0x51b   : > { %1333 = vrcp.f32 %v750_v37 }
 0x51e   : > { %v753_v38 = vpop.xlane.xlu0 %752 }
 0x51f   : > { %1335 = vrcp.f32 %v753_v38 }
 0x522   : > { %v756_v39 = vpop.xlane.xlu0 %755 }
 0x523   : > { %1337 = vrcp.f32 %v756_v39 }
 0x524   : > { %v759_v41 = vpop.xlane.xlu1 %758 }
 0x525   : > { %1339 = vrcp.f32 %v759_v41  ;;  %v1334_v44 = vpop.eup %1333 }
 0x529   : > { %v1336_v47 = vpop.eup %1335 }
 0x52a   : > { %v762_v48 = vpop.xlane.xlu0 %761 }
 0x52b   : > { %1341 = vrcp.f32 %v762_v48 }
 0x52c   : > { %v765_v50 = vpop.xlane.xlu1 %764 }
 0x52d   : > { %1343 = vrcp.f32 %v765_v50  ;;  %v1338_v58 = vpop.eup %1337 }
 0x52e   : > { %v744_v12 = vpop.xlane.xlu0 %743 }
 0x52f   : > { %v1340_v60 = vpop.eup %1339  ;;  %1345 = vrcp.f32 %v744_v12 }
 0x530   : > { %v747_v13 = vpop.xlane.xlu1 %746 }
 0x531   : > { %1347 = vrcp.f32 %v747_v13 }
 0x535   : > { %v1342_v5 = vpop.eup %1341 }
 0x537   : > { %v1344_v7 = vpop.eup %1343 }
 0x539   : > { %v1346_v15 = vpop.eup %1345 }
 0x53a   : > { %v962_v22 = vmul.f32 %v1346_v15, %v1563_v33  ;;  %v1173_v33 = vld [vmem:[%s1609_s7] ss:$0 sm:$0xff] }
 0x53b   : > { %v1348_v17 = vpop.eup %1347 }
 0x53c   : > { %v963_v23 = vmul.f32 %v1348_v17, %v1565_v35 }
 0x565   : > { %v851_v43 = vpop.f32.mrb[16].mxu1 }
 0x566   : > { %v1238_v45 = vpop.f32.mrb[17].mxu1  ;;  %v964_v51 = vmul.f32 %v1334_v44, %v851_v43 }
 0x567   : > { %v854_v49 = vpop.f32.mrb[18].mxu1 }
 0x568   : > { %v965_v52 = vmul.f32 %v1336_v47, %v854_v49  ;;  %v1239_v53 = vpop.f32.mrb[19].mxu1 }
 0x56a   : > { %v1282_v55 = vpack.i.bf16 %v965_v52, %v964_v51 }
 0x56b   : > { %v895_v56 = vpop.f32.mrb[8].mxu0 }
 0x56c   : > { %v1244_v59 = vpop.f32.mrb[9].mxu0  ;;  %1283 = vrot.lane.b32.xlu0 %v1282_v55, %s1364_s21  ;;  %v966_v62 = vmul.f32 %v1338_v58, %v895_v56 }
 0x56d   : > { %v898_v61 = vpop.f32.mrb[10].mxu0 }
 0x56e   : > { %v967_v63 = vmul.f32 %v1340_v60, %v898_v61  ;;  %v1245_v2 = vpop.f32.mrb[11].mxu0 }
 0x570   : > { %v1287_v4 = vpack.i.bf16 %v967_v63, %v966_v62 }
 0x572   : > { %1288 = vrot.lane.b32.xlu1 %v1287_v4, %s1365_s24 }
 0x573   : > { %v939_v57 = vpop.f32.mrb[20].mxu1 }
 0x574   : > { %v1250_v6 = vpop.f32.mrb[21].mxu1  ;;  %v968_v9 = vmul.f32 %v1342_v5, %v939_v57 }
 0x575   : > { %v942_v8 = vpop.f32.mrb[22].mxu1 }
 0x576   : > { %v969_v10 = vmul.f32 %v1344_v7, %v942_v8  ;;  %v1251_v11 = vpop.f32.mrb[23].mxu1 }
 0x578   : > { %v1292_v40 = vpack.i.bf16 %v969_v10, %v968_v9 }
 0x57a   : > { %1293 = vrot.lane.b32.xlu1 %v1292_v40, %s1366_s25 }
 0x5de   : > { %v1284_v14 = vpop.permute.xlu0 %1283 }
 0x5df   : > { %v1286_v18 = vunpack.i.h.bf16 %v1284_v14  ;;  %v1285_v19 = vunpack.i.l.bf16 %v1284_v14 }
 0x5e1   : > { %v995_v25 = vsel %vm483_vm2, %v963_v23, %v1286_v18  ;;  %v994_v26 = vsel %vm483_vm2, %v962_v22, %v1285_v19 }
 0x5e4   : > { %v1289_v16 = vpop.permute.xlu1 %1288 }
 0x5e5   : > { %v1291_v20 = vunpack.i.h.bf16 %v1289_v16  ;;  %v1290_v21 = vunpack.i.l.bf16 %v1289_v16 }
 0x5e7   : > { %v997_v29 = vsel %vm996_vm3, %v994_v26, %v1290_v21  ;;  %v998_v30 = vsel %vm996_vm3, %v995_v25, %v1291_v20 }
 0x5ec   : > { %v1294_v24 = vpop.permute.xlu1 %1293 }
 0x5ed   : > { %v1296_v27 = vunpack.i.h.bf16 %v1294_v24  ;;  %v1295_v28 = vunpack.i.l.bf16 %v1294_v24 }
 0x5ef   : > { %v1000_v31 = vsel %vm999_vm4, %v997_v29, %v1295_v28  ;;  %v1001_v32 = vsel %vm999_vm4, %v998_v30, %v1296_v27 }
 0x5f0   : > { %v1002_v34 = vpack.c.bf16 %v1001_v32, %v1000_v31 }
 0x5f2   : > { %1261 = vmatmul.mubr.msk.bf16.vlgmr.msra.gmra.mrb[12].mxu0 %vm311_vm0, %v1002_v34 }
 0x6c5   : > { %v1079_v35 = vpop.f32.mrb[12].mxu0 }
 0x6c6   : > { %v1080_v36 = vadd.f32 %v1173_v33, %v1079_v35  ;;  %v1262_v37 = vpop.f32.mrb[13].mxu0 }
 0x6c7   : > { %v1082_v38 = vpop.f32.mrb[14].mxu0 }
 0x6c8   : > { %v1086_v39 = vadd.f32 %v1080_v36, %v1428_v0  ;;  %v1083_v41 = vadd.f32 %v1173_v33, %v1082_v38  ;;  %v1263_v42 = vpop.f32.mrb[15].mxu0 }
 0x6ca   : > { %1088 = vst.msk [vmem:[%s305_s11] sm:$0xff] %vm311_vm0, %v1086_v39  ;;  %v1087_v43 = vadd.f32 %v1083_v41, %v1430_v1 }
 0x6cc   : > { %1089 = vst.msk [vmem:[%s305_s11 + $0x8] sm:$0xff] %vm311_vm0, %v1087_v43 }
 0x6cd PF: > { %s18_s27 = sadd.s32 1, %s1355_s27  }
 0x6ce   : > { %p15_p4 = scmp.ge.s32.totalorder %s18_s27, 4  }
 0x6d0   :  { %17 = sbr.rel (!%p15_p4) target bundleno = 1 (0x1), region = 82 }

// kernel: video_processor_forward.18
= control target key start
LH: loop header
LB: loop body
LE: loop exit
PB: predicated region body
PF: predicated region fallthrough
CT: control target
= control target key end

     0   :  { %s947_s24 = smov 0   ;;  %s1104_s0 = inlined_call_operand.vmem [shape: f32[32,64], index: 0, kind: input, shape index: {}]   ;;  %s1105_s1 = inlined_call_operand.vmem [shape: f32[1,64], index: 1, kind: input, shape index: {}]   ;;  %s1106_s2 = inlined_call_operand.vmem [shape: f32[1,64], index: 2, kind: input, shape index: {}]   ;;  %s1107_s3 = inlined_call_operand.vmem [shape: bf16[64,256], index: 3, kind: input, shape index: {}]   ;;  %s1108_s4 = inlined_call_operand.vmem [shape: f32[1,256], index: 4, kind: input, shape index: {}]   ;;  %s1109_s5 = inlined_call_operand.vmem [shape: bf16[256,64], index: 5, kind: input, shape index: {}]   ;;  %s1110_s6 = inlined_call_operand.vmem [shape: f32[1,64], index: 6, kind: input, shape index: {}]   ;;  %s1111_s7 = inlined_call_operand.vmem [shape: f32[32,64], index: 7, kind: output, shape index: {}]  }
   0x1 LB: > { %s780_s25 = sadd.s32 4294967295, %s904_s24   ;;  %p784_p0 = scmp.ge.s32.totalorder %s904_s24, 1  ;;  %s904_s24 = sphi %s947_s24, %s17_s24  }
   0x2   : > { %p238_p1 = scmp.lt.s32.totalorder %s904_s24, 3 }
   0x4   : > { %p239_p2 = pnand %p784_p0, %p238_p1 }
   0x5   : > { %s785_s26 = sshll.u32 (!%p239_p2), %s780_s25, 1  ;;  %vm287_vm0 = vcmask (!%p239_p2), 523264   ;;  %v850_v14 = vld [vmem:[%s1107_s3 + $0x4] ss:$8 sps:$4 sm:$0xff] (!%p239_p2)   ;;  %v852_v15 = vld [vmem:[%s1107_s3] ss:$8 sps:$4 sm:$0xff] (!%p239_p2)   ;;  %v342_v56 = vlaneseq (!%p239_p2) }
   0x6   : > { %242 = sbr.rel (%p239_p2) target bundleno = 826 (0x33a), region = 48  ;;  %p271_p3 = scmp.lt.s32.totalorder (!%p239_p2), %s785_s26, 3  ;;  %395 = vmatprep.subr.bf16.mxu0 (!%p239_p2), %v850_v14  ;;  %v853_v16 = vld [vmem:[%s1107_s3 + $0x14] ss:$8 sps:$4 sm:$0xff] (!%p239_p2)   ;;  %v855_v17 = vld [vmem:[%s1107_s3 + $0x10] ss:$8 sps:$4 sm:$0xff] (!%p239_p2)  }
   0x7   : > { %396 = vmatpush1.bf16.msra.mxu0 (!%p239_p2), %v852_v15  ;;  %v856_v18 = vld [vmem:[%s1107_s3 + $0x24] ss:$8 sps:$4 sm:$0xff] (!%p239_p2)   ;;  %v858_v19 = vld [vmem:[%s1107_s3 + $0x20] ss:$8 sps:$4 sm:$0xff] (!%p239_p2)   ;;  %v859_v20 = vld [vmem:[%s1107_s3 + $0x34] ss:$8 sps:$4 sm:$0xff] (!%p239_p2)  }
   0x8   : > { %397 = vmatprep.subr.bf16.mxu0 (!%p239_p2), %v853_v16  ;;  %v861_v21 = vld [vmem:[%s1107_s3 + $0x30] ss:$8 sps:$4 sm:$0xff] (!%p239_p2)   ;;  %v906_v22 = vmov (!%p239_p2), 0   ;;  %v789_v31 = vld [vmem:[%s1105_s1] ss:$0 sm:$0xff] (!%p239_p2)  ;;  %v864_v42 = vld [vmem:[%s1109_s5 + $0x48] sm:$0xff] (!%p239_p2)  }
   0x9   : > { %427 = vmatprep.mubr.bf16.mxu0 (!%p239_p2), %v906_v22  ;;  %v790_v35 = vld [vmem:[%s1106_s2] ss:$0 sm:$0xff] (!%p239_p2)  ;;  %v865_v43 = vld [vmem:[%s1109_s5 + $0x8] sm:$0xff] (!%p239_p2)   ;;  %v866_v44 = vld [vmem:[%s1109_s5 + $0x50] sm:$0xff] (!%p239_p2)   ;;  %v343_v57 = vshrl.u32 (!%p239_p2), %v342_v56, 7 }
   0xa   : > { %v862_v40 = vld [vmem:[%s1109_s5 + $0x40] sm:$0xff] (!%p239_p2)   ;;  %v867_v45 = vld [vmem:[%s1109_s5 + $0x10] sm:$0xff] (!%p239_p2)   ;;  %v868_v46 = vld [vmem:[%s1109_s5 + $0x58] sm:$0xff] (!%p239_p2)  }
   0xb   : > { %398 = vmatpush1.bf16.msra.mxu0 (!%p239_p2), %v855_v17  ;;  %v863_v41 = vld [vmem:[%s1109_s5] sm:$0xff] (!%p239_p2)   ;;  %819 = vmatprep.subr.bf16.mxu1 (!%p239_p2), %v862_v40  ;;  %v869_v47 = vld [vmem:[%s1109_s5 + $0x18] sm:$0xff] (!%p239_p2)   ;;  %v872_v50 = vld [vmem:[%s1109_s5 + $0x68] sm:$0xff] (!%p239_p2)   ;;  %v344_v58 = vsub.s32 (!%p239_p2), 0, %v343_v57  ;;  %v348_v60 = vsub.s32 (!%p239_p2), 1, %v343_v57 }
   0xc   : > { %399 = vmatprep.subr.bf16.mxu0 (!%p239_p2), %v856_v18  ;;  %820 = vmatpush3.bf16.msra.mxu1 (!%p239_p2), %v863_v41  ;;  %v870_v48 = vld [vmem:[%s1109_s5 + $0x60] sm:$0xff] (!%p239_p2)   ;;  %v873_v51 = vld [vmem:[%s1109_s5 + $0x28] sm:$0xff] (!%p239_p2)   ;;  %v874_v52 = vld [vmem:[%s1109_s5 + $0x70] sm:$0xff] (!%p239_p2)  }
   0xd   : > { %s1113_s26 = smov (!%p271_p3, %s785_s26), 3  ;;  %821 = vmatprep.subr.bf16.mxu1 %v864_v42  ;;  %v871_v49 = vld [vmem:[%s1109_s5 + $0x20] sm:$0xff]   ;;  %v875_v53 = vld [vmem:[%s1109_s5 + $0x30] sm:$0xff]   ;;  %v876_v54 = vld [vmem:[%s1109_s5 + $0x78] sm:$0xff]  }
   0xe   : > { %s786_s27 = sshll.u32 %s1113_s26, 3  ;;  %v877_v55 = vld [vmem:[%s1109_s5 + $0x38] sm:$0xff]   ;;  %v340_v59 = vld [vmem:[%s1108_s4] sm:$0x3] }
   0xf   : > { %s274_s30 = scalar_lea.vmem %s1104_s0, %s786_s27  ;;  %400 = vmatpush1.bf16.msra.mxu0 %v858_v19  ;;  %v345_v61 = vrot.slane %v340_v59, %v344_v58  ;;  %v349_v62 = vrot.slane %v340_v59, %v348_v60  ;;  %s280_s29 = scalar_lea.vmem %s1111_s7, %s786_s27 }
  0x10   : > { %v963_v0 = vld [vmem:[%s274_s30] sm:$0xff]  ;;  %v965_v1 = vld [vmem:[%s274_s30 + $0x8] sm:$0xff]  ;;  %401 = vmatprep.subr.bf16.mxu0 %v859_v20  ;;  %822 = vmatpush3.bf16.msra.mxu1 %v865_v43 }
  0x11   : > { %v288_v2 = vsel %vm287_vm0, %v963_v0, 0.0  ;;  %v291_v3 = vsel %vm287_vm0, %v965_v1, 0.0  ;;  %823 = vmatprep.subr.bf16.mxu1 %v866_v44 }
  0x12   : > { %289 = vadd.xlane.f32.xlu0 %v288_v2 }
  0x13   : > { %402 = vmatpush1.bf16.msra.mxu0 %v861_v21 }
  0x14   : > { %824 = vmatpush3.bf16.msra.mxu1 %v867_v45 }
  0x15   : > { %825 = vmatprep.subr.bf16.mxu1 %v868_v46 }
  0x16   : > { %292 = vadd.xlane.f32.xlu0 %v291_v3 }
  0x18   : > { %826 = vmatpush3.bf16.msra.mxu1 %v869_v47 }
  0x19   : > { %827 = vmatprep.subr.bf16.mxu1 %v870_v48 }
  0x1c   : > { %828 = vmatpush3.bf16.msra.mxu1 %v871_v49 }
  0x1d   : > { %829 = vmatprep.subr.bf16.mxu1 %v872_v50 }
  0x20   : > { %830 = vmatpush3.bf16.msra.mxu1 %v873_v51 }
  0x21   : > { %831 = vmatprep.subr.bf16.mxu1 %v874_v52 }
  0x24   : > { %832 = vmatpush3.bf16.msra.mxu1 %v875_v53 }
  0x25   : > { %833 = vmatprep.subr.bf16.mxu1 %v876_v54 }
  0x28   : > { %834 = vmatpush3.bf16.msra.mxu1 %v877_v55 }
  0x9f   : > { %v290_v4 = vpop.xlane.xlu0 %289 }
  0xa0   : > { %v295_v5 = vmul.f32 0.015625, %v290_v4 }
  0xa2   : > { %v297_v6 = vsub.f32 %v963_v0, %v295_v5 }
  0xa3   : > { %v293_v7 = vpop.xlane.xlu0 %292 }
  0xa4   : > { %v296_v8 = vmul.f32 0.015625, %v293_v7  ;;  %v299_v9 = vmul.f32 %v297_v6, %v297_v6 }
  0xa6   : > { %v298_v10 = vsub.f32 %v965_v1, %v296_v8  ;;  %v301_v11 = vsel %vm287_vm0, %v299_v9, 0.0 }
  0xa7   : > { %302 = vadd.xlane.f32.xlu1 %v301_v11 }
  0xa8   : > { %v300_v12 = vmul.f32 %v298_v10, %v298_v10 }
  0xaa   : > { %v304_v13 = vsel %vm287_vm0, %v300_v12, 0.0 }
  0xab   : > { %305 = vadd.xlane.f32.xlu1 %v304_v13 }
 0x134   : > { %v303_v23 = vpop.xlane.xlu1 %302 }
 0x135   : > { %v307_v24 = vmul.f32 0.015625, %v303_v23 }
 0x137   : > { %v309_v25 = vadd.f32 1e-05, %v307_v24 }
 0x138   : > { %v306_v26 = vpop.xlane.xlu1 %305 }
 0x139   : > { %878 = vrsqrt.f32 %v309_v25  ;;  %v308_v27 = vmul.f32 0.015625, %v306_v26 }
 0x13b   : > { %v310_v28 = vadd.f32 1e-05, %v308_v27 }
 0x13d   : > { %880 = vrsqrt.f32 %v310_v28 }
 0x143   : > { %v879_v29 = vpop.eup %878 }
 0x144   : > { %v313_v30 = vmul.f32 %v879_v29, %v297_v6 }
 0x146   : > { %v321_v34 = vmul.f32 %v789_v31, %v313_v30 }
 0x147   : > { %v881_v32 = vpop.eup %880 }
 0x148   : > { %v314_v33 = vmul.f32 %v881_v32, %v298_v10  ;;  %v329_v37 = vadd.f32 %v790_v35, %v321_v34 }
 0x14a   : > { %v322_v36 = vmul.f32 %v789_v31, %v314_v33 }
 0x14c   : > { %v330_v38 = vadd.f32 %v790_v35, %v322_v36 }
 0x14e   : > { %v331_v39 = vpack.c.bf16 %v330_v38, %v329_v37 }
 0x150   : > { %799 = vmatmul.mubr.msk.bf16.vlgmr.msra.gmra.mrb[0].mxu0 %vm287_vm0, %v331_v39 }
 0x223   : > { %v429_v63 = vpop.f32.mrb[0].mxu0 }
 0x224   : > { %v1057_v2 = vadd.f32 %v429_v63, %v345_v61  ;;  %v431_v3 = vpop.f32.mrb[1].mxu0 }
 0x225   : > { %v1059_v4 = vadd.f32 %v431_v3, %v349_v62  ;;  %v433_v5 = vpop.f32.mrb[2].mxu0 }
 0x226   : > { %v1062_v6 = vmul.f32 0.70710677, %v1057_v2  ;;  %v1064_v7 = vadd.f32 %v433_v5, %v345_v61  ;;  %v435_v8 = vpop.f32.mrb[3].mxu0 }
 0x227   : > { %v1067_v9 = vmul.f32 0.70710677, %v1059_v4  ;;  %v1069_v10 = vadd.f32 %v435_v8, %v349_v62 }
 0x228   : > { %v446_v11 = vand.u32 2147483647, %v1062_v6  ;;  %v1073_v12 = vmul.f32 0.70710677, %v1064_v7  ;;  %vm522_vm1 = vcmp.ge.f32.partialorder %v1062_v6, 0.0 }
 0x229   : > { %v447_v13 = vand.u32 2147483647, %v1067_v9  ;;  %v1077_v14 = vmul.f32 0.70710677, %v1069_v10  ;;  %vm523_vm2 = vcmp.ge.f32.partialorder %v1067_v9, 0.0 }
 0x22a   : > { %v450_v15 = vmul.f32 0.3275911, %v446_v11  ;;  %v448_v16 = vand.u32 2147483647, %v1073_v12  ;;  %v498_v25 = vsub.f32 0.0, %v446_v11  ;;  %vm524_vm3 = vcmp.ge.f32.partialorder %v1073_v12, 0.0 }
 0x22b   : > { %v451_v17 = vmul.f32 0.3275911, %v447_v13  ;;  %v449_v18 = vand.u32 2147483647, %v1077_v14  ;;  %v499_v26 = vsub.f32 0.0, %v447_v13  ;;  %vm525_vm4 = vcmp.ge.f32.partialorder %v1077_v14, 0.0 }
 0x22c   : > { %v454_v19 = vadd.f32 1.0, %v450_v15  ;;  %v452_v20 = vmul.f32 0.3275911, %v448_v16  ;;  %v502_v28 = vmul.f32 %v498_v25, %v446_v11  ;;  %v500_v29 = vsub.f32 0.0, %v448_v16  ;;  %v800_v14 = vld [vmem:[%s1110_s6] ss:$0 sm:$0xff] }
 0x22d   : > { %v455_v21 = vadd.f32 1.0, %v451_v17  ;;  %v453_v22 = vmul.f32 0.3275911, %v449_v18  ;;  %v503_v32 = vmul.f32 %v499_v26, %v447_v13  ;;  %v501_v33 = vsub.f32 0.0, %v449_v18 }
 0x22e   : > { %882 = vrcp.f32 %v454_v19  ;;  %v456_v23 = vadd.f32 1.0, %v452_v20  ;;  %v506_v37 = vmul.f32 1.442695, %v502_v28  ;;  %v504_v38 = vmul.f32 %v500_v29, %v448_v16 }
 0x22f   : > { %884 = vrcp.f32 %v455_v21  ;;  %v457_v24 = vadd.f32 1.0, %v453_v22  ;;  %v508_v41 = vmul.f32 1.442695, %v503_v32  ;;  %v505_v44 = vmul.f32 %v501_v33, %v449_v18 }
 0x230   : > { %886 = vrcp.f32 %v456_v23  ;;  %v510_v49 = vmul.f32 1.442695, %v504_v38 }
 0x231   : > { %888 = vrcp.f32 %v457_v24  ;;  %v512_v54 = vmul.f32 1.442695, %v505_v44 }
 0x232   : > { %890 = vpow2.f32 %v506_v37 }
 0x233   : > { %892 = vpow2.f32 %v508_v41 }
 0x234   : > { %894 = vpow2.f32 %v510_v49  ;;  %v441_v49 = vmul.f32 0.5, %v1069_v10 }
 0x235   : > { %896 = vpow2.f32 %v512_v54 }
 0x238   : > { %v883_v27 = vpop.eup %882 }
 0x239   : > { %v885_v30 = vpop.eup %884  ;;  %v462_v31 = vmul.f32 1.0614054, %v883_v27 }
 0x23a   : > { %v463_v34 = vmul.f32 1.0614054, %v885_v30  ;;  %v887_v36 = vpop.eup %886 }
 0x23b   : > { %v466_v35 = vadd.f32 -1.4531521, %v462_v31  ;;  %v464_v42 = vmul.f32 1.0614054, %v887_v36  ;;  %v889_v43 = vpop.eup %888 }
 0x23c   : > { %v467_v39 = vadd.f32 -1.4531521, %v463_v34  ;;  %v465_v48 = vmul.f32 1.0614054, %v889_v43  ;;  %v891_v17 = vpop.eup %890 }
 0x23d   : > { %v470_v40 = vmul.f32 %v883_v27, %v466_v35  ;;  %v468_v47 = vadd.f32 -1.4531521, %v464_v42  ;;  %v893_v19 = vpop.eup %892 }
 0x23e   : > { %v471_v45 = vmul.f32 %v885_v30, %v467_v39  ;;  %v469_v53 = vadd.f32 -1.4531521, %v465_v48  ;;  %v895_v28 = vpop.eup %894 }
 0x23f   : > { %v474_v46 = vadd.f32 1.4214138, %v470_v40  ;;  %v472_v52 = vmul.f32 %v887_v36, %v468_v47  ;;  %v897_v34 = vpop.eup %896 }
 0x240   : > { %v475_v50 = vadd.f32 1.4214138, %v471_v45  ;;  %v473_v58 = vmul.f32 %v889_v43, %v469_v53 }
 0x241   : > { %v478_v51 = vmul.f32 %v883_v27, %v474_v46  ;;  %v476_v57 = vadd.f32 1.4214138, %v472_v52  ;;  %v439_v46 = vmul.f32 0.5, %v1059_v4 }
 0x242   : > { %v479_v55 = vmul.f32 %v885_v30, %v475_v50  ;;  %v477_v62 = vadd.f32 1.4214138, %v473_v58 }
 0x243   : > { %v482_v56 = vadd.f32 -0.28449672, %v478_v51  ;;  %v480_v61 = vmul.f32 %v887_v36, %v476_v57 }
 0x244   : > { %v483_v59 = vadd.f32 -0.28449672, %v479_v55  ;;  %v481_v8 = vmul.f32 %v889_v43, %v477_v62 }
 0x245   : > { %v486_v60 = vmul.f32 %v883_v27, %v482_v56  ;;  %v484_v5 = vadd.f32 -0.28449672, %v480_v61 }
 0x246   : > { %v487_v63 = vmul.f32 %v885_v30, %v483_v59  ;;  %v485_v16 = vadd.f32 -0.28449672, %v481_v8 }
 0x247   : > { %v490_v3 = vadd.f32 0.2548296, %v486_v60  ;;  %v488_v15 = vmul.f32 %v887_v36, %v484_v5 }
 0x248   : > { %v491_v11 = vadd.f32 0.2548296, %v487_v63  ;;  %v489_v22 = vmul.f32 %v889_v43, %v485_v16 }
 0x249   : > { %v494_v13 = vmul.f32 %v883_v27, %v490_v3  ;;  %v492_v21 = vadd.f32 0.2548296, %v488_v15 }
 0x24a   : > { %v495_v18 = vmul.f32 %v885_v30, %v491_v11  ;;  %v493_v26 = vadd.f32 0.2548296, %v489_v22 }
 0x24b   : > { %v514_v20 = vmul.f32 %v891_v17, %v494_v13  ;;  %v496_v25 = vmul.f32 %v887_v36, %v492_v21  ;;  %v438_v36 = vmul.f32 0.5, %v1057_v2 }
 0x24c   : > { %v515_v23 = vmul.f32 %v893_v19, %v495_v18  ;;  %v497_v33 = vmul.f32 %v889_v43, %v493_v26  ;;  %v440_v43 = vmul.f32 0.5, %v1064_v7 }
 0x24d   : > { %v518_v24 = vsub.f32 1.0, %v514_v20  ;;  %v516_v32 = vmul.f32 %v895_v28, %v496_v25 }
 0x24e   : > { %v519_v29 = vsub.f32 1.0, %v515_v23  ;;  %v517_v30 = vmul.f32 %v897_v34, %v497_v33 }
 0x24f   : > { %v526_v31 = vsub.f32 0.0, %v518_v24  ;;  %v520_v37 = vsub.f32 1.0, %v516_v32 }
 0x250   : > { %v527_v27 = vsub.f32 0.0, %v519_v29  ;;  %v521_v39 = vsub.f32 1.0, %v517_v30 }
 0x251   : > { %v530_v35 = vsel %vm522_vm1, %v518_v24, %v526_v31  ;;  %v528_v38 = vsub.f32 0.0, %v520_v37 }
 0x252   : > { %v531_v40 = vsel %vm523_vm2, %v519_v29, %v527_v27  ;;  %v534_v41 = vadd.f32 1.0, %v530_v35  ;;  %v529_v44 = vsub.f32 0.0, %v521_v39 }
 0x253   : > { %v532_v42 = vsel %vm524_vm3, %v520_v37, %v528_v38  ;;  %v535_v6 = vadd.f32 1.0, %v531_v40 }
 0x254   : > { %v536_v45 = vadd.f32 1.0, %v532_v42  ;;  %v533_v47 = vsel %vm525_vm4, %v521_v39, %v529_v44  ;;  %v538_v9 = vmul.f32 %v534_v41, %v438_v36 }
 0x255   : > { %v537_v50 = vadd.f32 1.0, %v533_v47  ;;  %v539_v12 = vmul.f32 %v535_v6, %v439_v46 }
 0x256   : > { %v540_v48 = vmul.f32 %v536_v45, %v440_v43 }
 0x257   : > { %v541_v51 = vmul.f32 %v537_v50, %v441_v49 }
 0x258   : > { %v542_v2 = vpack.c.bf16 %v540_v48, %v538_v9 }
 0x259   : > { %v543_v52 = vpack.c.bf16 %v541_v51, %v539_v12 }
 0x25b   : > { %711 = vmatprep.mubr.bf16.mxu1 %v543_v52 }
 0x25c   : > { %712 = vmatmul.mubr.bf16.vlgmr.msra.gmra.mrb[0].mxu1 %v542_v2 }
 0x32f   : > { %v835_v7 = vpop.f32.mrb[0].mxu1 }
 0x330   : > { %v836_v53 = vpop.f32.mrb[1].mxu1 }
 0x331   : > { %v837_v4 = vadd.f32 %v836_v53, %v835_v7  ;;  %v838_v54 = vpop.f32.mrb[2].mxu1 }
 0x332   : > { %v839_v55 = vpop.f32.mrb[3].mxu1 }
 0x333   : > { %v714_v56 = vadd.f32 %v837_v4, %v800_v14  ;;  %v840_v57 = vadd.f32 %v839_v55, %v838_v54 }
 0x335   : > { %v720_v10 = vadd.f32 %v714_v56, %v963_v0  ;;  %v717_v58 = vadd.f32 %v840_v57, %v800_v14 }
 0x337   : > { %722 = vst.msk [vmem:[%s280_s29] sm:$0xff] %vm287_vm0, %v720_v10  ;;  %v721_v59 = vadd.f32 %v717_v58, %v965_v1 }
 0x339   : > { %723 = vst.msk [vmem:[%s280_s29 + $0x8] sm:$0xff] %vm287_vm0, %v721_v59 }
 0x33a PF: > { %s17_s24 = sadd.s32 1, %s904_s24  }
 0x33b   : > { %p14_p4 = scmp.ge.s32.totalorder %s17_s24, 4  }
 0x33d   :  { %16 = sbr.rel (!%p14_p4) target bundleno = 1 (0x1), region = 78 }

</bundles_post_ra>
